<compile_context>
chip_gen: v6e
topology: v6e:2x2x1
jax: 0.10.0
libtpu: 0.0.40
codegen_flags: <defaults>
</compile_context>

<pallas_src>
import jax
import jax.numpy as jnp
from jax import lax
from jax.experimental import pallas as pl
from jax.experimental.pallas import tpu as pltpu

H = 128     # hidden width of the stream network (one sublane tile group)


def hydro_kernel(x_ref, w1_ref, coef_ref, out_ref):
    # x_ref:    (4, TN)  rows = x, y, t, 1   (samples on the lane axis)
    # w1_ref:   (H, 4)   [W1 | b1]           (bias folded into the matmul)
    # coef_ref: (8, H)   rows = [ a*cy, -a*cx,
    #                             -a*cx*r, -a*cy*r, -a*ct*r,
    #                             nu*a*r*r, 0, 0 ]
    # out_ref:  (3, TN)  rows = [u, v, NSE]
    z = jnp.dot(w1_ref[...], x_ref[...],
                preferred_element_type=jnp.float32,
                precision=lax.Precision.HIGHEST)            # (H, TN) on MXU

    # tanh derivative chain (shared subexpressions, pure VPU/EUP):
    #   tanh'    = 1 - t^2
    #   tanh'''  = tanh' * (6 t^2 - 2)
    #   tanh'''' = t * tanh' * (16 - 24 t^2)
    t0 = jnp.tanh(z)                                        # EUP
    s = t0 * t0
    t1 = 1.0 - s
    p = t0 * t1
    t3 = t1 * (6.0 * s - 2.0)
    t4 = p * (16.0 - 24.0 * s)

    # Hidden-dim contractions on the MXU (f32 accumulation required).
    coef = coef_ref[...]
    uv = jnp.dot(coef[0:2, :], t1,
                 preferred_element_type=jnp.float32,
                 precision=lax.Precision.HIGHEST)           # (2, TN): [u; v]
    dw = jnp.dot(coef[2:5, :], t3,
                 preferred_element_type=jnp.float32,
                 precision=lax.Precision.HIGHEST)           # (3, TN): w_x, w_y, w_t
    nlap = jnp.dot(coef[5:6, :], t4,
                   preferred_element_type=jnp.float32,
                   precision=lax.Precision.HIGHEST)         # (1, TN): -nu*Lap(w)

    u = uv[0:1, :]
    v = uv[1:2, :]
    nse = dw[2:3, :] + dw[0:1, :] * u + dw[1:2, :] * v + nlap

    # Lane-dense stores (lane width = TN, multiple of 128).
    out_ref[0:2, :] = uv
    out_ref[2:3, :] = nse


def hydro_pallas(x, w1, b1, w2, b2, nu, tn=None):
    """Forward pass of HydroNetwork. Returns (f [N,2], NSE [N])."""
    del b2  # b2 only shifts psi; no output depends on psi itself.
    n = x.shape[0]
    h = w1.shape[0]
    if tn is None:
        # Big blocks amortize the ~0.35us per-step overhead; the cap keeps the
        # (H, TN) f32 temporaries well inside scoped VMEM on every chip.
        tn = max(128, min(pl.next_power_of_2(n), 2048))
    assert tn % 128 == 0 and h % 8 == 0
    n_pad = pl.cdiv(n, tn) * tn

    x = x.astype(jnp.float32)
    w1 = w1.astype(jnp.float32)
    b1 = b1.astype(jnp.float32)
    a = w2.astype(jnp.float32).reshape(h)
    nu_f = jnp.asarray(nu, jnp.float32)

    # Augmented, transposed input: rows = x, y, t, 1 (bias fold).
    x_aug = jnp.concatenate([x.T, jnp.ones((1, n), jnp.float32)], axis=0)   # (4, N)
    if n_pad != n:
        x_aug = jnp.pad(x_aug, ((0, 0), (0, n_pad - n)))
    w1aug = jnp.concatenate([w1, b1.reshape(h, 1)], axis=1)                 # (H, 4)

    # All weight-only combinations (independent of samples), packed into one
    # sublane-aligned (8, H) coefficient matrix.
    cx, cy, ct = w1[:, 0], w1[:, 1], w1[:, 2]
    r = cx * cx + cy * cy
    zero = jnp.zeros_like(a)
    coef = jnp.stack([
        a * cy,            # -> u
        -a * cx,           # -> v
        -a * cx * r,       # -> w_x
        -a * cy * r,       # -> w_y
        -a * ct * r,       # -> w_t
        nu_f * a * r * r,  # -> -nu * Lap(w)
        zero, zero,
    ], axis=0)                                                              # (8, H)

    out = pl.pallas_call(
        hydro_kernel,
        out_shape=jax.ShapeDtypeStruct((3, n_pad), jnp.float32),
        grid_spec=pltpu.PrefetchScalarGridSpec(
            num_scalar_prefetch=0,
            grid=(n_pad // tn,),
            in_specs=[
                pl.BlockSpec((4, tn), lambda i: (0, i)),
                pl.BlockSpec((h, 4), lambda i: (0, 0)),
                pl.BlockSpec((8, h), lambda i: (0, 0)),
            ],
            out_specs=pl.BlockSpec((3, tn), lambda i: (0, i)),
        ),
        compiler_params=pltpu.CompilerParams(
            dimension_semantics=("parallel",)),
    )(x_aug, w1aug, coef)

    f = out[:2, :n].T          # (N, 2) = [u, v]
    nse = out[2, :n]           # (N,)
    return f, nse


def make_reference(w1, b1, w2v, b2, nu):
    """Pure-JAX reference mirroring the PyTorch autograd graph exactly."""
    def psi(xs):
        z = w1[:, 0] * xs[0] + w1[:, 1] * xs[1] + w1[:, 2] * xs[2] + b1
        return jnp.sum(w2v * jnp.tanh(z)) + b2

    dpsi = jax.grad(psi)
    u_fn = lambda xs: dpsi(xs)[1]
    v_fn = lambda xs: -dpsi(xs)[0]
    w_fn = lambda xs: jax.grad(v_fn)(xs)[0] - jax.grad(u_fn)(xs)[1]
    dw_fn = jax.grad(w_fn)
    lapw_fn = lambda xs: (jax.grad(lambda y: dw_fn(y)[0])(xs)[0]
                          + jax.grad(lambda y: dw_fn(y)[1])(xs)[1])

    def single(xs):
        u = u_fn(xs)
        v = v_fn(xs)
        dw = dw_fn(xs)
        nse = dw[2] + dw[0] * u + dw[1] * v - nu * lapw_fn(xs)
        return jnp.stack([u, v]), nse

    return jax.vmap(single)


if __name__ == "__main__":
    key = jax.random.PRNGKey(0)
    k1, k2, k3, k4, k5 = jax.random.split(key, 5)

    N = 512    # collocation samples
    TN = 256   # grid = (2,) -> shardable across cores, still lane-dense

    # PyTorch nn.Linear default init: U(-1/sqrt(fan_in), 1/sqrt(fan_in)).
    b_in = 1.0 / jnp.sqrt(3.0)
    b_hid = 1.0 / jnp.sqrt(float(H))
    w1 = jax.random.uniform(k1, (H, 3), jnp.float32, -b_in, b_in)
    b1 = jax.random.uniform(k2, (H,), jnp.float32, -b_in, b_in)
    w2 = jax.random.uniform(k3, (1, H), jnp.float32, -b_hid, b_hid)
    b2 = jax.random.uniform(k4, (1,), jnp.float32, -b_hid, b_hid)
    nu = jnp.float32(1.0)                       # self.nu initialized to 1.0

    x = jax.random.uniform(k5, (N, 3), jnp.float32, -1.0, 1.0)

    f, nse = hydro_pallas(x, w1, b1, w2, b2, nu, tn=TN)
    jax.block_until_ready((f, nse))

    f_ref, nse_ref = make_reference(w1, b1, w2[0], b2[0], nu)(x)
    assert f.shape == (N, 2) and nse.shape == (N,)
    assert jnp.allclose(f, f_ref, atol=1e-4, rtol=1e-3)
    assert jnp.allclose(nse, nse_ref, atol=5e-4, rtol=5e-3)
    print("KERNEL_OK")
</pallas_src>

<mosaic_0001>
module attributes {stable_mosaic.version = 11 : i64} {
  func.func @hydro_kernel(%arg0: i32, %arg1: memref<4x256xf32, #tpu.memory_space<vmem>>, %arg2: memref<128x4xf32, #tpu.memory_space<vmem>>, %arg3: memref<8x128xf32, #tpu.memory_space<vmem>>, %arg4: memref<3x256xf32, #tpu.memory_space<vmem>>) attributes {dimension_semantics = [#tpu.dimension_semantics<parallel>], iteration_bounds = array<i64: 2>, scalar_prefetch = 0 : i64, scratch_operands = 0 : i64, tpu.core_type = #tpu.core_type<tc>, window_params = [{transform_indices = @transform_0, window_bounds = array<i64: 4, 256>}, {pipeline_mode = #tpu.pipeline_mode<synchronous>, transform_indices = @transform_1, window_bounds = array<i64: 128, 4>}, {pipeline_mode = #tpu.pipeline_mode<synchronous>, transform_indices = @transform_2, window_bounds = array<i64: 8, 128>}, {transform_indices = @transform_3, window_bounds = array<i64: 3, 256>}]} {
    %c0 = arith.constant 0 : index
    %c0_0 = arith.constant 0 : index
    %0 = vector.load %arg2[%c0, %c0_0] : memref<128x4xf32, #tpu.memory_space<vmem>>, vector<128x4xf32>
    %c0_1 = arith.constant 0 : index
    %c0_2 = arith.constant 0 : index
    %1 = vector.load %arg1[%c0_1, %c0_2] : memref<4x256xf32, #tpu.memory_space<vmem>>, vector<4x256xf32>
    %cst = arith.constant dense<0.000000e+00> : vector<128x256xf32>
    %2 = tpu.matmul %0, %1, %cst {dimension_numbers = #tpu.dot_dimension_numbers<[1], [0], [0], [1], [0, 0, 1, 1], [], []>, precision = #tpu.contract_precision<fp32>} : vector<128x4xf32>, vector<4x256xf32>, vector<128x256xf32> -> vector<128x256xf32>
    %3 = math.tanh %2 : vector<128x256xf32>
    %4 = arith.mulf %3, %3 : vector<128x256xf32>
    %cst_3 = arith.constant 1.000000e+00 : f32
    %5 = vector.broadcast %cst_3 : f32 to vector<128x256xf32>
    %6 = arith.subf %5, %4 : vector<128x256xf32>
    %7 = arith.mulf %3, %6 : vector<128x256xf32>
    %cst_4 = arith.constant 6.000000e+00 : f32
    %8 = vector.broadcast %cst_4 : f32 to vector<128x256xf32>
    %9 = arith.mulf %8, %4 : vector<128x256xf32>
    %cst_5 = arith.constant 2.000000e+00 : f32
    %10 = vector.broadcast %cst_5 : f32 to vector<128x256xf32>
    %11 = arith.subf %9, %10 : vector<128x256xf32>
    %12 = arith.mulf %6, %11 : vector<128x256xf32>
    %cst_6 = arith.constant 2.400000e+01 : f32
    %13 = vector.broadcast %cst_6 : f32 to vector<128x256xf32>
    %14 = arith.mulf %13, %4 : vector<128x256xf32>
    %cst_7 = arith.constant 1.600000e+01 : f32
    %15 = vector.broadcast %cst_7 : f32 to vector<128x256xf32>
    %16 = arith.subf %15, %14 : vector<128x256xf32>
    %17 = arith.mulf %7, %16 : vector<128x256xf32>
    %c0_8 = arith.constant 0 : index
    %c0_9 = arith.constant 0 : index
    %18 = vector.load %arg3[%c0_8, %c0_9] : memref<8x128xf32, #tpu.memory_space<vmem>>, vector<8x128xf32>
    %19 = vector.extract_strided_slice %18 {offsets = [0, 0], sizes = [2, 128], strides = [1, 1]} : vector<8x128xf32> to vector<2x128xf32>
    %cst_10 = arith.constant dense<0.000000e+00> : vector<2x256xf32>
    %20 = tpu.matmul %19, %6, %cst_10 {dimension_numbers = #tpu.dot_dimension_numbers<[1], [0], [0], [1], [0, 0, 1, 1], [], []>, precision = #tpu.contract_precision<fp32>} : vector<2x128xf32>, vector<128x256xf32>, vector<2x256xf32> -> vector<2x256xf32>
    %21 = vector.extract_strided_slice %18 {offsets = [2, 0], sizes = [3, 128], strides = [1, 1]} : vector<8x128xf32> to vector<3x128xf32>
    %cst_11 = arith.constant dense<0.000000e+00> : vector<3x256xf32>
    %22 = tpu.matmul %21, %12, %cst_11 {dimension_numbers = #tpu.dot_dimension_numbers<[1], [0], [0], [1], [0, 0, 1, 1], [], []>, precision = #tpu.contract_precision<fp32>} : vector<3x128xf32>, vector<128x256xf32>, vector<3x256xf32> -> vector<3x256xf32>
    %23 = vector.extract_strided_slice %18 {offsets = [5, 0], sizes = [1, 128], strides = [1, 1]} : vector<8x128xf32> to vector<1x128xf32>
    %cst_12 = arith.constant dense<0.000000e+00> : vector<1x256xf32>
    %24 = tpu.matmul %23, %17, %cst_12 {dimension_numbers = #tpu.dot_dimension_numbers<[1], [0], [0], [1], [0, 0, 1, 1], [], []>, precision = #tpu.contract_precision<fp32>} : vector<1x128xf32>, vector<128x256xf32>, vector<1x256xf32> -> vector<1x256xf32>
    %25 = vector.extract_strided_slice %20 {offsets = [0, 0], sizes = [1, 256], strides = [1, 1]} : vector<2x256xf32> to vector<1x256xf32>
    %26 = vector.extract_strided_slice %20 {offsets = [1, 0], sizes = [1, 256], strides = [1, 1]} : vector<2x256xf32> to vector<1x256xf32>
    %27 = vector.extract_strided_slice %22 {offsets = [2, 0], sizes = [1, 256], strides = [1, 1]} : vector<3x256xf32> to vector<1x256xf32>
    %28 = vector.extract_strided_slice %22 {offsets = [0, 0], sizes = [1, 256], strides = [1, 1]} : vector<3x256xf32> to vector<1x256xf32>
    %29 = arith.mulf %28, %25 : vector<1x256xf32>
    %30 = arith.addf %27, %29 : vector<1x256xf32>
    %31 = vector.extract_strided_slice %22 {offsets = [1, 0], sizes = [1, 256], strides = [1, 1]} : vector<3x256xf32> to vector<1x256xf32>
    %32 = arith.mulf %31, %26 : vector<1x256xf32>
    %33 = arith.addf %30, %32 : vector<1x256xf32>
    %34 = arith.addf %33, %24 : vector<1x256xf32>
    %c0_13 = arith.constant 0 : index
    %c0_14 = arith.constant 0 : index
    %35 = vector.load %arg4[%c0_13, %c0_14] : memref<3x256xf32, #tpu.memory_space<vmem>>, vector<2x256xf32>
    tpu.vector_store %arg4[%c0_13, %c0_14], %20 {strides = array<i32>} : memref<3x256xf32, #tpu.memory_space<vmem>>, vector<2x256xf32>,
    %c2 = arith.constant 2 : index
    %c0_15 = arith.constant 0 : index
    %36 = vector.load %arg4[%c2, %c0_15] : memref<3x256xf32, #tpu.memory_space<vmem>>, vector<1x256xf32>
    tpu.vector_store %arg4[%c2, %c0_15], %34 {strides = array<i32>} : memref<3x256xf32, #tpu.memory_space<vmem>>, vector<1x256xf32>,
    return
  }
  func.func @transform_0(%arg0: i32) -> (i32, i32) {
    %c0_i32 = arith.constant 0 : i32
    %c0_i32_0 = arith.constant 0 : i32
    return %c0_i32, %arg0 : i32, i32
  }
  func.func @transform_1(%arg0: i32) -> (i32, i32) {
    %c0_i32 = arith.constant 0 : i32
    %c0_i32_0 = arith.constant 0 : i32
    %c0_i32_1 = arith.constant 0 : i32
    return %c0_i32, %c0_i32_0 : i32, i32
  }
  func.func @transform_2(%arg0: i32) -> (i32, i32) {
    %c0_i32 = arith.constant 0 : i32
    %c0_i32_0 = arith.constant 0 : i32
    %c0_i32_1 = arith.constant 0 : i32
    return %c0_i32, %c0_i32_0 : i32, i32
  }
  func.func @transform_3(%arg0: i32) -> (i32, i32) {
    %c0_i32 = arith.constant 0 : i32
    %c0_i32_0 = arith.constant 0 : i32
    return %c0_i32, %arg0 : i32, i32
  }
}

</mosaic_0001>

<bundles_post_ra>
// kernel: tpu_custom_call.1
= control target key start
LH: loop header
LB: loop body
LE: loop exit
PB: predicated region body
PF: predicated region fallthrough
CT: control target
= control target key end

     0   :  { %8 = vsyncpa [#allocation3], 0  ;;  %s7651_s0 = inlined_call_operand.vmem [shape: f32[4,512], index: 0, kind: input, shape index: {}]   ;;  %s7652_s1 = inlined_call_operand.vmem [shape: f32[128,4], index: 1, kind: input, shape index: {}]   ;;  %s7653_s2 = inlined_call_operand.vmem [shape: f32[8,128], index: 2, kind: input, shape index: {}]   ;;  %s7654_s3 = inlined_call_operand.hbm [shape: f32[3,512], index: 3, kind: output, shape index: {}]  }
   0x1   :  { %10 = vsyncpa [#allocation3 + $0x1], 0  ;;  %s4702_s12 = smov 0   ;;  %s4704_s13 = smov 0  }
   0x2   :  { %s4706_s14 = smov 0   ;;  %s4708_s15 = smov 0  }
   0x3 LB: > { %s4723_s16 = sadd.s32 4294967295, %s4677_s15   ;;  %s4464_s17 = sadd.s32 4294967294, %s4677_s15   ;;  %s4677_s15 = sphi %s4708_s15, %s8706_s15   ;;  %s4673_s14 = sphi %s4706_s14, %s8705_s14   ;;  %s4669_s13 = sphi %s4704_s13, %s8704_s13   ;;  %s4665_s12 = sphi %s4702_s12, %s8703_s12  }
   0x4   : > { %s4727_s18 = sadd.s32 1, %s4677_s15   ;;  %s91_s19 = sadd.s32 1, %s4673_s14 }
   0x5   : > { %s88_s20 = ssub.s32 %s4677_s15, %s4727_s18  ;;  %p101_p0 = scmp.ne.s32.totalorder %s4673_s14, %s4669_s13 }
   0x6   : > { %p89_p1 = scmp.eq.s32.totalorder %s88_s20, 0  ;;  %p102_p2 = scmp.eq.s32.totalorder %s4723_s16, 1 }
   0x7   : > { %p107_p3 = scmp.ne.s32.totalorder %s4669_s13, %s4665_s12  ;;  %p108_p4 = scmp.eq.s32.totalorder %s4464_s17, 1 }
   0x8   : > { %s4738_s21 = scalar_select %p89_p1, %s4673_s14, %s91_s19  }
   0x9   : > { %p4740_p5 = por %p102_p2, %p101_p0  ;;  %p4744_p6 = por %p108_p4, %p107_p3 }
   0xa   : > { %p4467_p7 = scmp.ge.s32.totalorder %s4677_s15, 1  ;;  %p141_p8 = scmp.lt.s32.totalorder %s4677_s15, 3 }
   0xc   : > { %p142_p9 = pnand %p4467_p7, %p141_p8 }
   0xe   : > { %145 = sbr.rel (%p142_p9) target bundleno = 997 (0x3e5), region = 32 }
  0x13   : > { %s4469_s24 = sshll.u32 %s4723_s16, 1  ;;  %v172_v0 = vld [vmem:[%s7652_s1] sm:$0xff]  ;;  %vm191_vm0 = vcmask 31744   ;;  %v173_v1 = vld [vmem:[%s7652_s1 + $0x8] sm:$0xff]  ;;  %v7655_v2 = vmov 0.0   ;;  %v174_v5 = vld [vmem:[%s7652_s1 + $0x10] sm:$0xff] }
  0x14   : > { %p166_p10 = scmp.lt.s32.totalorder %s4469_s24, 3  ;;  %311 = vmatprep.mubr.f32.mxu0 %v7655_v2  ;;  %v193_v3 = vsel %vm191_vm0, %v172_v0, 0  ;;  %v196_v4 = vsel %vm191_vm0, %v173_v1, 0  ;;  %562 = vmatprep.mubr.f32.mxu1 %v7655_v2  ;;  %v175_v6 = vld [vmem:[%s7652_s1 + $0x18] sm:$0xff]  ;;  %v199_v9 = vsel %vm191_vm0, %v174_v5, 0  ;;  %v176_v14 = vld [vmem:[%s7652_s1 + $0x20] sm:$0xff] }
  0x15   : > { %v4767_v7 = vand.u32 4294901760, %v193_v3  ;;  %v4769_v8 = vand.u32 4294901760, %v196_v4  ;;  %v4772_v10 = vand.u32 4294901760, %v199_v9  ;;  %v202_v11 = vsel %vm191_vm0, %v175_v6, 0  ;;  %v177_v18 = vld [vmem:[%s7652_s1 + $0x28] sm:$0xff]  ;;  %v178_v35 = vld [vmem:[%s7652_s1 + $0x30] sm:$0xff] }
  0x16   : > { %s8708_s24 = smov (!%p166_p10, %s4469_s24), 3  ;;  %vm240_vm1 = vcmask 1043456   ;;  %v4791_v17 = vand.u32 4294901760, %v202_v11  ;;  %v205_v21 = vsel %vm191_vm0, %v176_v14, 0  ;;  %v208_v26 = vsel %vm191_vm0, %v177_v18, 0  ;;  %v179_v46 = vld [vmem:[%s7652_s1 + $0x38] sm:$0xff] }
  0x17   : > { %v4776_v12 = vsub.f32 %v193_v3, %v4767_v7  ;;  %v4779_v13 = vsub.f32 %v196_v4, %v4769_v8  ;;  %s4470_s8 = sshll.u32 %s8708_s24, 2  ;;  %v4789_v16 = vsub.f32 %v199_v9, %v4772_v10  ;;  %v4808_v30 = vand.u32 4294901760, %v205_v21  ;;  %v180_v56 = vld [vmem:[%s7652_s1 + $0x40] sm:$0xff]  ;;  %v181_v63 = vld [vmem:[%s7652_s1 + $0x48] sm:$0xff]  ;;  %v182_v9 = vld [vmem:[%s7652_s1 + $0x50] sm:$0xff]  ;;  %s162_s29 = sand.u32 1, %s4669_s13  }
  0x18   : > { %s169_s11 = scalar_lea.vmem %s7651_s0, %s4470_s8  ;;  %v4806_v29 = vsub.f32 %v202_v11, %v4791_v17  ;;  %v4825_v40 = vand.u32 4294901760, %v208_v26  ;;  %v211_v41 = vsel %vm191_vm0, %v178_v35, 0  ;;  %v214_v51 = vsel %vm191_vm0, %v179_v46, 0  ;;  %v184_v35 = vld [vmem:[%s7652_s1 + $0x60] sm:$0xff]  ;;  %v185_v46 = vld [vmem:[%s7652_s1 + $0x68] sm:$0xff]  ;;  %s4468_s30 = sshll.u32 %s162_s29, 3 }
  0x19   : > { %v314_v15 = vand.u32 4294901760, %v4776_v12  ;;  %v188_v19 = vld [vmem:[%s169_s11] sm:$0xff]  ;;  %v325_v20 = vand.u32 4294901760, %v4779_v13  ;;  %v336_v28 = vand.u32 4294901760, %v4789_v16  ;;  %v4823_v39 = vsub.f32 %v205_v21, %v4808_v30  ;;  %s7606_s4 = scalar_lea.vmem [#allocation2], %s4468_s30  ;;  %s4509_s5 = sshll.u32 %s4723_s16, 7 }
  0x1a   : > { %v190_v22 = vcombine.high %v188_v19, %v188_v19  ;;  %v241_v23 = vsel %vm240_vm1, %v188_v19, 0  ;;  %v347_v38 = vand.u32 4294901760, %v4806_v29  ;;  %v4840_v49 = vsub.f32 %v208_v26, %v4825_v40  ;;  %s4405_s6 = sshll.u32 %s7606_s4, 4  ;;  %s4403_s9 = scalar_lea.hbm %s7654_s3, %s4509_s5  ;;  %s4406_s6 = int_to_ptr.vmem [resolvable:$true] %s4405_s6 }
  0x1b   : > { %v315_v24 = vsub.f32 %v4776_v12, %v314_v15  ;;  %v4801_v25 = vand.u32 4294901760, %v241_v23  ;;  %v326_v33 = vsub.f32 %v4779_v13, %v325_v20  ;;  %v337_v45 = vsub.f32 %v4789_v16, %v336_v28  ;;  %s4391_s10 = scalar_lea.sflag [#allocation3], %s162_s29  ;;  %s4617_s11 = scalar_lea.vmem %s4406_s6, 128 }
  0x1c   : > { %v243_v27 = vsel %vm240_vm1, %v190_v22, 0  ;;  %v4842_v50 = vand.u32 4294901760, %v211_v41  ;;  %v348_v54 = vsub.f32 %v4806_v29, %v347_v38  ;;  %v358_v55 = vand.u32 4294901760, %v4823_v39  ;;  %v183_v22 = vld [vmem:[%s7652_s1 + $0x58] sm:$0xff]  ;;  %p4618_p11 = scmp.ne.s32.totalorder %s4406_s6, %s4617_s11  ;;  %s4681_s17 = smov [#allocation2]  }
  0x1d   : > { %v275_v31 = vand.u32 4294901760, %v243_v27  ;;  %v316_v32 = vand.u32 4294901760, %v315_v24  ;;  %v4814_v34 = vsub.f32 %v241_v23, %v4801_v25  ;;  %v327_v42 = vand.u32 4294901760, %v326_v33  ;;  %s4621_s19 = sshll.u32 %s4681_s17, 4  ;;  %s4622_s19 = int_to_ptr.vmem [resolvable:$false] %s4621_s19 }
  0x1e   : > { %v338_v53 = vand.u32 4294901760, %v337_v45  ;;  %v4853_v57 = vand.u32 4294901760, %v214_v51  ;;  %v349_v58 = vand.u32 4294901760, %v348_v54  ;;  %v359_v59 = vsub.f32 %v4823_v39, %v358_v55  ;;  %p4619_p12 = pnand %p4618_p11, %p4740_p5  ;;  %s4623_s16 = scalar_lea.vmem %s4622_s19, 256 }
  0x1f   : > { %276 = vmatprep.subr.mxu0 %v275_v31  ;;  %v519_v36 = vsub.f32 %v243_v27, %v275_v31  ;;  %v526_v37 = vand.u32 4294901760, %v4814_v34  ;;  %v369_v60 = vand.u32 4294901760, %v4840_v49  ;;  %v4861_v61 = vsub.f32 %v211_v41, %v4842_v50  ;;  %p4624_p0 = scmp.lt.s32.totalorder %s4406_s6, %s4622_s19  ;;  %p4625_p1 = scmp.lt.s32.totalorder %s4623_s16, %s4617_s11 }
  0x20   : > { %278 = vmatpush1.msra.mxu0 %v4801_v25  ;;  %v217_v62 = vsel %vm191_vm0, %v180_v56, 0  ;;  %v4870_v0 = vsub.f32 %v214_v51, %v4853_v57  ;;  %v360_v1 = vand.u32 4294901760, %v359_v59  ;;  %v220_v6 = vsel %vm191_vm0, %v181_v63, 0  ;;  %v186_v56 = vld [vmem:[%s7652_s1 + $0x70] sm:$0xff]  ;;  %p4620_p13 = pneg %p4619_p12 }
  0x21   : > { %317 = vmatmul.mubr.f32.vlgmr.msra.gmra.mxu0 %v316_v32  ;;  %v520_v43 = vand.u32 4294901760, %v519_v36  ;;  %v527_v44 = vsub.f32 %v4814_v34, %v526_v37  ;;  %707 = vmatprep.subr.mxu0 %v519_v36  ;;  %v370_v3 = vsub.f32 %v4840_v49, %v369_v60  ;;  %v380_v4 = vand.u32 4294901760, %v4861_v61  ;;  %p4626_p2 = por %p4625_p1, %p4624_p0 }
  0x22   : > { %322 = vmatprep.mubr.f32.mxu0 %v7655_v2  ;;  %710 = vmatpush1.msra.mxu0 %v4814_v34  ;;  %v4878_v5 = vand.u32 4294901760, %v217_v62  ;;  %v391_v11 = vand.u32 4294901760, %v4870_v0  ;;  %v4894_v21 = vand.u32 4294901760, %v220_v6  ;;  %v223_v23 = vsel %vm191_vm0, %v182_v9, 0 }
  0x23   : > { %v521_v47 = vsub.f32 %v519_v36, %v520_v43  ;;  %1116 = vmatprep.subr.mxu0 %v520_v43  ;;  %v528_v48 = vand.u32 4294901760, %v527_v44  ;;  %v371_v14 = vand.u32 4294901760, %v370_v3  ;;  %v381_v18 = vsub.f32 %v4861_v61, %v380_v4  ;;  %p4627_p3 = pnand %p4626_p2, %p4620_p13 }
  0x24   : > { %v4892_v19 = vsub.f32 %v217_v62, %v4878_v5  ;;  %v392_v24 = vsub.f32 %v4870_v0, %v391_v11  ;;  %v226_v26 = vsel %vm191_vm0, %v183_v22, 0  ;;  %v4909_v32 = vsub.f32 %v220_v6, %v4894_v21  ;;  %v187_v6 = vld [vmem:[%s7652_s1 + $0x78] sm:$0xff] }
  0x25   : > { %328 = vmatmul.mubr.f32.gmra.mxu0 %v327_v42  ;;  %v522_v52 = vand.u32 4294901760, %v521_v47  ;;  %v382_v27 = vand.u32 4294901760, %v381_v18  ;;  %v4911_v33 = vand.u32 4294901760, %v223_v23  ;;  %v4918_v41 = vand.u32 4294901760, %v226_v26 }
  0x26   : > { %333 = vmatprep.mubr.f32.mxu0 %v7655_v2  ;;  %v393_v36 = vand.u32 4294901760, %v392_v24  ;;  %v413_v43 = vand.u32 4294901760, %v4909_v32  ;;  %v229_v45 = vsel %vm191_vm0, %v184_v35, 0  ;;  %v232_v54 = vsel %vm191_vm0, %v185_v46, 0 }
  0x27   : > { %523 = vmatprep.subr.mxu1 %v522_v52  ;;  %v4926_v44 = vsub.f32 %v223_v23, %v4911_v33  ;;  %v4935_v47 = vsub.f32 %v226_v26, %v4918_v41  ;;  %v235_v59 = vsel %vm191_vm0, %v186_v56, 0  ;;  %v238_v24 = vsel %vm191_vm0, %v187_v6, 0 }
  0x28   : > { %529 = vmatpush1.msra.mxu1 %v528_v48  ;;  %v4937_v48 = vand.u32 4294901760, %v229_v45  ;;  %v414_v52 = vsub.f32 %v4909_v32, %v413_v43  ;;  %v4966_v9 = vand.u32 4294901760, %v235_v59 }
  0x29   : > { %339 = vmatmul.mubr.f32.gmra.mxu0 %v338_v53  ;;  %564 = vmatmul.mubr.f32.vlgmr.msra.gmra.mxu1 %v4767_v7  ;;  %v424_v53 = vand.u32 4294901760, %v4926_v44 }
  0x2a   : > { %344 = vmatprep.mubr.f32.mxu0 %v7655_v2  ;;  %569 = vmatprep.mubr.f32.mxu1 %v7655_v2  ;;  %v415_v62 = vand.u32 4294901760, %v414_v52  ;;  %v4959_v3 = vsub.f32 %v229_v45, %v4937_v48  ;;  %v4980_v26 = vsub.f32 %v235_v59, %v4966_v9 }
  0x2b   : > { %903 = vmatprep.subr.mxu1 %v275_v31  ;;  %v425_v63 = vsub.f32 %v4926_v44, %v424_v53 }
  0x2c   : > { %905 = vmatpush1.msra.mxu1 %v4801_v25  ;;  %v446_v22 = vand.u32 4294901760, %v4959_v3 }
  0x2d   : > { %350 = vmatmul.mubr.f32.gmra.mxu0 %v349_v58  ;;  %571 = vmatmul.mubr.f32.gmra.mxu1 %v4769_v8  ;;  %v4950_v58 = vand.u32 4294901760, %v232_v54 }
  0x2e   : > { %355 = vmatprep.mubr.f32.mxu0 %v7655_v2  ;;  %576 = vmatprep.mubr.f32.mxu1 %v7655_v2  ;;  %v447_v35 = vsub.f32 %v4959_v3, %v446_v22 }
  0x2f   : > { %1297 = vmatprep.subr.mxu1 %v275_v31  ;;  %v402_v31 = vand.u32 4294901760, %v4892_v19  ;;  %v4974_v23 = vsub.f32 %v232_v54, %v4950_v58 }
  0x30   : > { %v448_v45 = vand.u32 4294901760, %v447_v35 }
  0x31   : > { %361 = vmatmul.mubr.f32.gmra.mxu0 %v360_v1  ;;  %578 = vmatmul.mubr.f32.gmra.mxu1 %v4772_v10  ;;  %v403_v42 = vsub.f32 %v4892_v19, %v402_v31  ;;  %v435_v1 = vand.u32 4294901760, %v4935_v47 }
  0x32   : > { %366 = vmatprep.mubr.f32.mxu0 %v7655_v2  ;;  %583 = vmatprep.mubr.f32.mxu1 %v7655_v2 }
  0x33   : > { %v404_v51 = vand.u32 4294901760, %v403_v42  ;;  %v436_v18 = vsub.f32 %v4935_v47, %v435_v1  ;;  %v4987_v42 = vand.u32 4294901760, %v238_v24 }
  0x35   : > { %372 = vmatmul.mubr.f32.gmra.mxu0 %v371_v14  ;;  %585 = vmatmul.mubr.f32.gmra.mxu1 %v4791_v17  ;;  %v426_v14 = vand.u32 4294901760, %v425_v63  ;;  %v4997_v52 = vsub.f32 %v238_v24, %v4987_v42 }
  0x36   : > { %377 = vmatprep.mubr.f32.mxu0 %v7655_v2  ;;  %590 = vmatprep.mubr.f32.mxu1 %v7655_v2 }
  0x37   : > { %v479_v59 = vand.u32 4294901760, %v4997_v52 }
  0x39   : > { %383 = vmatmul.mubr.f32.gmra.mxu0 %v382_v27  ;;  %592 = vmatmul.mubr.f32.gmra.mxu1 %v4808_v30  ;;  %v437_v27 = vand.u32 4294901760, %v436_v18  ;;  %v480_v63 = vsub.f32 %v4997_v52, %v479_v59 }
  0x3a   : > { %388 = vmatprep.mubr.f32.mxu0 %v7655_v2  ;;  %597 = vmatprep.mubr.f32.mxu1 %v7655_v2 }
  0x3b   : > { %v481_v6 = vand.u32 4294901760, %v480_v63 }
  0x3d   : > { %394 = vmatmul.mubr.f32.gmra.mxu0 %v393_v36  ;;  %599 = vmatmul.mubr.f32.gmra.mxu1 %v4825_v40  ;;  %v457_v36 = vand.u32 4294901760, %v4974_v23 }
  0x3e   : > { %399 = vmatprep.mubr.f32.mxu0 %v7655_v2  ;;  %604 = vmatprep.mubr.f32.mxu1 %v7655_v2 }
  0x3f   : > { %v458_v46 = vsub.f32 %v4974_v23, %v457_v36 }
  0x41   : > { %405 = vmatmul.mubr.f32.gmra.mxu0 %v404_v51  ;;  %606 = vmatmul.mubr.f32.gmra.mxu1 %v4842_v50  ;;  %v468_v51 = vand.u32 4294901760, %v4980_v26  ;;  %v459_v54 = vand.u32 4294901760, %v458_v46 }
  0x42   : > { %410 = vmatprep.mubr.f32.mxu0 %v7655_v2  ;;  %611 = vmatprep.mubr.f32.mxu1 %v7655_v2 }
  0x43   : > { %v469_v56 = vsub.f32 %v4980_v26, %v468_v51 }
  0x45   : > { %416 = vmatmul.mubr.f32.gmra.mxu0 %v415_v62  ;;  %613 = vmatmul.mubr.f32.gmra.mxu1 %v4853_v57  ;;  %v470_v62 = vand.u32 4294901760, %v469_v56 }
  0x46   : > { %421 = vmatprep.mubr.f32.mxu0 %v7655_v2  ;;  %618 = vmatprep.mubr.f32.mxu1 %v7655_v2 }
  0x49   : > { %427 = vmatmul.mubr.f32.gmra.mxu0 %v426_v14  ;;  %620 = vmatmul.mubr.f32.gmra.mxu1 %v4878_v5 }
  0x4a   : > { %432 = vmatprep.mubr.f32.mxu0 %v7655_v2  ;;  %625 = vmatprep.mubr.f32.mxu1 %v7655_v2 }
  0x4d   : > { %438 = vmatmul.mubr.f32.gmra.mxu0 %v437_v27  ;;  %627 = vmatmul.mubr.f32.gmra.mxu1 %v4894_v21 }
  0x4e   : > { %443 = vmatprep.mubr.f32.mxu0 %v7655_v2  ;;  %632 = vmatprep.mubr.f32.mxu1 %v7655_v2 }
  0x51   : > { %449 = vmatmul.mubr.f32.gmra.mxu0 %v448_v45  ;;  %634 = vmatmul.mubr.f32.gmra.mxu1 %v4911_v33 }
  0x52   : > { %454 = vmatprep.mubr.f32.mxu0 %v7655_v2  ;;  %639 = vmatprep.mubr.f32.mxu1 %v7655_v2 }
  0x55   : > { %460 = vmatmul.mubr.f32.gmra.mxu0 %v459_v54  ;;  %641 = vmatmul.mubr.f32.gmra.mxu1 %v4918_v41 }
  0x56   : > { %465 = vmatprep.mubr.f32.mxu0 %v7655_v2  ;;  %646 = vmatprep.mubr.f32.mxu1 %v7655_v2 }
  0x59   : > { %471 = vmatmul.mubr.f32.gmra.mxu0 %v470_v62  ;;  %648 = vmatmul.mubr.f32.gmra.mxu1 %v4937_v48 }
  0x5a   : > { %476 = vmatprep.mubr.f32.mxu0 %v7655_v2  ;;  %653 = vmatprep.mubr.f32.mxu1 %v7655_v2 }
  0x5d   : > { %482 = vmatmul.mubr.f32.gmra.mxu0 %v481_v6  ;;  %655 = vmatmul.mubr.f32.gmra.mxu1 %v4950_v58 }
  0x5e   : > { %660 = vmatprep.mubr.f32.mxu1 %v7655_v2  ;;  %743 = vmatprep.mubr.f32.mxu0 %v7655_v2 }
  0x61   : > { %662 = vmatmul.mubr.f32.gmra.mxu1 %v4966_v9  ;;  %746 = vmatmul.mubr.f32.vlgmr.msra.gmra.mxu0 %v4776_v12 }
  0x62   : > { %667 = vmatprep.mubr.f32.mxu1 %v7655_v2  ;;  %751 = vmatprep.mubr.f32.mxu0 %v7655_v2 }
  0x63   : > { %1120 = vmatpush1.msra.mxu0 %v526_v37 }
  0x65   : > { %669 = vmatmul.mubr.f32.gmra.mxu1 %v4987_v42  ;;  %754 = vmatmul.mubr.f32.gmra.mxu0 %v4779_v13 }
  0x66   : > { %759 = vmatprep.mubr.f32.mxu0 %v7655_v2  ;;  %938 = vmatprep.mubr.f32.mxu1 %v7655_v2 }
  0x69   : > { %762 = vmatmul.mubr.f32.gmra.mxu0 %v4789_v16  ;;  %942 = vmatmul.mubr.f32.vlgmr.msra.gmra.mxu1 %v314_v15 }
  0x6a   : > { %767 = vmatprep.mubr.f32.mxu0 %v7655_v2  ;;  %947 = vmatprep.mubr.f32.mxu1 %v7655_v2 }
  0x6b   : > { %1299 = vmatpush1.msra.mxu1 %v4801_v25 }
  0x6d   : > { %770 = vmatmul.mubr.f32.gmra.mxu0 %v4806_v29  ;;  %951 = vmatmul.mubr.f32.gmra.mxu1 %v325_v20 }
  0x6e   : > { %775 = vmatprep.mubr.f32.mxu0 %v7655_v2  ;;  %956 = vmatprep.mubr.f32.mxu1 %v7655_v2 }
  0x71   : > { %778 = vmatmul.mubr.f32.gmra.mxu0 %v4823_v39  ;;  %960 = vmatmul.mubr.f32.gmra.mxu1 %v336_v28 }
  0x72   : > { %783 = vmatprep.mubr.f32.mxu0 %v7655_v2  ;;  %965 = vmatprep.mubr.f32.mxu1 %v7655_v2 }
  0x75   : > { %786 = vmatmul.mubr.f32.gmra.mxu0 %v4840_v49  ;;  %969 = vmatmul.mubr.f32.gmra.mxu1 %v347_v38 }
  0x76   : > { %791 = vmatprep.mubr.f32.mxu0 %v7655_v2  ;;  %974 = vmatprep.mubr.f32.mxu1 %v7655_v2 }
  0x79   : > { %794 = vmatmul.mubr.f32.gmra.mxu0 %v4861_v61  ;;  %978 = vmatmul.mubr.f32.gmra.mxu1 %v358_v55 }
  0x7a   : > { %799 = vmatprep.mubr.f32.mxu0 %v7655_v2  ;;  %983 = vmatprep.mubr.f32.mxu1 %v7655_v2 }
  0x7d   : > { %802 = vmatmul.mubr.f32.gmra.mxu0 %v4870_v0  ;;  %987 = vmatmul.mubr.f32.gmra.mxu1 %v369_v60 }
  0x7e   : > { %807 = vmatprep.mubr.f32.mxu0 %v7655_v2  ;;  %992 = vmatprep.mubr.f32.mxu1 %v7655_v2 }
  0x81   : > { %810 = vmatmul.mubr.f32.gmra.mxu0 %v4892_v19  ;;  %996 = vmatmul.mubr.f32.gmra.mxu1 %v380_v4 }
  0x82   : > { %815 = vmatprep.mubr.f32.mxu0 %v7655_v2  ;;  %1001 = vmatprep.mubr.f32.mxu1 %v7655_v2 }
  0x85   : > { %818 = vmatmul.mubr.f32.gmra.mxu0 %v4909_v32  ;;  %1005 = vmatmul.mubr.f32.gmra.mxu1 %v391_v11 }
  0x86   : > { %823 = vmatprep.mubr.f32.mxu0 %v7655_v2  ;;  %1010 = vmatprep.mubr.f32.mxu1 %v7655_v2 }
  0x89   : > { %826 = vmatmul.mubr.f32.gmra.mxu0 %v4926_v44  ;;  %1014 = vmatmul.mubr.f32.gmra.mxu1 %v402_v31 }
  0x8a   : > { %831 = vmatprep.mubr.f32.mxu0 %v7655_v2  ;;  %1019 = vmatprep.mubr.f32.mxu1 %v7655_v2 }
  0x8d   : > { %834 = vmatmul.mubr.f32.gmra.mxu0 %v4935_v47  ;;  %1023 = vmatmul.mubr.f32.gmra.mxu1 %v413_v43 }
  0x8e   : > { %839 = vmatprep.mubr.f32.mxu0 %v7655_v2  ;;  %1028 = vmatprep.mubr.f32.mxu1 %v7655_v2 }
  0x91   : > { %842 = vmatmul.mubr.f32.gmra.mxu0 %v4959_v3  ;;  %1032 = vmatmul.mubr.f32.gmra.mxu1 %v424_v53 }
  0x92   : > { %847 = vmatprep.mubr.f32.mxu0 %v7655_v2  ;;  %1037 = vmatprep.mubr.f32.mxu1 %v7655_v2 }
  0x95   : > { %850 = vmatmul.mubr.f32.gmra.mxu0 %v4974_v23  ;;  %1041 = vmatmul.mubr.f32.gmra.mxu1 %v435_v1 }
  0x96   : > { %855 = vmatprep.mubr.f32.mxu0 %v7655_v2  ;;  %1046 = vmatprep.mubr.f32.mxu1 %v7655_v2 }
  0x99   : > { %858 = vmatmul.mubr.f32.gmra.mxu0 %v4980_v26  ;;  %1050 = vmatmul.mubr.f32.gmra.mxu1 %v446_v22 }
  0x9a   : > { %863 = vmatprep.mubr.f32.mxu0 %v7655_v2  ;;  %1055 = vmatprep.mubr.f32.mxu1 %v7655_v2 }
  0x9d   : > { %866 = vmatmul.mubr.f32.gmra.mxu0 %v4997_v52  ;;  %1059 = vmatmul.mubr.f32.gmra.mxu1 %v457_v36 }
  0x9e   : > { %1064 = vmatprep.mubr.f32.mxu1 %v7655_v2  ;;  %1153 = vmatprep.mubr.f32.mxu0 %v7655_v2 }
  0xa1   : > { %1068 = vmatmul.mubr.f32.gmra.mxu1 %v468_v51  ;;  %1155 = vmatmul.mubr.f32.vlgmr.msra.gmra.mxu0 %v4767_v7 }
  0xa2   : > { %1073 = vmatprep.mubr.f32.mxu1 %v7655_v2  ;;  %1160 = vmatprep.mubr.f32.mxu0 %v7655_v2 }
  0xa5   : > { %1077 = vmatmul.mubr.f32.gmra.mxu1 %v479_v59  ;;  %1162 = vmatmul.mubr.f32.gmra.mxu0 %v4769_v8 }
  0xa6   : > { %1167 = vmatprep.mubr.f32.mxu0 %v7655_v2  ;;  %1332 = vmatprep.mubr.f32.mxu1 %v7655_v2 }
  0xa9   : > { %1169 = vmatmul.mubr.f32.gmra.mxu0 %v4772_v10  ;;  %1334 = vmatmul.mubr.f32.vlgmr.msra.gmra.mxu1 %v4767_v7 }
  0xaa   : > { %1174 = vmatprep.mubr.f32.mxu0 %v7655_v2  ;;  %1339 = vmatprep.mubr.f32.mxu1 %v7655_v2 }
  0xad   : > { %1176 = vmatmul.mubr.f32.gmra.mxu0 %v4791_v17  ;;  %1341 = vmatmul.mubr.f32.gmra.mxu1 %v4769_v8 }
  0xae   : > { %1181 = vmatprep.mubr.f32.mxu0 %v7655_v2  ;;  %1346 = vmatprep.mubr.f32.mxu1 %v7655_v2 }
  0xb1   : > { %1183 = vmatmul.mubr.f32.gmra.mxu0 %v4808_v30  ;;  %1348 = vmatmul.mubr.f32.gmra.mxu1 %v4772_v10 }
  0xb2   : > { %1188 = vmatprep.mubr.f32.mxu0 %v7655_v2  ;;  %1353 = vmatprep.mubr.f32.mxu1 %v7655_v2 }
  0xb5   : > { %1190 = vmatmul.mubr.f32.gmra.mxu0 %v4825_v40  ;;  %1355 = vmatmul.mubr.f32.gmra.mxu1 %v4791_v17 }
  0xb6   : > { %1195 = vmatprep.mubr.f32.mxu0 %v7655_v2  ;;  %1360 = vmatprep.mubr.f32.mxu1 %v7655_v2 }
  0xb9   : > { %1197 = vmatmul.mubr.f32.gmra.mxu0 %v4842_v50  ;;  %1362 = vmatmul.mubr.f32.gmra.mxu1 %v4808_v30 }
  0xba   : > { %1202 = vmatprep.mubr.f32.mxu0 %v7655_v2  ;;  %1367 = vmatprep.mubr.f32.mxu1 %v7655_v2 }
  0xbd   : > { %1204 = vmatmul.mubr.f32.gmra.mxu0 %v4853_v57  ;;  %1369 = vmatmul.mubr.f32.gmra.mxu1 %v4825_v40 }
  0xbe   : > { %1209 = vmatprep.mubr.f32.mxu0 %v7655_v2  ;;  %1374 = vmatprep.mubr.f32.mxu1 %v7655_v2 }
  0xc1   : > { %1211 = vmatmul.mubr.f32.gmra.mxu0 %v4878_v5  ;;  %1376 = vmatmul.mubr.f32.gmra.mxu1 %v4842_v50 }
  0xc2   : > { %1216 = vmatprep.mubr.f32.mxu0 %v7655_v2  ;;  %1381 = vmatprep.mubr.f32.mxu1 %v7655_v2 }
  0xc5   : > { %1218 = vmatmul.mubr.f32.gmra.mxu0 %v4894_v21  ;;  %1383 = vmatmul.mubr.f32.gmra.mxu1 %v4853_v57 }
  0xc6   : > { %1223 = vmatprep.mubr.f32.mxu0 %v7655_v2  ;;  %1388 = vmatprep.mubr.f32.mxu1 %v7655_v2 }
  0xc9   : > { %1225 = vmatmul.mubr.f32.gmra.mxu0 %v4911_v33  ;;  %1390 = vmatmul.mubr.f32.gmra.mxu1 %v4878_v5 }
  0xca   : > { %1230 = vmatprep.mubr.f32.mxu0 %v7655_v2  ;;  %1395 = vmatprep.mubr.f32.mxu1 %v7655_v2 }
  0xcd   : > { %1232 = vmatmul.mubr.f32.gmra.mxu0 %v4918_v41  ;;  %1397 = vmatmul.mubr.f32.gmra.mxu1 %v4894_v21 }
  0xce   : > { %1237 = vmatprep.mubr.f32.mxu0 %v7655_v2  ;;  %1402 = vmatprep.mubr.f32.mxu1 %v7655_v2 }
  0xd1   : > { %1239 = vmatmul.mubr.f32.gmra.mxu0 %v4937_v48  ;;  %1404 = vmatmul.mubr.f32.gmra.mxu1 %v4911_v33 }
  0xd2   : > { %1244 = vmatprep.mubr.f32.mxu0 %v7655_v2  ;;  %1409 = vmatprep.mubr.f32.mxu1 %v7655_v2 }
  0xd5   : > { %1246 = vmatmul.mubr.f32.gmra.mxu0 %v4950_v58  ;;  %1411 = vmatmul.mubr.f32.gmra.mxu1 %v4918_v41 }
  0xd6   : > { %1251 = vmatprep.mubr.f32.mxu0 %v7655_v2  ;;  %1416 = vmatprep.mubr.f32.mxu1 %v7655_v2 }
  0xd9   : > { %1253 = vmatmul.mubr.f32.gmra.mxu0 %v4966_v9  ;;  %1418 = vmatmul.mubr.f32.gmra.mxu1 %v4937_v48 }
  0xda   : > { %1258 = vmatprep.mubr.f32.mxu0 %v7655_v2  ;;  %1423 = vmatprep.mubr.f32.mxu1 %v7655_v2 }
  0xdd   : > { %1260 = vmatmul.mubr.f32.gmra.mxu0 %v4987_v42  ;;  %1425 = vmatmul.mubr.f32.gmra.mxu1 %v4950_v58 }
  0xde   : > { %1430 = vmatprep.mubr.f32.mxu1 %v7655_v2  ;;  %1862 = vmatprep.mubr.f32.mxu0 %v7655_v2 }
  0xe1   : > { %v318_v7 = vpop.f32.mrf.mxu0  ;;  %1432 = vmatmul.mubr.f32.gmra.mxu1 %v4966_v9 }
  0xe2   : > { %1437 = vmatprep.mubr.f32.mxu1 %v7655_v2 }
  0xe3   : > { %v5169_v8 = vpop.f32.mrf.mxu0 }
  0xe5   : > { %v329_v10 = vpop.f32.mrf.mxu0  ;;  %1439 = vmatmul.mubr.f32.gmra.mxu1 %v4987_v42 }
  0xe6   : > { %2098 = vmatprep.mubr.f32.mxu1 %v7655_v2 }
  0xe7   : > { %v331_v12 = vpop.f32.mrf.mxu0 }
  0xe9   : > { %v340_v13 = vpop.f32.mrf.mxu0  ;;  %v565_v15 = vpop.f32.mrf.mxu1 }
  0xea   : > { %v5173_v16 = vadd.f32 %v565_v15, %v318_v7 }
  0xeb   : > { %v342_v17 = vpop.f32.mrf.mxu0  ;;  %v5175_v20 = vpop.f32.mrf.mxu1 }
  0xed   : > { %v351_v25 = vpop.f32.mrf.mxu0  ;;  %v572_v28 = vpop.f32.mrf.mxu1 }
  0xee   : > { %v5177_v29 = vadd.f32 %v572_v28, %v329_v10 }
  0xef   : > { %v353_v30 = vpop.f32.mrf.mxu0  ;;  %v574_v34 = vpop.f32.mrf.mxu1 }
  0xf0   : > { %v5179_v37 = vadd.f32 %v574_v34, %v331_v12 }
  0xf1   : > { %v362_v38 = vpop.f32.mrf.mxu0  ;;  %v579_v39 = vpop.f32.mrf.mxu1 }
  0xf2   : > { %v5181_v40 = vadd.f32 %v579_v39, %v340_v13 }
  0xf3   : > { %v364_v49 = vpop.f32.mrf.mxu0  ;;  %v581_v50 = vpop.f32.mrf.mxu1 }
  0xf4   : > { %v5183_v55 = vadd.f32 %v581_v50, %v342_v17 }
  0xf5   : > { %v373_v57 = vpop.f32.mrf.mxu0  ;;  %v586_v60 = vpop.f32.mrf.mxu1 }
  0xf6   : > { %v5185_v61 = vadd.f32 %v586_v60, %v351_v25 }
  0xf7   : > { %v375_v0 = vpop.f32.mrf.mxu0  ;;  %v588_v4 = vpop.f32.mrf.mxu1 }
  0xf8   : > { %v5187_v5 = vadd.f32 %v588_v4, %v353_v30 }
  0xf9   : > { %v384_v11 = vpop.f32.mrf.mxu0  ;;  %v593_v19 = vpop.f32.mrf.mxu1 }
  0xfa   : > { %v5189_v21 = vadd.f32 %v593_v19, %v362_v38 }
  0xfb   : > { %v386_v31 = vpop.f32.mrf.mxu0  ;;  %v595_v32 = vpop.f32.mrf.mxu1 }
  0xfc   : > { %v5191_v33 = vadd.f32 %v595_v32, %v364_v49 }
  0xfd   : > { %v395_v41 = vpop.f32.mrf.mxu0  ;;  %v600_v43 = vpop.f32.mrf.mxu1 }
  0xfe   : > { %v5193_v44 = vadd.f32 %v600_v43, %v373_v57 }
  0xff   : > { %v397_v47 = vpop.f32.mrf.mxu0  ;;  %v602_v48 = vpop.f32.mrf.mxu1 }
 0x100   : > { %v5195_v53 = vadd.f32 %v602_v48, %v375_v0 }
 0x101   : > { %v406_v58 = vpop.f32.mrf.mxu0  ;;  %v607_v1 = vpop.f32.mrf.mxu1 }
 0x102   : > { %v5197_v3 = vadd.f32 %v607_v1, %v384_v11 }
 0x103   : > { %v408_v9 = vpop.f32.mrf.mxu0  ;;  %v609_v14 = vpop.f32.mrf.mxu1 }
 0x104   : > { %v5199_v18 = vadd.f32 %v609_v14, %v386_v31 }
 0x105   : > { %v417_v22 = vpop.f32.mrf.mxu0  ;;  %v614_v23 = vpop.f32.mrf.mxu1 }
 0x106   : > { %v5201_v24 = vadd.f32 %v614_v23, %v395_v41 }
 0x107   : > { %v419_v26 = vpop.f32.mrf.mxu0  ;;  %v616_v27 = vpop.f32.mrf.mxu1 }
 0x108   : > { %v5203_v35 = vadd.f32 %v616_v27, %v397_v47 }
 0x109   : > { %v428_v36 = vpop.f32.mrf.mxu0  ;;  %v621_v42 = vpop.f32.mrf.mxu1 }
 0x10a   : > { %v5205_v45 = vadd.f32 %v621_v42, %v406_v58 }
 0x10b   : > { %v430_v46 = vpop.f32.mrf.mxu0  ;;  %v623_v51 = vpop.f32.mrf.mxu1 }
 0x10c   : > { %v5207_v52 = vadd.f32 %v623_v51, %v408_v9  ;;  %v568_v51 = vadd.f32 %v5175_v20, %v5169_v8 }
 0x10d   : > { %v439_v54 = vpop.f32.mrf.mxu0  ;;  %v628_v56 = vpop.f32.mrf.mxu1 }
 0x10e   : > { %v5209_v59 = vadd.f32 %v628_v56, %v417_v22 }
 0x10f   : > { %v441_v62 = vpop.f32.mrf.mxu0  ;;  %v630_v63 = vpop.f32.mrf.mxu1 }
 0x110   : > { %v5211_v6 = vadd.f32 %v630_v63, %v419_v26 }
 0x111   : > { %v450_v7 = vpop.f32.mrf.mxu0  ;;  %v635_v10 = vpop.f32.mrf.mxu1 }
 0x112   : > { %v5213_v12 = vadd.f32 %v635_v10, %v428_v36 }
 0x113   : > { %v452_v13 = vpop.f32.mrf.mxu0  ;;  %v637_v15 = vpop.f32.mrf.mxu1 }
 0x114   : > { %v5215_v17 = vadd.f32 %v637_v15, %v430_v46 }
 0x115   : > { %v461_v25 = vpop.f32.mrf.mxu0  ;;  %v642_v28 = vpop.f32.mrf.mxu1 }
 0x116   : > { %v5217_v30 = vadd.f32 %v642_v28, %v439_v54 }
 0x117   : > { %v463_v34 = vpop.f32.mrf.mxu0  ;;  %v644_v38 = vpop.f32.mrf.mxu1 }
 0x118   : > { %v5219_v39 = vadd.f32 %v644_v38, %v441_v62 }
 0x119   : > { %v472_v49 = vpop.f32.mrf.mxu0  ;;  %v649_v50 = vpop.f32.mrf.mxu1 }
 0x11a   : > { %v5221_v57 = vadd.f32 %v649_v50, %v450_v7 }
 0x11b   : > { %v474_v60 = vpop.f32.mrf.mxu0  ;;  %v651_v0 = vpop.f32.mrf.mxu1 }
 0x11c   : > { %v5223_v4 = vadd.f32 %v651_v0, %v452_v13 }
 0x11d   : > { %v483_v11 = vpop.f32.mrf.mxu0  ;;  %v656_v19 = vpop.f32.mrf.mxu1 }
 0x11e   : > { %v5225_v31 = vadd.f32 %v656_v19, %v461_v25 }
 0x11f   : > { %v485_v32 = vpop.f32.mrf.mxu0  ;;  %v658_v41 = vpop.f32.mrf.mxu1 }
 0x120   : > { %v5227_v43 = vadd.f32 %v658_v41, %v463_v34 }
 0x121   : > { %v663_v47 = vpop.f32.mrf.mxu1  ;;  %v747_v48 = vpop.f32.mrf.mxu0 }
 0x122   : > { %v5229_v58 = vadd.f32 %v663_v47, %v472_v49  ;;  %v748_v1 = vadd.f32 %v747_v48, %v5173_v16 }
 0x123   : > { %v665_v9 = vpop.f32.mrf.mxu1  ;;  %v749_v14 = vpop.f32.mrf.mxu0 }
 0x124   : > { %v5232_v22 = vadd.f32 %v665_v9, %v474_v60  ;;  %v750_v63 = vadd.f32 %v749_v14, %v568_v51 }
 0x125   : > { %v670_v23 = vpop.f32.mrf.mxu1  ;;  %v755_v26 = vpop.f32.mrf.mxu0 }
 0x126   : > { %v5234_v27 = vadd.f32 %v670_v23, %v483_v11  ;;  %v756_v36 = vadd.f32 %v755_v26, %v5177_v29 }
 0x127   : > { %v672_v42 = vpop.f32.mrf.mxu1  ;;  %v757_v46 = vpop.f32.mrf.mxu0 }
 0x128   : > { %v5239_v54 = vadd.f32 %v672_v42, %v485_v32  ;;  %v758_v56 = vadd.f32 %v757_v46, %v5179_v37 }
 0x129   : > { %v763_v16 = vpop.f32.mrf.mxu0  ;;  %v943_v62 = vpop.f32.mrf.mxu1 }
 0x12a   : > { %v764_v7 = vadd.f32 %v763_v16, %v5181_v40  ;;  %v5243_v10 = vadd.f32 %v943_v62, %v748_v1 }
 0x12b   : > { %v765_v13 = vpop.f32.mrf.mxu0  ;;  %v945_v15 = vpop.f32.mrf.mxu1 }
 0x12c   : > { %v766_v29 = vadd.f32 %v765_v13, %v5183_v55  ;;  %v5246_v25 = vadd.f32 %v945_v15, %v750_v63 }
 0x12d   : > { %v771_v28 = vpop.f32.mrf.mxu0  ;;  %v952_v34 = vpop.f32.mrf.mxu1 }
 0x12e   : > { %v772_v8 = vadd.f32 %v771_v28, %v5185_v61  ;;  %v5249_v20 = vadd.f32 %v952_v34, %v756_v36 }
 0x12f   : > { %v773_v37 = vpop.f32.mrf.mxu0  ;;  %v954_v38 = vpop.f32.mrf.mxu1 }
 0x130   : > { %v774_v49 = vadd.f32 %v773_v37, %v5187_v5  ;;  %v5252_v50 = vadd.f32 %v954_v38, %v758_v56 }
 0x131   : > { %v779_v40 = vpop.f32.mrf.mxu0  ;;  %v961_v60 = vpop.f32.mrf.mxu1 }
 0x132   : > { %v780_v0 = vadd.f32 %v779_v40, %v5189_v21  ;;  %v5255_v11 = vadd.f32 %v961_v60, %v764_v7 }
 0x133   : > { %v781_v55 = vpop.f32.mrf.mxu0  ;;  %v963_v19 = vpop.f32.mrf.mxu1 }
 0x134   : > { %v782_v32 = vadd.f32 %v781_v55, %v5191_v33  ;;  %v5258_v41 = vadd.f32 %v963_v19, %v766_v29 }
 0x135   : > { %v787_v61 = vpop.f32.mrf.mxu0  ;;  %v970_v47 = vpop.f32.mrf.mxu1 }
 0x136   : > { %v788_v48 = vadd.f32 %v787_v61, %v5193_v44  ;;  %v5261_v1 = vadd.f32 %v970_v47, %v772_v8 }
 0x137   : > { %v789_v5 = vpop.f32.mrf.mxu0  ;;  %v972_v9 = vpop.f32.mrf.mxu1 }
 0x138   : > { %v790_v14 = vadd.f32 %v789_v5, %v5195_v53  ;;  %v5264_v23 = vadd.f32 %v972_v9, %v774_v49 }
 0x139   : > { %v795_v21 = vpop.f32.mrf.mxu0  ;;  %v979_v26 = vpop.f32.mrf.mxu1 }
 0x13a   : > { %v796_v36 = vadd.f32 %v795_v21, %v5197_v3  ;;  %v5267_v42 = vadd.f32 %v979_v26, %v780_v0 }
 0x13b   : > { %v797_v33 = vpop.f32.mrf.mxu0  ;;  %v981_v46 = vpop.f32.mrf.mxu1 }
 0x13c   : > { %v798_v51 = vadd.f32 %v797_v33, %v5199_v18  ;;  %v5270_v56 = vadd.f32 %v981_v46, %v782_v32 }
 0x13d   : > { %v803_v44 = vpop.f32.mrf.mxu0  ;;  %v988_v16 = vpop.f32.mrf.mxu1 }
 0x13e   : > { %v804_v62 = vadd.f32 %v803_v44, %v5201_v24  ;;  %v5273_v63 = vadd.f32 %v988_v16, %v788_v48 }
 0x13f   : > { %v805_v53 = vpop.f32.mrf.mxu0  ;;  %v990_v7 = vpop.f32.mrf.mxu1 }
 0x140   : > { %v806_v13 = vadd.f32 %v805_v53, %v5203_v35  ;;  %v5276_v15 = vadd.f32 %v990_v7, %v790_v14 }
 0x141   : > { %v811_v3 = vpop.f32.mrf.mxu0  ;;  %v997_v29 = vpop.f32.mrf.mxu1 }
 0x142   : > { %v812_v28 = vadd.f32 %v811_v3, %v5205_v45  ;;  %v5279_v34 = vadd.f32 %v997_v29, %v796_v36 }
 0x143   : > { %v813_v18 = vpop.f32.mrf.mxu0  ;;  %v999_v8 = vpop.f32.mrf.mxu1 }
 0x144   : > { %v814_v37 = vadd.f32 %v813_v18, %v5207_v52  ;;  %v5282_v38 = vadd.f32 %v999_v8, %v798_v51 }
 0x145   : > { %v819_v24 = vpop.f32.mrf.mxu0  ;;  %v1006_v49 = vpop.f32.mrf.mxu1 }
 0x146   : > { %v820_v40 = vadd.f32 %v819_v24, %v5209_v59  ;;  %v5285_v60 = vadd.f32 %v1006_v49, %v804_v62 }
 0x147   : > { %v821_v35 = vpop.f32.mrf.mxu0  ;;  %v1008_v0 = vpop.f32.mrf.mxu1 }
 0x148   : > { %v822_v55 = vadd.f32 %v821_v35, %v5211_v6  ;;  %v5288_v19 = vadd.f32 %v1008_v0, %v806_v13 }
 0x149   : > { %v827_v45 = vpop.f32.mrf.mxu0  ;;  %v1015_v32 = vpop.f32.mrf.mxu1 }
 0x14a   : > { %v828_v61 = vadd.f32 %v827_v45, %v5213_v12  ;;  %v5291_v47 = vadd.f32 %v1015_v32, %v812_v28 }
 0x14b   : > { %v829_v52 = vpop.f32.mrf.mxu0  ;;  %v1017_v48 = vpop.f32.mrf.mxu1 }
 0x14c   : > { %v830_v5 = vadd.f32 %v829_v52, %v5215_v17  ;;  %v5294_v9 = vadd.f32 %v1017_v48, %v814_v37 }
 0x14d   : > { %v835_v59 = vpop.f32.mrf.mxu0  ;;  %v1024_v14 = vpop.f32.mrf.mxu1 }
 0x14e   : > { %v836_v21 = vadd.f32 %v835_v59, %v5217_v30  ;;  %v5297_v26 = vadd.f32 %v1024_v14, %v820_v40 }
 0x14f   : > { %v837_v6 = vpop.f32.mrf.mxu0  ;;  %v1026_v36 = vpop.f32.mrf.mxu1 }
 0x150   : > { %v838_v33 = vadd.f32 %v837_v6, %v5219_v39  ;;  %v5300_v46 = vadd.f32 %v1026_v36, %v822_v55 }
 0x151   : > { %v843_v12 = vpop.f32.mrf.mxu0  ;;  %v1033_v51 = vpop.f32.mrf.mxu1 }
 0x152   : > { %v844_v44 = vadd.f32 %v843_v12, %v5221_v57  ;;  %v5303_v16 = vadd.f32 %v1033_v51, %v828_v61 }
 0x153   : > { %v845_v17 = vpop.f32.mrf.mxu0  ;;  %v1035_v62 = vpop.f32.mrf.mxu1 }
 0x154   : > { %v846_v53 = vadd.f32 %v845_v17, %v5223_v4  ;;  %v5306_v7 = vadd.f32 %v1035_v62, %v830_v5 }
 0x155   : > { %v851_v30 = vpop.f32.mrf.mxu0  ;;  %v1042_v13 = vpop.f32.mrf.mxu1 }
 0x156   : > { %v852_v3 = vadd.f32 %v851_v30, %v5225_v31  ;;  %v5309_v29 = vadd.f32 %v1042_v13, %v836_v21 }
 0x157   : > { %v853_v39 = vpop.f32.mrf.mxu0  ;;  %v1044_v28 = vpop.f32.mrf.mxu1 }
 0x158   : > { %v854_v18 = vadd.f32 %v853_v39, %v5227_v43  ;;  %v5312_v8 = vadd.f32 %v1044_v28, %v838_v33 }
 0x159   : > { %v859_v57 = vpop.f32.mrf.mxu0  ;;  %v1051_v37 = vpop.f32.mrf.mxu1 }
 0x15a   : > { %v860_v24 = vadd.f32 %v859_v57, %v5229_v58  ;;  %v5315_v49 = vadd.f32 %v1051_v37, %v844_v44 }
 0x15b   : > { %v861_v4 = vpop.f32.mrf.mxu0  ;;  %v1053_v40 = vpop.f32.mrf.mxu1 }
 0x15c   : > { %v862_v35 = vadd.f32 %v861_v4, %v5232_v22  ;;  %v5318_v0 = vadd.f32 %v1053_v40, %v846_v53 }
 0x15d   : > { %v5320_v31 = vpop.f32.mrf.mxu0  ;;  %v1060_v55 = vpop.f32.mrf.mxu1 }
 0x15e   : > { %v5322_v45 = vadd.f32 %v1060_v55, %v852_v3 }
 0x15f   : > { %v5324_v43 = vpop.f32.mrf.mxu0  ;;  %v1062_v32 = vpop.f32.mrf.mxu1 }
 0x160   : > { %v5326_v61 = vadd.f32 %v1062_v32, %v854_v18 }
 0x161   : > { %v1069_v52 = vpop.f32.mrf.mxu1  ;;  %v1156_v58 = vpop.f32.mrf.mxu0 }
 0x162   : > { %v5328_v48 = vadd.f32 %v1069_v52, %v860_v24  ;;  %v1157_v5 = vadd.f32 %v1156_v58, %v5243_v10 }
 0x163   : > { %v1071_v59 = vpop.f32.mrf.mxu1  ;;  %v1158_v22 = vpop.f32.mrf.mxu0 }
 0x164   : > { %v5331_v14 = vadd.f32 %v1071_v59, %v862_v35  ;;  %v1159_v21 = vadd.f32 %v1158_v22, %v5246_v25 }
 0x165   : > { %v5334_v6 = vpop.f32.mrf.mxu1  ;;  %v1163_v36 = vpop.f32.mrf.mxu0 }
 0x166   : > { %v1164_v33 = vadd.f32 %v1163_v36, %v5249_v20 }
 0x167   : > { %v5337_v12 = vpop.f32.mrf.mxu1  ;;  %v1165_v51 = vpop.f32.mrf.mxu0 }
 0x168   : > { %v1166_v44 = vadd.f32 %v1165_v51, %v5252_v50 }
 0x169   : > { %v1170_v17 = vpop.f32.mrf.mxu0  ;;  %v1335_v62 = vpop.f32.mrf.mxu1 }
 0x16a   : > { %v1171_v10 = vadd.f32 %v1170_v17, %v5255_v11  ;;  %v1336_v53 = vadd.f32 %v1335_v62, %v1157_v5 }
 0x16b   : > { %v1172_v30 = vpop.f32.mrf.mxu0  ;;  %v1337_v13 = vpop.f32.mrf.mxu1 }
 0x16c   : > { %v1173_v3 = vadd.f32 %v1172_v30, %v5258_v41  ;;  %v1338_v25 = vadd.f32 %v1337_v13, %v1159_v21  ;;  %4552 = vtanh.f32 %v1336_v53 }
 0x16d   : > { %v1177_v39 = vpop.f32.mrf.mxu0  ;;  %v1342_v28 = vpop.f32.mrf.mxu1 }
 0x16e   : > { %v1178_v18 = vadd.f32 %v1177_v39, %v5261_v1  ;;  %v1343_v20 = vadd.f32 %v1342_v28, %v1164_v33  ;;  %4554 = vtanh.f32 %v1338_v25 }
 0x16f   : > { %v1179_v57 = vpop.f32.mrf.mxu0  ;;  %v1344_v37 = vpop.f32.mrf.mxu1 }
 0x170   : > { %v1180_v24 = vadd.f32 %v1179_v57, %v5264_v23  ;;  %v1345_v50 = vadd.f32 %v1344_v37, %v1166_v44  ;;  %4556 = vtanh.f32 %v1343_v20 }
 0x171   : > { %v1184_v4 = vpop.f32.mrf.mxu0  ;;  %v1349_v40 = vpop.f32.mrf.mxu1 }
 0x172   : > { %v1185_v11 = vadd.f32 %v1184_v4, %v5267_v42  ;;  %v1350_v35 = vadd.f32 %v1349_v40, %v1171_v10  ;;  %4558 = vtanh.f32 %v1345_v50 }
 0x173   : > { %v1186_v55 = vpop.f32.mrf.mxu0  ;;  %v1351_v32 = vpop.f32.mrf.mxu1 }
 0x174   : > { %v1187_v41 = vadd.f32 %v1186_v55, %v5270_v56  ;;  %v1352_v52 = vadd.f32 %v1351_v32, %v1173_v3  ;;  %4560 = vtanh.f32 %v1350_v35 }
 0x175   : > { %v1191_v58 = vpop.f32.mrf.mxu0  ;;  %v1356_v5 = vpop.f32.mrf.mxu1 }
 0x176   : > { %v1357_v59 = vadd.f32 %v1356_v5, %v1178_v18  ;;  %4562 = vtanh.f32 %v1352_v52 }
 0x177   : > { %v1193_v1 = vpop.f32.mrf.mxu0  ;;  %v1358_v22 = vpop.f32.mrf.mxu1 }
 0x178   : > { %v1359_v21 = vadd.f32 %v1358_v22, %v1180_v24  ;;  %v1194_v5 = vadd.f32 %v1193_v1, %v5276_v15  ;;  %4564 = vtanh.f32 %v1357_v59 }
 0x179   : > { %v1198_v36 = vpop.f32.mrf.mxu0  ;;  %v1363_v33 = vpop.f32.mrf.mxu1 }
 0x17a   : > { %v1364_v23 = vadd.f32 %v1363_v33, %v1185_v11  ;;  %4566 = vtanh.f32 %v1359_v21 }
 0x17b   : > { %v1200_v51 = vpop.f32.mrf.mxu0  ;;  %v1365_v44 = vpop.f32.mrf.mxu1 }
 0x17c   : > { %v1366_v17 = vadd.f32 %v1365_v44, %v1187_v41  ;;  %v1192_v41 = vadd.f32 %v1191_v58, %v5273_v63  ;;  %v1199_v44 = vadd.f32 %v1198_v36, %v5279_v34  ;;  %v1201_v25 = vadd.f32 %v1200_v51, %v5282_v38  ;;  %v1765_v34 = vld [vmem:[%s7653_s2] sm:$0xff] }
 0x17d   : > { %v1205_v62 = vpop.f32.mrf.mxu0  ;;  %v1370_v42 = vpop.f32.mrf.mxu1  ;;  %4568 = vtanh.f32 %v1364_v23 }
 0x17e   : > { %v1371_v53 = vadd.f32 %v1370_v42, %v1192_v41  ;;  %v1206_v35 = vadd.f32 %v1205_v62, %v5285_v60  ;;  %4570 = vtanh.f32 %v1366_v17  ;;  %v5364_v17 = vand.u32 4294901760, %v1765_v34  ;;  %v5366_v62 = vpop.eup %4552 }
 0x17f   : > { %v1207_v10 = vpop.f32.mrf.mxu0  ;;  %v1372_v30 = vpop.f32.mrf.mxu1  ;;  %8016 = vst [vmem:[#allocation6_spill] sm:$0xff] %v5366_v62 }
 0x180   : > { %v1373_v20 = vadd.f32 %v1372_v30, %v1194_v5  ;;  %v1208_v15 = vadd.f32 %v1207_v10, %v5288_v19  ;;  %4572 = vtanh.f32 %v1371_v53  ;;  %8015 = vst [vmem:[#allocation5_spill] sm:$0xff] %v5364_v17 }
 0x181   : > { %v1212_v13 = vpop.f32.mrf.mxu0  ;;  %v1377_v39 = vpop.f32.mrf.mxu1 }
 0x182   : > { %v1378_v63 = vadd.f32 %v1377_v39, %v1199_v44  ;;  %v1213_v38 = vadd.f32 %v1212_v13, %v5291_v47  ;;  %4574 = vtanh.f32 %v1373_v20  ;;  %v5369_v13 = vpop.eup %4554 }
 0x183   : > { %v1214_v56 = vpop.f32.mrf.mxu0  ;;  %v1379_v3 = vpop.f32.mrf.mxu1  ;;  %8017 = vst [vmem:[#allocation7_spill] sm:$0xff] %v5369_v13 }
 0x184   : > { %v1380_v52 = vadd.f32 %v1379_v3, %v1201_v25  ;;  %v1215_v21 = vadd.f32 %v1214_v56, %v5294_v9  ;;  %4576 = vtanh.f32 %v1378_v63  ;;  %v5372_v56 = vpop.eup %4556 }
 0x185   : > { %v1219_v28 = vpop.f32.mrf.mxu0  ;;  %v1384_v57 = vpop.f32.mrf.mxu1  ;;  %8018 = vst [vmem:[#allocation8_spill] sm:$0xff] %v5372_v56 }
 0x186   : > { %v1385_v1 = vadd.f32 %v1384_v57, %v1206_v35  ;;  %v1220_v19 = vadd.f32 %v1219_v28, %v5297_v26  ;;  %4578 = vtanh.f32 %v1380_v52 }
 0x187   : > { %v1221_v18 = vpop.f32.mrf.mxu0  ;;  %v1386_v37 = vpop.f32.mrf.mxu1 }
 0x188   : > { %v1387_v36 = vadd.f32 %v1386_v37, %v1208_v15  ;;  %v1222_v42 = vadd.f32 %v1221_v18, %v5300_v46  ;;  %4580 = vtanh.f32 %v1385_v1  ;;  %v5375_v37 = vpop.eup %4558 }
 0x189   : > { %v5346_v4 = vpop.f32.mrf.mxu0  ;;  %v1391_v24 = vpop.f32.mrf.mxu1  ;;  %8019 = vst [vmem:[#allocation9_spill] sm:$0xff] %v5375_v37 }
 0x18a   : > { %v1392_v51 = vadd.f32 %v1391_v24, %v1213_v38  ;;  %4582 = vtanh.f32 %v1387_v36  ;;  %v5379_v24 = vsub.f32 %v1765_v34, %v5364_v17 }
 0x18b   : > { %v1228_v40 = vpop.f32.mrf.mxu0  ;;  %v1393_v11 = vpop.f32.mrf.mxu1 }
 0x18c   : > { %v1394_v10 = vadd.f32 %v1393_v11, %v1215_v21  ;;  %v1229_v9 = vadd.f32 %v1228_v40, %v5306_v7  ;;  %4584 = vtanh.f32 %v1392_v51  ;;  %8020 = vst [vmem:[#allocation10_spill] sm:$0xff] %v5379_v24  ;;  %v5381_v11 = vpop.eup %4560 }
 0x18d   : > { %v5348_v55 = vpop.f32.mrf.mxu0  ;;  %v1398_v32 = vpop.f32.mrf.mxu1  ;;  %8021 = vst [vmem:[#allocation11_spill] sm:$0xff] %v5381_v11 }
 0x18e   : > { %v1399_v39 = vadd.f32 %v1398_v32, %v1220_v19  ;;  %4586 = vtanh.f32 %v1394_v10  ;;  %v5383_v41 = vpop.eup %4562 }
 0x18f   : > { %v1235_v22 = vpop.f32.mrf.mxu0  ;;  %v1400_v33 = vpop.f32.mrf.mxu1  ;;  %8022 = vst [vmem:[#allocation12_spill] sm:$0xff] %v5383_v41 }
 0x190   : > { %v1236_v26 = vadd.f32 %v1235_v22, %v5312_v8  ;;  %v1401_v3 = vadd.f32 %v1400_v33, %v1222_v42  ;;  %4588 = vtanh.f32 %v1399_v39  ;;  %v5386_v22 = vpop.eup %4564  ;;  %v870_v33 = vadd.f32 %v5324_v43, %v5239_v54 }
 0x191   : > { %v1240_v50 = vpop.f32.mrf.mxu0  ;;  %v5354_v2 = vpop.f32.mrf.mxu1  ;;  %8023 = vst [vmem:[#allocation13_spill] sm:$0xff] %v5386_v22  ;;  %v1234_v54 = vadd.f32 %v5348_v55, %v5309_v29  ;;  %v1227_v29 = vadd.f32 %v5346_v4, %v5303_v16  ;;  %v5454_v39 = vmul.f32 %v5381_v11, %v5381_v11 }
 0x192   : > { %4590 = vtanh.f32 %v1401_v3  ;;  %v1241_v44 = vadd.f32 %v1240_v50, %v5315_v49  ;;  %v5393_v25 = vpop.eup %4566 }
 0x193   : > { %v1242_v58 = vpop.f32.mrf.mxu0  ;;  %v1407_v59 = vpop.f32.mrf.mxu1  ;;  %8024 = vst [vmem:[#allocation14_spill] sm:$0xff] %v5393_v25  ;;  %v1406_v19 = vadd.f32 %v5354_v2, %v1227_v29  ;;  %v5442_v2 = vmul.f32 %v5375_v37, %v5375_v37  ;;  %8041 = vst [vmem:[#allocation31_spill] sm:$0xff] %v5454_v39 }
 0x194   : > { %v1243_v46 = vadd.f32 %v1242_v58, %v5318_v0  ;;  %v1408_v18 = vadd.f32 %v1407_v59, %v1229_v9  ;;  %v868_v0 = vadd.f32 %v5320_v31, %v5234_v27  ;;  %v5397_v63 = vpop.eup %4568  ;;  %v5401_v27 = vmul.f32 %v5366_v62, %v5366_v62 }
 0x195   : > { %v1247_v60 = vpop.f32.mrf.mxu0  ;;  %v1412_v23 = vpop.f32.mrf.mxu1  ;;  %8025 = vst [vmem:[#allocation15_spill] sm:$0xff] %v5397_v63  ;;  %v5416_v59 = vmul.f32 %v5372_v56, %v5372_v56  ;;  %8037 = vst [vmem:[#allocation27_spill] sm:$0xff] %v5442_v2 }
 0x196   : > { %v1248_v8 = vadd.f32 %v1247_v60, %v5322_v45  ;;  %4592 = vtanh.f32 %v1408_v18  ;;  %v7657_v45 = vand.u32 4294901760, %v5379_v24  ;;  %8026 = vst [vmem:[#allocation16_spill] sm:$0xff] %v5401_v27  ;;  %v5405_v50 = vpop.eup %4570  ;;  %v1413_v55 = vadd.f32 %v1412_v23, %v1234_v54 }
 0x197   : > { %v1249_v47 = vpop.f32.mrf.mxu0  ;;  %v1414_v30 = vpop.f32.mrf.mxu1  ;;  %8027 = vst [vmem:[#allocation17_spill] sm:$0xff] %v5405_v50  ;;  %8030 = vst [vmem:[#allocation20_spill] sm:$0xff] %v5416_v59  ;;  %v1079_v1 = vadd.f32 %v5334_v6, %v868_v0  ;;  %v1081_v60 = vadd.f32 %v5337_v12, %v870_v33  ;;  %v5436_v42 = vsub.f32 1.0, %v5401_v27  ;;  %v5468_v18 = vmul.f32 %v5393_v25, %v5393_v25 }
 0x198   : > { %v1415_v7 = vadd.f32 %v1414_v30, %v1236_v26  ;;  %v1250_v20 = vadd.f32 %v1249_v47, %v5326_v61  ;;  %v5409_v61 = vmul.f32 %v5369_v13, %v5369_v13  ;;  %v5412_v58 = vpop.eup %4572  ;;  %v5431_v4 = vsub.f32 %v5379_v24, %v7657_v45 }
 0x199   : > { %v1254_v28 = vpop.f32.mrf.mxu0  ;;  %v1419_v57 = vpop.f32.mrf.mxu1  ;;  %8029 = vst [vmem:[#allocation19_spill] sm:$0xff] %v5412_v58  ;;  %8035 = vst [vmem:[#allocation25_spill] sm:$0xff] %v5436_v42  ;;  %v5445_v47 = vsub.f32 1.0, %v5416_v59  ;;  %v5484_v33 = vmul.f32 %v5412_v58, %v5412_v58 }
 0x19a   : > { %4594 = vtanh.f32 %v1415_v7  ;;  %v1420_v49 = vadd.f32 %v1419_v57, %v1241_v44  ;;  %8028 = vst [vmem:[#allocation18_spill] sm:$0xff] %v5409_v61  ;;  %v1255_v15 = vadd.f32 %v1254_v28, %v5328_v48  ;;  %v5420_v38 = vpop.eup %4574  ;;  %8033 = vst [vmem:[#allocation23_spill] sm:$0xff] %v5431_v4  ;;  %v5448_v30 = vsub.f32 1.0, %v5409_v61 }
 0x19b   : > { %v1256_v40 = vpop.f32.mrf.mxu0  ;;  %v1421_v32 = vpop.f32.mrf.mxu1  ;;  %8031 = vst [vmem:[#allocation21_spill] sm:$0xff] %v5420_v38  ;;  %8038 = vst [vmem:[#allocation28_spill] sm:$0xff] %v5445_v47  ;;  %v5460_v57 = vmul.f32 %v5383_v41, %v5383_v41  ;;  %v5488_v44 = vmul.f32 %v5420_v38, %v5420_v38 }
 0x19c   : > { %v1422_v5 = vadd.f32 %v1421_v32, %v1243_v46  ;;  %v1257_v48 = vadd.f32 %v1256_v40, %v5331_v14  ;;  %v5424_v36 = vpop.eup %4576  ;;  %8039 = vst [vmem:[#allocation29_spill] sm:$0xff] %v5448_v30  ;;  %v5464_v46 = vmul.f32 %v5386_v22, %v5386_v22  ;;  %8045 = vst [vmem:[#allocation35_spill] sm:$0xff] %v5468_v18 }
 0x19d   : > { %v1426_v53 = vpop.f32.mrf.mxu1  ;;  %v1261_v31 = vpop.f32.mrf.mxu0  ;;  %8032 = vst [vmem:[#allocation22_spill] sm:$0xff] %v5424_v36  ;;  %8043 = vst [vmem:[#allocation33_spill] sm:$0xff] %v5460_v57  ;;  %v5474_v32 = vmul.f32 %v5397_v63, %v5397_v63  ;;  %v5519_v29 = vsub.f32 1.0, %v5460_v57 }
 0x19e   : > { %v1427_v35 = vadd.f32 %v1426_v53, %v1248_v8  ;;  %4596 = vtanh.f32 %v1422_v5  ;;  %v5433_v23 = vpop.eup %4578  ;;  %v1262_v6 = vadd.f32 %v1261_v31, %v1079_v1  ;;  %8044 = vst [vmem:[#allocation34_spill] sm:$0xff] %v5464_v46  ;;  %v5478_v8 = vmul.f32 %v5405_v50, %v5405_v50  ;;  %8050 = vst [vmem:[#allocation40_spill] sm:$0xff] %v5484_v33 }
 0x19f   : > { %v1428_v43 = vpop.f32.mrf.mxu1  ;;  %v1263_v51 = vpop.f32.mrf.mxu0  ;;  %8034 = vst [vmem:[#allocation24_spill] sm:$0xff] %v5433_v23  ;;  %8047 = vst [vmem:[#allocation37_spill] sm:$0xff] %v5474_v32  ;;  %v5492_v53 = vmul.f32 %v5424_v36, %v5424_v36  ;;  %v5501_v54 = vmul.f32 %v5433_v23, %v5433_v23  ;;  %v5508_v31 = vsub.f32 1.0, %v5454_v39  ;;  %v5580_v37 = vand.u32 4294901760, %v5519_v29 }
 0x1a0   : > { %v1429_v52 = vadd.f32 %v1428_v43, %v1250_v20  ;;  %4598 = vtanh.f32 %v1427_v35  ;;  %v5438_v10 = vpop.eup %4580  ;;  %v1264_v26 = vadd.f32 %v1263_v51, %v1081_v60  ;;  %8048 = vst [vmem:[#allocation38_spill] sm:$0xff] %v5478_v8  ;;  %8051 = vst [vmem:[#allocation41_spill] sm:$0xff] %v5488_v44  ;;  %v5495_v20 = vsub.f32 1.0, %v5442_v2 }
 0x1a1   : > { %v1433_v34 = vpop.f32.mrf.mxu1  ;;  %8036 = vst [vmem:[#allocation26_spill] sm:$0xff] %v5438_v10  ;;  %v5450_v9 = vpop.eup %4582  ;;  %8052 = vst [vmem:[#allocation42_spill] sm:$0xff] %v5492_v53  ;;  %v5537_v60 = vand.u32 4294901760, %v5448_v30  ;;  %v5542_v51 = vsub.f32 1.0, %v5492_v53 }
 0x1a2   : > { %4600 = vtanh.f32 %v1429_v52  ;;  %v1434_v21 = vadd.f32 %v1433_v34, %v1255_v15  ;;  %8040 = vst [vmem:[#allocation30_spill] sm:$0xff] %v5450_v9  ;;  %v5456_v28 = vpop.eup %4584  ;;  %8053 = vst [vmem:[#allocation43_spill] sm:$0xff] %v5495_v20  ;;  %v5513_v15 = vsub.f32 1.0, %v5468_v18  ;;  %v5516_v52 = vsub.f32 1.0, %v5464_v46 }
 0x1a3   : > { %4602 = vtanh.f32 %v1420_v49  ;;  %v1435_v16 = vpop.f32.mrf.mxu1  ;;  %8042 = vst [vmem:[#allocation32_spill] sm:$0xff] %v5456_v28  ;;  %v5470_v40 = vpop.eup %4586  ;;  %8055 = vst [vmem:[#allocation45_spill] sm:$0xff] %v5501_v54  ;;  %v5505_v49 = vmul.f32 %v5438_v10, %v5438_v10  ;;  %v5528_v1 = vmul.f32 %v5450_v9, %v5450_v9  ;;  %v5571_v62 = vmul.f32 %v5456_v28, %v5456_v28 }
 0x1a4   : > { %4604 = vtanh.f32 %v1434_v21  ;;  %v1436_v14 = vadd.f32 %v1435_v16, %v1257_v48  ;;  %8046 = vst [vmem:[#allocation36_spill] sm:$0xff] %v5470_v40  ;;  %v5480_v0 = vpop.eup %4588  ;;  %8057 = vst [vmem:[#allocation47_spill] sm:$0xff] %v5508_v31  ;;  %v5531_v48 = vsub.f32 1.0, %v5478_v8  ;;  %v5534_v21 = vsub.f32 1.0, %v5474_v32 }
 0x1a5   : > { %4606 = vtanh.f32 %v1413_v55  ;;  %v1440_v12 = vpop.f32.mrf.mxu1  ;;  %8049 = vst [vmem:[#allocation39_spill] sm:$0xff] %v5480_v0  ;;  %v5497_v35 = vpop.eup %4590  ;;  %8056 = vst [vmem:[#allocation46_spill] sm:$0xff] %v5505_v49  ;;  %v5522_v55 = vand.u32 4294901760, %v5436_v42  ;;  %v5545_v16 = vsub.f32 1.0, %v5488_v44  ;;  %v5574_v13 = vand.u32 4294901760, %v5513_v15 }
 0x1a6   : > { %4608 = vtanh.f32 %v1436_v14  ;;  %v1441_v3 = vadd.f32 %v1440_v12, %v1262_v6  ;;  %8054 = vst [vmem:[#allocation44_spill] sm:$0xff] %v5497_v35  ;;  %v5510_v43 = vpop.eup %4592  ;;  %8059 = vst [vmem:[#allocation49_spill] sm:$0xff] %v5513_v15  ;;  %v5548_v6 = vsub.f32 1.0, %v5484_v33  ;;  %v5551_v14 = vand.u32 4294901760, %v5445_v47 }
 0x1a7   : > { %4610 = vtanh.f32 %v1406_v19  ;;  %v1442_v7 = vpop.f32.mrf.mxu1  ;;  %8058 = vst [vmem:[#allocation48_spill] sm:$0xff] %v5510_v43  ;;  %8060 = vst [vmem:[#allocation50_spill] sm:$0xff] %v5516_v52  ;;  %v5524_v34 = vpop.eup %4594  ;;  %v5577_v56 = vand.u32 4294901760, %v5516_v52  ;;  %v5589_v22 = vsub.f32 1.0, %v5528_v1  ;;  %v5592_v25 = vand.u32 4294901760, %v5531_v48 }
 0x1a8   : > { %4612 = vtanh.f32 %v1441_v3  ;;  %v1443_v5 = vadd.f32 %v1442_v7, %v1264_v26  ;;  %8061 = vst [vmem:[#allocation51_spill] sm:$0xff] %v5519_v29  ;;  %8062 = vst [vmem:[#allocation52_spill] sm:$0xff] %v5522_v55  ;;  %v5556_v26 = vsub.f32 1.0, %v5505_v49  ;;  %v5559_v3 = vsub.f32 1.0, %v5501_v54 }
 0x1a9   : > { %8063 = vst [vmem:[#allocation53_spill] sm:$0xff] %v5524_v34  ;;  %8064 = vst [vmem:[#allocation54_spill] sm:$0xff] %v5528_v1  ;;  %v5562_v7 = vand.u32 4294901760, %v5508_v31  ;;  %v5595_v63 = vand.u32 4294901760, %v5534_v21  ;;  %v5604_v38 = vand.u32 4294901760, %v5542_v51  ;;  %v5607_v36 = vand.u32 4294901760, %v5545_v16 }
 0x1aa   : > { %4614 = vtanh.f32 %v1443_v5  ;;  %8065 = vst [vmem:[#allocation55_spill] sm:$0xff] %v5531_v48  ;;  %8066 = vst [vmem:[#allocation56_spill] sm:$0xff] %v5534_v21  ;;  %v5565_v5 = vand.u32 4294901760, %v5495_v20  ;;  %v5610_v23 = vand.u32 4294901760, %v5548_v6  ;;  %v5632_v39 = vmul.f32 %v5470_v40, %v5470_v40 }
 0x1ab   : > { %8067 = vst [vmem:[#allocation57_spill] sm:$0xff] %v5537_v60  ;;  %v5539_v19 = vpop.eup %4596  ;;  %8069 = vst [vmem:[#allocation59_spill] sm:$0xff] %v5542_v51  ;;  %v5643_v57 = vsub.f32 1.0, %v5571_v62  ;;  %v5664_v32 = vmul.f32 %v5480_v0, %v5480_v0  ;;  %v5668_v44 = vmul.f32 %v5510_v43, %v5510_v43  ;;  %v5679_v53 = vmul.f32 %v5497_v35, %v5497_v35 }
 0x1ac   : > { %8068 = vst [vmem:[#allocation58_spill] sm:$0xff] %v5539_v19  ;;  %8070 = vst [vmem:[#allocation60_spill] sm:$0xff] %v5545_v16  ;;  %v5616_v9 = vmul.f32 %v5539_v19, %v5539_v19  ;;  %v5636_v19 = vmul.f32 %v5524_v34, %v5524_v34  ;;  %v5658_v34 = vand.u32 4294901760, %v5589_v22 }
 0x1ad   : > { %8071 = vst [vmem:[#allocation61_spill] sm:$0xff] %v5548_v6  ;;  %v5553_v12 = vpop.eup %4598  ;;  %8073 = vst [vmem:[#allocation63_spill] sm:$0xff] %v5556_v26 }
 0x1ae   : > { %8072 = vst [vmem:[#allocation62_spill] sm:$0xff] %v5553_v12  ;;  %8074 = vst [vmem:[#allocation64_spill] sm:$0xff] %v5559_v3  ;;  %v5601_v58 = vmul.f32 %v5553_v12, %v5553_v12  ;;  %v5626_v12 = vand.u32 4294901760, %v5559_v3  ;;  %v5689_v43 = vsub.f32 1.0, %v5616_v9 }
 0x1af   : > { %8075 = vst [vmem:[#allocation65_spill] sm:$0xff] %v5562_v7  ;;  %8076 = vst [vmem:[#allocation66_spill] sm:$0xff] %v5565_v5  ;;  %v5567_v45 = vpop.eup %4600 }
 0x1b0   : > { %8077 = vst [vmem:[#allocation67_spill] sm:$0xff] %v5567_v45  ;;  %8078 = vst [vmem:[#allocation68_spill] sm:$0xff] %v5571_v62  ;;  %v5582_v11 = vpop.eup %4602  ;;  %v5586_v41 = vmul.f32 %v5567_v45, %v5567_v45  ;;  %v5623_v45 = vand.u32 4294901760, %v5556_v26  ;;  %v5675_v33 = vsub.f32 1.0, %v5601_v58  ;;  %v5738_v24 = vand.u32 4294901760, %v5689_v43 }
 0x1b1   : > { %8079 = vst [vmem:[#allocation69_spill] sm:$0xff] %v5574_v13  ;;  %8080 = vst [vmem:[#allocation70_spill] sm:$0xff] %v5580_v37  ;;  %v5597_v50 = vpop.eup %4604 }
 0x1b2   : > { %8081 = vst [vmem:[#allocation71_spill] sm:$0xff] %v5582_v11  ;;  %8082 = vst [vmem:[#allocation72_spill] sm:$0xff] %v5586_v41  ;;  %v5612_v10 = vpop.eup %4606  ;;  %v5620_v28 = vmul.f32 %v5597_v50, %v5597_v50  ;;  %v5655_v8 = vsub.f32 1.0, %v5586_v41  ;;  %v5720_v27 = vand.u32 4294901760, %v5675_v33  ;;  %v5793_v42 = vsub.f32 %v5689_v43, %v5738_v24 }
 0x1b3   : > { %8083 = vst [vmem:[#allocation73_spill] sm:$0xff] %v5589_v22  ;;  %8084 = vst [vmem:[#allocation74_spill] sm:$0xff] %v5592_v25  ;;  %v5628_v2 = vpop.eup %4608 }
 0x1b4   : > { %8085 = vst [vmem:[#allocation75_spill] sm:$0xff] %v5595_v63  ;;  %8086 = vst [vmem:[#allocation76_spill] sm:$0xff] %v5597_v50  ;;  %v5640_v50 = vmul.f32 %v5582_v11, %v5582_v11  ;;  %v5645_v46 = vpop.eup %4610  ;;  %v5649_v18 = vmul.f32 %v5628_v2, %v5628_v2  ;;  %v5652_v40 = vsub.f32 1.0, %v5620_v28  ;;  %v5782_v17 = vsub.f32 %v5675_v33, %v5720_v27 }
 0x1b5   : > { %8087 = vst [vmem:[#allocation77_spill] sm:$0xff] %v5601_v58  ;;  %8088 = vst [vmem:[#allocation78_spill] sm:$0xff] %v5604_v38  ;;  %v5660_v11 = vpop.eup %4612 }
 0x1b6   : > { %8089 = vst [vmem:[#allocation79_spill] sm:$0xff] %v5607_v36  ;;  %8090 = vst [vmem:[#allocation80_spill] sm:$0xff] %v5610_v23  ;;  %v5683_v54 = vmul.f32 %v5660_v11, %v5660_v11  ;;  %v5686_v0 = vsub.f32 1.0, %v5649_v18  ;;  %v5698_v49 = vand.u32 4294901760, %v5652_v40  ;;  %v5701_v35 = vsub.f32 1.0, %v5640_v50 }
 0x1b7   : > { %8091 = vst [vmem:[#allocation81_spill] sm:$0xff] %v5612_v10  ;;  %8092 = vst [vmem:[#allocation82_spill] sm:$0xff] %v5616_v9  ;;  %v5691_v1 = vpop.eup %4614 }
 0x1b8   : > { %8093 = vst [vmem:[#allocation83_spill] sm:$0xff] %v5620_v28  ;;  %8094 = vst [vmem:[#allocation84_spill] sm:$0xff] %v5623_v45  ;;  %v5708_v62 = vmul.f32 %v5691_v1, %v5691_v1  ;;  %v5711_v59 = vsub.f32 1.0, %v5683_v54  ;;  %v5714_v61 = vand.u32 4294901760, %v5686_v0  ;;  %v5755_v28 = vsub.f32 1.0, %v5679_v53 }
 0x1b9   : > { %8095 = vst [vmem:[#allocation85_spill] sm:$0xff] %v5626_v12  ;;  %8096 = vst [vmem:[#allocation86_spill] sm:$0xff] %v5628_v2  ;;  %v5672_v2 = vmul.f32 %v5612_v10, %v5612_v10  ;;  %v5695_v10 = vmul.f32 %v5645_v46, %v5645_v46 }
 0x1ba   : > { %8097 = vst [vmem:[#allocation87_spill] sm:$0xff] %v5632_v39  ;;  %8098 = vst [vmem:[#allocation88_spill] sm:$0xff] %v5636_v19  ;;  %v5735_v41 = vand.u32 4294901760, %v5711_v59  ;;  %v5742_v58 = vsub.f32 %v5686_v0, %v5714_v61 }
 0x1bb   : > { %8099 = vst [vmem:[#allocation89_spill] sm:$0xff] %v5640_v50  ;;  %8100 = vst [vmem:[#allocation90_spill] sm:$0xff] %v5643_v57  ;;  %v5723_v9 = vsub.f32 1.0, %v5672_v2  ;;  %v5732_v50 = vsub.f32 1.0, %v5708_v62 }
 0x1bc   : > { %8101 = vst [vmem:[#allocation91_spill] sm:$0xff] %v5645_v46  ;;  %8102 = vst [vmem:[#allocation92_spill] sm:$0xff] %v5649_v18  ;;  %v5717_v46 = vand.u32 4294901760, %v5655_v8 }
 0x1bd   : > { %8103 = vst [vmem:[#allocation93_spill] sm:$0xff] %v5652_v40  ;;  %8104 = vst [vmem:[#allocation94_spill] sm:$0xff] %v5655_v8  ;;  %v5758_v18 = vand.u32 4294901760, %v5732_v50 }
 0x1be   : > { %8105 = vst [vmem:[#allocation95_spill] sm:$0xff] %v5658_v34  ;;  %8106 = vst [vmem:[#allocation96_spill] sm:$0xff] %v5660_v11  ;;  %v5704_v11 = vsub.f32 1.0, %v5636_v19  ;;  %v5726_v19 = vsub.f32 1.0, %v5668_v44 }
 0x1bf   : > { %8107 = vst [vmem:[#allocation97_spill] sm:$0xff] %v5664_v32  ;;  %8108 = vst [vmem:[#allocation98_spill] sm:$0xff] %v5668_v44  ;;  %v5748_v44 = vsub.f32 1.0, %v5695_v10  ;;  %1767 = vmatprep.subr.mxu0 %v5758_v18 }
 0x1c0   : > { %8109 = vst [vmem:[#allocation99_spill] sm:$0xff] %v5672_v2  ;;  %8110 = vst [vmem:[#allocation100_spill] sm:$0xff] %v5675_v33  ;;  %v5745_v2 = vand.u32 4294901760, %v5701_v35  ;;  %1769 = vmatpush1.msra.mxu0 %v5735_v41 }
 0x1c1   : > { %8111 = vst [vmem:[#allocation101_spill] sm:$0xff] %v5679_v53  ;;  %8112 = vst [vmem:[#allocation102_spill] sm:$0xff] %v5683_v54  ;;  %v5761_v54 = vand.u32 4294901760, %v5704_v11  ;;  %v5775_v53 = vand.u32 4294901760, %v5726_v19  ;;  %1771 = vmatprep.subr.mxu0 %v5714_v61 }
 0x1c2   : > { %8113 = vst [vmem:[#allocation103_spill] sm:$0xff] %v5686_v0  ;;  %8114 = vst [vmem:[#allocation104_spill] sm:$0xff] %v5689_v43  ;;  %v5765_v0 = vsub.f32 %v5711_v59, %v5735_v41  ;;  %1773 = vmatpush1.msra.mxu0 %v5698_v49 }
 0x1c3   : > { %8115 = vst [vmem:[#allocation105_spill] sm:$0xff] %v5691_v1  ;;  %8116 = vst [vmem:[#allocation106_spill] sm:$0xff] %v5695_v10  ;;  %v5729_v1 = vsub.f32 1.0, %v5632_v39  ;;  %v5752_v39 = vsub.f32 %v5652_v40, %v5698_v49  ;;  %v5769_v10 = vsub.f32 %v5655_v8, %v5717_v46  ;;  %v5772_v40 = vand.u32 4294901760, %v5723_v9  ;;  %1775 = vmatprep.subr.mxu0 %v5717_v46 }
 0x1c4   : > { %8117 = vst [vmem:[#allocation107_spill] sm:$0xff] %v5698_v49  ;;  %8118 = vst [vmem:[#allocation108_spill] sm:$0xff] %v5701_v35  ;;  %v5810_v8 = vand.u32 4294901760, %v5755_v28  ;;  %v8139_v33 = vand.u32 4294901760, %v5765_v0  ;;  %v8141_v49 = vand.u32 4294901760, %v5742_v58  ;;  %1777 = vmatpush1.msra.mxu0 %v5720_v27 }
 0x1c5   : > { %8119 = vst [vmem:[#allocation109_spill] sm:$0xff] %v5704_v11  ;;  %8120 = vst [vmem:[#allocation110_spill] sm:$0xff] %v5708_v62  ;;  %v5778_v62 = vsub.f32 1.0, %v5664_v32  ;;  %v5797_v32 = vand.u32 4294901760, %v5748_v44  ;;  %v5801_v55 = vand.u32 4294901760, %v5729_v1  ;;  %v8142_v4 = vand.u32 4294901760, %v5752_v39  ;;  %1779 = vmatprep.subr.mxu0 %v5738_v24 }
 0x1c6   : > { %8121 = vst [vmem:[#allocation111_spill] sm:$0xff] %v5711_v59  ;;  %8122 = vst [vmem:[#allocation112_spill] sm:$0xff] %v5714_v61  ;;  %v5787_v59 = vsub.f32 %v5732_v50, %v5758_v18  ;;  %v5827_v61 = vsub.f32 %v5723_v9, %v5772_v40  ;;  %v1889_v30 = vsub.f32 %v5742_v58, %v8141_v49  ;;  %1781 = vmatpush1.msra.mxu0 %v5745_v2 }
 0x1c7   : > { %8123 = vst [vmem:[#allocation113_spill] sm:$0xff] %v5717_v46  ;;  %8124 = vst [vmem:[#allocation114_spill] sm:$0xff] %v5720_v27  ;;  %v5846_v46 = vand.u32 4294901760, %v5643_v57  ;;  %v5851_v49 = vsub.f32 %v5748_v44, %v5797_v32  ;;  %1783 = vmatprep.subr.mxu0 %v5761_v54 }
 0x1c8   : > { %8125 = vst [vmem:[#allocation115_spill] sm:$0xff] %v5723_v9  ;;  %8126 = vst [vmem:[#allocation116_spill] sm:$0xff] %v5726_v19  ;;  %v8140_v43 = vand.u32 4294901760, %v5787_v59  ;;  %v1895_v9 = vsub.f32 %v5752_v39, %v8142_v4  ;;  %v5860_v4 = vsub.f32 %v5755_v28, %v5810_v8  ;;  %1785 = vmatpush1.msra.mxu0 %v5772_v40 }
 0x1c9   : > { %8127 = vst [vmem:[#allocation117_spill] sm:$0xff] %v5729_v1  ;;  %8128 = vst [vmem:[#allocation118_spill] sm:$0xff] %v5732_v50  ;;  %v5805_v50 = vsub.f32 %v5701_v35, %v5745_v2  ;;  %v1883_v35 = vsub.f32 %v5765_v0, %v8139_v33  ;;  %1787 = vmatprep.subr.mxu0 %v5775_v53 }
 0x1ca   : > { %8129 = vst [vmem:[#allocation119_spill] sm:$0xff] %v5735_v41  ;;  %8130 = vst [vmem:[#allocation120_spill] sm:$0xff] %v5738_v24  ;;  %v5815_v41 = vsub.f32 %v5704_v11, %v5761_v54  ;;  %v1877_v11 = vsub.f32 %v5787_v59, %v8140_v43  ;;  %1789 = vmatpush1.msra.mxu0 %v5797_v32 }
 0x1cb   : > { %8131 = vst [vmem:[#allocation121_spill] sm:$0xff] %v5742_v58  ;;  %8132 = vst [vmem:[#allocation122_spill] sm:$0xff] %v5745_v2  ;;  %v1884_v43 = vand.u32 4294901760, %v1883_v35  ;;  %v8145_v58 = vand.u32 4294901760, %v5793_v42  ;;  %v5878_v2 = vsub.f32 %v5729_v1, %v5801_v55  ;;  %v8146_v24 = vand.u32 4294901760, %v5805_v50  ;;  %1791 = vmatprep.subr.mxu0 %v5810_v8 }
 0x1cc   : > { %8133 = vst [vmem:[#allocation123_spill] sm:$0xff] %v5748_v44  ;;  %8134 = vst [vmem:[#allocation124_spill] sm:$0xff] %v5752_v39  ;;  %v1878_v33 = vand.u32 4294901760, %v1877_v11  ;;  %v8144_v39 = vand.u32 4294901760, %v5782_v17  ;;  %v8147_v35 = vand.u32 4294901760, %v5815_v41 }
 0x1cd   : > { %8135 = vst [vmem:[#allocation125_spill] sm:$0xff] %v5755_v28  ;;  %8136 = vst [vmem:[#allocation126_spill] sm:$0xff] %v5758_v18  ;;  %v5822_v18 = vand.u32 4294901760, %v5778_v62  ;;  %v1913_v28 = vsub.f32 %v5793_v42, %v8145_v58 }
 0x1ce   : > { %8137 = vst [vmem:[#allocation127_spill] sm:$0xff] %v5765_v0  ;;  %8138 = vst [vmem:[#allocation128_spill] sm:$0xff] %v5778_v62  ;;  %v5839_v0 = vsub.f32 %v5726_v19, %v5775_v53  ;;  %v8143_v19 = vand.u32 4294901760, %v5769_v10  ;;  %v1907_v44 = vsub.f32 %v5782_v17, %v8144_v39  ;;  %1879 = vmatprep.subr.mxu1 %v1878_v33  ;;  %v1896_v39 = vand.u32 4294901760, %v1895_v9 }
 0x1cf   : > { %v5869_v11 = vsub.f32 %v5778_v62, %v5822_v18  ;;  %1885 = vmatpush1.msra.mxu1 %v1884_v43  ;;  %v1919_v62 = vsub.f32 %v5805_v50, %v8146_v24  ;;  %v5887_v33 = vsub.f32 %v5643_v57, %v5846_v46  ;;  %v1925_v1 = vsub.f32 %v5815_v41, %v8147_v35 }
 0x1d0   : > { %v1901_v27 = vsub.f32 %v5769_v10, %v8143_v19  ;;  %v1890_v19 = vand.u32 4294901760, %v1889_v30  ;;  %v5896_v43 = vsub.f32 %v5589_v22, %v5658_v34  ;;  %v1908_v24 = vand.u32 4294901760, %v1907_v44  ;;  %1793 = vmatpush1.msra.mxu0 %v5822_v18 }
 0x1d1   : > { %v8148_v30 = vand.u32 4294901760, %v5827_v61  ;;  %v1914_v35 = vand.u32 4294901760, %v1913_v28  ;;  %v8149_v9 = vand.u32 4294901760, %v5839_v0  ;;  %1795 = vmatprep.subr.mxu0 %v5801_v55  ;;  %v8151_v44 = vand.u32 4294901760, %v5860_v4 }
 0x1d2   : > { %1891 = vmatprep.subr.mxu1 %v1890_v19  ;;  %v1902_v58 = vand.u32 4294901760, %v1901_v27  ;;  %v5905_v19 = vsub.f32 %v5556_v26, %v5623_v45  ;;  %v8150_v27 = vand.u32 4294901760, %v5851_v49  ;;  %1797 = vmatpush1.msra.mxu0 %v5846_v46  ;;  %v8152_v28 = vand.u32 4294901760, %v5869_v11 }
 0x1d3   : > { %1897 = vmatpush1.msra.mxu1 %v1896_v39  ;;  %v1931_v57 = vsub.f32 %v5827_v61, %v8148_v30  ;;  %v1937_v22 = vsub.f32 %v5839_v0, %v8149_v9  ;;  %v5914_v39 = vsub.f32 %v5559_v3, %v5626_v12  ;;  %v1920_v30 = vand.u32 4294901760, %v1919_v62  ;;  %1799 = vmatprep.subr.mxu0 %v5658_v34 }
 0x1d4   : > { %1903 = vmatprep.subr.mxu1 %v1902_v58  ;;  %v1943_v26 = vsub.f32 %v5851_v49, %v8150_v27  ;;  %v5923_v58 = vsub.f32 %v5542_v51, %v5604_v38  ;;  %v1926_v9 = vand.u32 4294901760, %v1925_v1  ;;  %v1949_v3 = vsub.f32 %v5860_v4, %v8151_v44  ;;  %1801 = vmatpush1.msra.mxu0 %v5623_v45 }
 0x1d5   : > { %1909 = vmatpush1.msra.mxu1 %v1908_v24  ;;  %v5932_v24 = vsub.f32 %v5545_v16, %v5607_v36  ;;  %v1932_v27 = vand.u32 4294901760, %v1931_v57  ;;  %v1955_v51 = vsub.f32 %v5869_v11, %v8152_v28  ;;  %v1938_v44 = vand.u32 4294901760, %v1937_v22  ;;  %1803 = vmatprep.subr.mxu0 %v5626_v12 }
 0x1d6   : > { %1915 = vmatprep.subr.mxu1 %v1914_v35  ;;  %v5941_v35 = vsub.f32 %v5548_v6, %v5610_v23  ;;  %v8153_v62 = vand.u32 4294901760, %v5878_v2  ;;  %v1944_v28 = vand.u32 4294901760, %v1943_v26  ;;  %v8154_v1 = vand.u32 4294901760, %v5887_v33  ;;  %1805 = vmatpush1.msra.mxu0 %v5604_v38 }
 0x1d7   : > { %1921 = vmatpush1.msra.mxu1 %v1920_v30  ;;  %v5950_v30 = vsub.f32 %v5531_v48, %v5592_v25  ;;  %v8155_v57 = vand.u32 4294901760, %v5896_v43  ;;  %v8157_v22 = vand.u32 4294901760, %v5905_v19  ;;  %1807 = vmatprep.subr.mxu0 %v5607_v36  ;;  %v8158_v26 = vand.u32 4294901760, %v5914_v39 }
 0x1d8   : > { %1927 = vmatprep.subr.mxu1 %v1926_v9  ;;  %v1961_v16 = vsub.f32 %v5878_v2, %v8153_v62  ;;  %v1967_v6 = vsub.f32 %v5887_v33, %v8154_v1  ;;  %v5959_v9 = vsub.f32 %v5534_v21, %v5595_v63  ;;  %v1950_v62 = vand.u32 4294901760, %v1949_v3  ;;  %1809 = vmatpush1.msra.mxu0 %v5610_v23 }
 0x1d9   : > { %1933 = vmatpush1.msra.mxu1 %v1932_v27  ;;  %v1973_v48 = vsub.f32 %v5896_v43, %v8155_v57  ;;  %v5968_v27 = vsub.f32 %v5513_v15, %v5574_v13  ;;  %v1956_v1 = vand.u32 4294901760, %v1955_v51  ;;  %v1979_v21 = vsub.f32 %v5905_v19, %v8157_v22  ;;  %1811 = vmatprep.subr.mxu0 %v5592_v25 }
 0x1da   : > { %1939 = vmatprep.subr.mxu1 %v1938_v44  ;;  %v5977_v44 = vsub.f32 %v5516_v52, %v5577_v56  ;;  %v1962_v57 = vand.u32 4294901760, %v1961_v16  ;;  %v1985_v15 = vsub.f32 %v5914_v39, %v8158_v26  ;;  %v1968_v22 = vand.u32 4294901760, %v1967_v6  ;;  %1813 = vmatpush1.msra.mxu0 %v5595_v63 }
 0x1db   : > { %8156 = vst [vmem:[#allocation129_spill] sm:$0xff] %v5968_v27  ;;  %1945 = vmatpush1.msra.mxu1 %v1944_v28  ;;  %v5986_v28 = vsub.f32 %v5519_v29, %v5580_v37  ;;  %v8160_v3 = vand.u32 4294901760, %v5923_v58  ;;  %v1974_v26 = vand.u32 4294901760, %v1973_v48  ;;  %v8162_v51 = vand.u32 4294901760, %v5932_v24  ;;  %1815 = vmatprep.subr.mxu0 %v5574_v13  ;;  %v8171_v13 = vld [vmem:[#allocation25_spill] sm:$0xff] }
 0x1dc   : > { %1951 = vmatprep.subr.mxu1 %v1950_v62  ;;  %v5995_v62 = vsub.f32 %v5508_v31, %v5562_v7  ;;  %v8164_v16 = vand.u32 4294901760, %v5941_v35  ;;  %v8166_v6 = vand.u32 4294901760, %v5950_v30  ;;  %1817 = vmatpush1.msra.mxu0 %v5577_v56  ;;  %v8169_v48 = vand.u32 4294901760, %v5959_v9 }
 0x1dd   : > { %8159 = vst [vmem:[#allocation130_spill] sm:$0xff] %v5986_v28  ;;  %1957 = vmatpush1.msra.mxu1 %v1956_v1  ;;  %v1991_v52 = vsub.f32 %v5923_v58, %v8160_v3  ;;  %v1997_v29 = vsub.f32 %v5932_v24, %v8162_v51  ;;  %v6004_v1 = vsub.f32 %v5495_v20, %v5565_v5  ;;  %v1980_v3 = vand.u32 4294901760, %v1979_v21 }
 0x1de   : > { %8161 = vst [vmem:[#allocation131_spill] sm:$0xff] %v5995_v62  ;;  %1963 = vmatprep.subr.mxu1 %v1962_v57  ;;  %v2003_v31 = vsub.f32 %v5941_v35, %v8164_v16  ;;  %v6013_v57 = vsub.f32 %v5445_v47, %v5551_v14  ;;  %v1986_v51 = vand.u32 4294901760, %v1985_v15  ;;  %v2009_v20 = vsub.f32 %v5950_v30, %v8166_v6 }
 0x1df   : > { %8163 = vst [vmem:[#allocation132_spill] sm:$0xff] %v6004_v1  ;;  %1969 = vmatpush1.msra.mxu1 %v1968_v22  ;;  %v8167_v22 = vld [vmem:[#allocation29_spill] sm:$0xff]  ;;  %v1992_v16 = vand.u32 4294901760, %v1991_v52  ;;  %v2015_v47 = vsub.f32 %v5959_v9, %v8169_v48  ;;  %1819 = vmatprep.subr.mxu0 %v5580_v37  ;;  %v1998_v6 = vand.u32 4294901760, %v1997_v29  ;;  %v8173_v21 = vand.u32 4294901760, %v5968_v27 }
 0x1e0   : > { %8165 = vst [vmem:[#allocation133_spill] sm:$0xff] %v6013_v57  ;;  %1975 = vmatprep.subr.mxu1 %v1974_v26  ;;  %v6022_v63 = vsub.f32 %v8167_v22, %v5537_v60  ;;  %v8170_v26 = vld [vmem:[#allocation52_spill] sm:$0xff]  ;;  %1821 = vmatpush1.msra.mxu0 %v5562_v7  ;;  %v8174_v48 = vand.u32 4294901760, %v5977_v44  ;;  %v2010_v29 = vand.u32 4294901760, %v2009_v20 }
 0x1e1   : > { %1981 = vmatpush1.msra.mxu1 %v1980_v3  ;;  %v6031_v25 = vsub.f32 %v8171_v13, %v8170_v26  ;;  %v2021_v22 = vsub.f32 %v5968_v27, %v8173_v21  ;;  %v2004_v3 = vand.u32 4294901760, %v2003_v31  ;;  %1823 = vmatprep.subr.mxu0 %v5565_v5  ;;  %v2016_v31 = vand.u32 4294901760, %v2015_v47 }
 0x1e2   : > { %8168 = vst [vmem:[#allocation134_spill] sm:$0xff] %v6022_v63  ;;  %1987 = vmatprep.subr.mxu1 %v1986_v51  ;;  %v2027_v15 = vsub.f32 %v5977_v44, %v8174_v48  ;;  %v8175_v51 = vand.u32 4294901760, %v5986_v28  ;;  %v7857_v52 = vand.u32 4294901760, %v6022_v63  ;;  %1825 = vmatpush1.msra.mxu0 %v5551_v14  ;;  %v8177_v48 = vand.u32 4294901760, %v5995_v62 }
 0x1e3   : > { %8172 = vst [vmem:[#allocation135_spill] sm:$0xff] %v6031_v25  ;;  %1993 = vmatpush1.msra.mxu1 %v1992_v16  ;;  %v8176_v16 = vld [vmem:[#allocation23_spill] sm:$0xff]  ;;  %v7856_v5 = vand.u32 4294901760, %v6031_v25  ;;  %1827 = vmatprep.subr.mxu0 %v5537_v60  ;;  %v2022_v20 = vand.u32 4294901760, %v2021_v22 }
 0x1e4   : > { %1999 = vmatprep.subr.mxu1 %v1998_v6  ;;  %v2033_v21 = vsub.f32 %v5986_v28, %v8175_v51  ;;  %v1867_v7 = vand.u32 4294901760, %v8176_v16  ;;  %v2039_v13 = vsub.f32 %v5995_v62, %v8177_v48  ;;  %v8178_v6 = vand.u32 4294901760, %v6004_v1  ;;  %1829 = vmatpush1.msra.mxu0 %v8170_v26 }
 0x1e5   : > { %2005 = vmatpush1.msra.mxu1 %v2004_v3  ;;  %v2028_v47 = vand.u32 4294901760, %v2027_v15  ;;  %v8179_v3 = vand.u32 4294901760, %v6013_v57  ;;  %2108 = vmatprep.subr.mxu0 %v5787_v59  ;;  %v2057_v22 = vsub.f32 %v6022_v63, %v7857_v52  ;;  %v8180_v15 = vld [vmem:[#allocation127_spill] sm:$0xff]  ;;  %v8194_v52 = vld [vmem:[#allocation92_spill] sm:$0xff] }
 0x1e6   : > { %2011 = vmatprep.subr.mxu1 %v2010_v29  ;;  %v2045_v51 = vsub.f32 %v6004_v1, %v8178_v6  ;;  %v2034_v48 = vand.u32 4294901760, %v2033_v21  ;;  %1868 = vmatmul.mubr.f32.vlgmr.msra.gmra.mxu0 %v1867_v7  ;;  %v2040_v29 = vand.u32 4294901760, %v2039_v13  ;;  %v8182_v21 = vld [vmem:[#allocation124_spill] sm:$0xff]  ;;  %v8183_v7 = vld [vmem:[#allocation126_spill] sm:$0xff] }
 0x1e7   : > { %2017 = vmatpush1.msra.mxu1 %v2016_v31  ;;  %v2051_v16 = vsub.f32 %v6013_v57, %v8179_v3  ;;  %v2063_v31 = vsub.f32 %v6031_v25, %v7856_v5  ;;  %2111 = vmatpush1.msra.mxu0 %v8180_v15  ;;  %v8181_v3 = vld [vmem:[#allocation121_spill] sm:$0xff]  ;;  %v2058_v26 = vand.u32 4294901760, %v2057_v22  ;;  %v8189_v22 = vld [vmem:[#allocation114_spill] sm:$0xff] }
 0x1e8   : > { %2023 = vmatprep.subr.mxu1 %v2022_v20  ;;  %v2046_v6 = vand.u32 4294901760, %v2045_v51  ;;  %2114 = vmatprep.subr.mxu0 %v8181_v3  ;;  %v8184_v51 = vld [vmem:[#allocation5_spill] sm:$0xff] }
 0x1e9   : > { %2029 = vmatpush1.msra.mxu1 %v2028_v47  ;;  %v2052_v20 = vand.u32 4294901760, %v2051_v16  ;;  %2117 = vmatpush1.msra.mxu0 %v8182_v21  ;;  %v2064_v13 = vand.u32 4294901760, %v2063_v31  ;;  %v8185_v47 = vld [vmem:[#allocation119_spill] sm:$0xff]  ;;  %v8186_v16 = vld [vmem:[#allocation112_spill] sm:$0xff]  ;;  %v8191_v31 = vld [vmem:[#allocation122_spill] sm:$0xff] }
 0x1ea   : > { %2035 = vmatprep.subr.mxu1 %v2034_v48  ;;  %2120 = vmatprep.subr.mxu0 %v5769_v10  ;;  %v8188_v48 = vld [vmem:[#allocation113_spill] sm:$0xff] }
 0x1eb   : > { %2041 = vmatpush1.msra.mxu1 %v2040_v29  ;;  %2123 = vmatpush1.msra.mxu0 %v5782_v17  ;;  %v8190_v29 = vld [vmem:[#allocation120_spill] sm:$0xff] }
 0x1ec   : > { %2047 = vmatprep.subr.mxu1 %v2046_v6  ;;  %2126 = vmatprep.subr.mxu0 %v5793_v42  ;;  %v8192_v6 = vld [vmem:[#allocation110_spill] sm:$0xff] }
 0x1ed   : > { %2053 = vmatpush1.msra.mxu1 %v2052_v20  ;;  %2129 = vmatpush1.msra.mxu0 %v5805_v50  ;;  %v1604_v20 = vmul.f32 6.0, %v8192_v6 }
 0x1ee   : > { %2059 = vmatprep.subr.mxu1 %v2058_v26  ;;  %2132 = vmatprep.subr.mxu0 %v5815_v41  ;;  %v8187_v26 = vld [vmem:[#allocation107_spill] sm:$0xff] }
 0x1ef   : > { %2065 = vmatpush1.msra.mxu1 %v2064_v13  ;;  %2135 = vmatpush1.msra.mxu0 %v5827_v61  ;;  %v8193_v13 = vld [vmem:[#allocation102_spill] sm:$0xff]  ;;  %v4502_v6 = vadd.f32 -2.0, %v1604_v20 }
 0x1f0   : > { %2244 = vmatprep.subr.mxu1 %v8183_v7  ;;  %2100 = vmatmul.mubr.f32.vlgmr.msra.gmra.mxu1 %v8184_v51  ;;  %v1603_v5 = vmul.f32 6.0, %v8193_v13  ;;  %v1602_v51 = vmul.f32 6.0, %v8194_v52  ;;  %v8203_v20 = vld [vmem:[#allocation118_spill] sm:$0xff] }
 0x1f1   : > { %2246 = vmatpush1.msra.mxu1 %v8185_v47  ;;  %2138 = vmatprep.subr.mxu0 %v5839_v0 }
 0x1f2   : > { %2248 = vmatprep.subr.mxu1 %v8186_v16  ;;  %2141 = vmatpush1.msra.mxu0 %v5851_v49  ;;  %v4501_v13 = vadd.f32 -2.0, %v1603_v5  ;;  %v4500_v52 = vadd.f32 -2.0, %v1602_v51  ;;  %v8202_v5 = vld [vmem:[#allocation10_spill] sm:$0xff]  ;;  %v8207_v51 = vld [vmem:[#allocation89_spill] sm:$0xff] }
 0x1f3   : > { %2250 = vmatpush1.msra.mxu1 %v8187_v26  ;;  %2144 = vmatprep.subr.mxu0 %v5860_v4 }
 0x1f4   : > { %2252 = vmatprep.subr.mxu1 %v8188_v48  ;;  %2147 = vmatpush1.msra.mxu0 %v5869_v11 }
 0x1f5   : > { %2254 = vmatpush1.msra.mxu1 %v8189_v22  ;;  %2150 = vmatprep.subr.mxu0 %v5878_v2 }
 0x1f6   : > { %2256 = vmatprep.subr.mxu1 %v8190_v29  ;;  %2153 = vmatpush1.msra.mxu0 %v5887_v33 }
 0x1f7   : > { %2258 = vmatpush1.msra.mxu1 %v8191_v31  ;;  %2156 = vmatprep.subr.mxu0 %v5896_v43 }
 0x1f8   : > { %2260 = vmatprep.subr.mxu1 %v5761_v54  ;;  %2159 = vmatpush1.msra.mxu0 %v5905_v19 }
 0x1f9   : > { %2262 = vmatpush1.msra.mxu1 %v5772_v40  ;;  %2162 = vmatprep.subr.mxu0 %v5914_v39 }
 0x1fa   : > { %2264 = vmatprep.subr.mxu1 %v5775_v53  ;;  %2165 = vmatpush1.msra.mxu0 %v5923_v58 }
 0x1fb   : > { %2266 = vmatpush1.msra.mxu1 %v5797_v32  ;;  %2168 = vmatprep.subr.mxu0 %v5932_v24 }
 0x1fc   : > { %2268 = vmatprep.subr.mxu1 %v5810_v8  ;;  %2171 = vmatpush1.msra.mxu0 %v5941_v35 }
 0x1fd   : > { %2270 = vmatpush1.msra.mxu1 %v5822_v18  ;;  %2174 = vmatprep.subr.mxu0 %v5950_v30 }
 0x1fe   : > { %2272 = vmatprep.subr.mxu1 %v5801_v55  ;;  %2177 = vmatpush1.msra.mxu0 %v5959_v9 }
 0x1ff   : > { %2274 = vmatpush1.msra.mxu1 %v5846_v46  ;;  %2180 = vmatprep.subr.mxu0 %v5968_v27  ;;  %v8195_v27 = vld [vmem:[#allocation83_spill] sm:$0xff] }
 0x200   : > { %2276 = vmatprep.subr.mxu1 %v5658_v34  ;;  %2183 = vmatpush1.msra.mxu0 %v5977_v44  ;;  %v1601_v34 = vmul.f32 6.0, %v8195_v27 }
 0x201   : > { %2278 = vmatpush1.msra.mxu1 %v5623_v45  ;;  %2186 = vmatprep.subr.mxu0 %v5986_v28 }
 0x202   : > { %2280 = vmatprep.subr.mxu1 %v5626_v12  ;;  %2189 = vmatpush1.msra.mxu0 %v5995_v62  ;;  %v8196_v12 = vld [vmem:[#allocation74_spill] sm:$0xff]  ;;  %v4499_v27 = vadd.f32 -2.0, %v1601_v34  ;;  %v8198_v62 = vmov 0.0   ;;  %v8206_v34 = vand.u32 4294901760, %v8180_v15 }
 0x203   : > { %2282 = vmatpush1.msra.mxu1 %v5604_v38  ;;  %2192 = vmatprep.subr.mxu0 %v6004_v1  ;;  %v8197_v38 = vld [vmem:[#allocation75_spill] sm:$0xff]  ;;  %v8199_v1 = vld [vmem:[#allocation69_spill] sm:$0xff] }
 0x204   : > { %2284 = vmatprep.subr.mxu1 %v5607_v36  ;;  %2195 = vmatpush1.msra.mxu0 %v6013_v57  ;;  %v8200_v36 = vld [vmem:[#allocation77_spill] sm:$0xff] }
 0x205   : > { %2286 = vmatpush1.msra.mxu1 %v5610_v23  ;;  %2198 = vmatprep.subr.mxu0 %v6022_v63  ;;  %v1599_v57 = vmul.f32 6.0, %v8200_v36  ;;  %v8201_v23 = vand.u32 4294901760, %v5787_v59  ;;  %v1668_v63 = vmul.f32 %v4502_v6, %v8203_v20  ;;  %v8208_v59 = vand.u32 4294901760, %v8181_v3  ;;  %v8211_v20 = vld [vmem:[#allocation65_spill] sm:$0xff] }
 0x206   : > { %2288 = vmatprep.subr.mxu1 %v8196_v12  ;;  %2201 = vmatpush1.msra.mxu0 %v6031_v25  ;;  %v8204_v12 = vld [vmem:[#allocation111_spill] sm:$0xff]  ;;  %v8205_v25 = vld [vmem:[#allocation72_spill] sm:$0xff] }
 0x207   : > { %2290 = vmatpush1.msra.mxu1 %v8197_v38  ;;  %2234 = vmatprep.mubr.f32.mxu0 %v8198_v62  ;;  %v1667_v28 = vmul.f32 %v4501_v13, %v8204_v12  ;;  %v1600_v45 = vmul.f32 6.0, %v8205_v25  ;;  %v8210_v38 = vld [vmem:[#allocation93_spill] sm:$0xff]  ;;  %v8212_v13 = vand.u32 4294901760, %v8182_v21  ;;  %v4497_v25 = vadd.f32 -2.0, %v1599_v57  ;;  %v8213_v12 = vld [vmem:[#allocation82_spill] sm:$0xff] }
 0x208   : > { %2292 = vmatprep.subr.mxu1 %v8199_v1  ;;  %2352 = vmatprep.subr.mxu0 %v8201_v23  ;;  %v1597_v1 = vmul.f32 6.0, %v8207_v51  ;;  %v8209_v23 = vld [vmem:[#allocation103_spill] sm:$0xff]  ;;  %v1665_v6 = vmul.f32 %v4499_v27, %v8210_v38  ;;  %v1598_v15 = vmul.f32 6.0, %v8213_v12  ;;  %v8215_v51 = vand.u32 4294901760, %v5769_v10 }
 0x209   : > { %2237 = vmatmul.mubr.f32.vlgmr.msra.gmra.mxu0 %v8202_v5  ;;  %2294 = vmatpush1.msra.mxu1 %v5577_v56  ;;  %v1666_v36 = vmul.f32 %v4500_v52, %v8209_v23  ;;  %v6156_v3 = vand.u32 4294901760, %v1667_v28  ;;  %v4498_v52 = vadd.f32 -2.0, %v1600_v45  ;;  %v8216_v27 = vand.u32 4294901760, %v5782_v17  ;;  %v8222_v45 = vld [vmem:[#allocation100_spill] sm:$0xff] }
 0x20a   : > { %2356 = vmatpush1.msra.mxu0 %v8206_v34  ;;  %2296 = vmatprep.subr.mxu1 %v5580_v37  ;;  %v8214_v34 = vld [vmem:[#allocation66_spill] sm:$0xff]  ;;  %v6154_v37 = vand.u32 4294901760, %v1668_v63  ;;  %v4495_v21 = vadd.f32 -2.0, %v1597_v1  ;;  %v8217_v57 = vand.u32 4294901760, %v5793_v42  ;;  %v6166_v10 = vand.u32 4294901760, %v1665_v6  ;;  %v8223_v17 = vld [vmem:[#allocation88_spill] sm:$0xff] }
 0x20b   : > { %2360 = vmatprep.subr.mxu0 %v8208_v59  ;;  %2298 = vmatpush1.msra.mxu1 %v8211_v20  ;;  %v6164_v59 = vand.u32 4294901760, %v1666_v36  ;;  %v1663_v12 = vmul.f32 %v4497_v25, %v8222_v45  ;;  %v4496_v23 = vadd.f32 -2.0, %v1598_v15  ;;  %v8224_v1 = vand.u32 4294901760, %v5815_v41  ;;  %v8229_v45 = vld [vmem:[#allocation106_spill] sm:$0xff] }
 0x20c   : > { %2364 = vmatpush1.msra.mxu0 %v8212_v13  ;;  %2300 = vmatprep.subr.mxu1 %v8214_v34  ;;  %8219 = vst [vmem:[#allocation127_spill] sm:$0xff] %v6166_v10  ;;  %v8221_v13 = vand.u32 4294901760, %v5805_v50  ;;  %v6177_v42 = vsub.f32 %v1667_v28, %v6156_v3  ;;  %v8226_v25 = vand.u32 4294901760, %v8202_v5  ;;  %v8227_v50 = vld [vmem:[#allocation108_spill] sm:$0xff]  ;;  %v1593_v41 = vmul.f32 6.0, %v8229_v45 }
 0x20d   : > { %2368 = vmatprep.subr.mxu0 %v8215_v51  ;;  %2302 = vmatpush1.msra.mxu1 %v5551_v14  ;;  %8218 = vst [vmem:[#allocation23_spill] sm:$0xff] %v6164_v59  ;;  %v8220_v51 = vld [vmem:[#allocation52_spill] sm:$0xff]  ;;  %v1661_v15 = vmul.f32 %v4495_v21, %v8227_v50  ;;  %v8231_v28 = vand.u32 4294901760, %v5827_v61  ;;  %v6198_v5 = vsub.f32 %v1666_v36, %v6164_v59  ;;  %v8233_v21 = vand.u32 4294901760, %v5839_v0  ;;  %v8238_v0 = vld [vmem:[#allocation18_spill] sm:$0xff] }
 0x20e   : > { %2372 = vmatpush1.msra.mxu0 %v8216_v27  ;;  %2304 = vmatprep.subr.mxu1 %v5537_v60  ;;  %v1596_v27 = vmul.f32 6.0, %v8223_v17 }
 0x20f   : > { %2376 = vmatprep.subr.mxu0 %v8217_v57  ;;  %2306 = vmatpush1.msra.mxu1 %v8220_v51  ;;  %v8225_v57 = vld [vmem:[#allocation94_spill] sm:$0xff]  ;;  %v6181_v51 = vsub.f32 %v1668_v63, %v6154_v37  ;;  %v6194_v63 = vsub.f32 %v1665_v6, %v6166_v10 }
 0x210   : > { %2380 = vmatpush1.msra.mxu0 %v8221_v13  ;;  %2339 = vmatprep.mubr.f32.mxu1 %v8198_v62  ;;  %v1664_v38 = vmul.f32 %v4498_v52, %v8225_v57  ;;  %v8228_v13 = vld [vmem:[#allocation99_spill] sm:$0xff]  ;;  %v8309_v57 = vld [vmem:[#allocation134_spill] sm:$0xff] }
 0x211   : > { %2384 = vmatprep.subr.mxu0 %v8224_v1  ;;  %2518 = vmatprep.subr.mxu1 %v8183_v7  ;;  %v1595_v17 = vmul.f32 6.0, %v8228_v13  ;;  %v8230_v1 = vld [vmem:[#allocation16_spill] sm:$0xff]  ;;  %v8232_v7 = vld [vmem:[#allocation98_spill] sm:$0xff] }
 0x212   : > { %2343 = vmatmul.mubr.f32.vlgmr.msra.gmra.mxu1 %v8226_v25  ;;  %v1573_v60 = vmul.f32 6.0, %v8230_v1  ;;  %2388 = vmatpush1.msra.mxu0 %v8231_v28  ;;  %v1594_v52 = vmul.f32 6.0, %v8232_v7  ;;  %v6203_v25 = vand.u32 4294901760, %v1663_v12  ;;  %v8235_v1 = vld [vmem:[#allocation104_spill] sm:$0xff]  ;;  %v4494_v28 = vadd.f32 -2.0, %v1596_v27 }
 0x213   : > { %2520 = vmatpush1.msra.mxu1 %v8185_v47  ;;  %2392 = vmatprep.subr.mxu0 %v8233_v21  ;;  %v1662_v61 = vmul.f32 %v4496_v23, %v8235_v1  ;;  %v8236_v47 = vand.u32 4294901760, %v5851_v49  ;;  %v6209_v6 = vand.u32 4294901760, %v1664_v38  ;;  %v6214_v21 = vmul.f32 6.0, %v8238_v0  ;;  %v8304_v13 = vld [vmem:[#allocation40_spill] sm:$0xff]  ;;  %v8305_v1 = vld [vmem:[#allocation133_spill] sm:$0xff] }
 0x214   : > { %2522 = vmatprep.subr.mxu1 %v8186_v16  ;;  %8234 = vst [vmem:[#allocation121_spill] sm:$0xff] %v6203_v25  ;;  %v8239_v16 = vand.u32 4294901760, %v5860_v4  ;;  %v6219_v23 = vand.u32 4294901760, %v1661_v15  ;;  %v4493_v49 = vadd.f32 -2.0, %v1595_v17  ;;  %v4491_v27 = vadd.f32 -2.0, %v1593_v41  ;;  %v8242_v4 = vld [vmem:[#allocation97_spill] sm:$0xff]  ;;  %2509 = vmatprep.mubr.f32.mxu0 %v8198_v62 }
 0x215   : > { %2396 = vmatpush1.msra.mxu0 %v8236_v47  ;;  %2524 = vmatpush1.msra.mxu1 %v8187_v26  ;;  %8237 = vst [vmem:[#allocation124_spill] sm:$0xff] %v6209_v6  ;;  %v6221_v47 = vadd.f32 -2.0, %v1573_v60  ;;  %v8241_v26 = vand.u32 4294901760, %v5869_v11  ;;  %v4492_v7 = vadd.f32 -2.0, %v1594_v52  ;;  %v6233_v60 = vsub.f32 %v1663_v12, %v6203_v25  ;;  %v8246_v11 = vld [vmem:[#allocation109_spill] sm:$0xff] }
 0x216   : > { %2400 = vmatprep.subr.mxu0 %v8239_v16  ;;  %2526 = vmatprep.subr.mxu1 %v8188_v48  ;;  %8240 = vst [vmem:[#allocation126_spill] sm:$0xff] %v6219_v23  ;;  %v1591_v16 = vmul.f32 6.0, %v8242_v4  ;;  %v8243_v48 = vand.u32 4294901760, %v5878_v2  ;;  %v6235_v17 = vand.u32 4294901760, %v1662_v61  ;;  %v1660_v41 = vmul.f32 %v4494_v28, %v8246_v11  ;;  %v8252_v28 = vld [vmem:[#allocation20_spill] sm:$0xff] }
 0x217   : > { %2404 = vmatpush1.msra.mxu0 %v8241_v26  ;;  %2528 = vmatpush1.msra.mxu1 %v8189_v22  ;;  %8244 = vst [vmem:[#allocation119_spill] sm:$0xff] %v6233_v60  ;;  %v8247_v22 = vld [vmem:[#allocation101_spill] sm:$0xff]  ;;  %v8248_v26 = vand.u32 4294901760, %v5887_v33  ;;  %v8249_v0 = vand.u32 4294901760, %v6181_v51  ;;  %v6256_v36 = vmul.f32 6.0, %v8252_v28  ;;  %v8253_v33 = vand.u32 4294901760, %v5896_v43 }
 0x218   : > { %2408 = vmatprep.subr.mxu0 %v8243_v48  ;;  %2530 = vmatprep.subr.mxu1 %v8190_v29  ;;  %8245 = vst [vmem:[#allocation112_spill] sm:$0xff] %v6235_v17  ;;  %v1592_v52 = vmul.f32 6.0, %v8247_v22  ;;  %v8250_v29 = vand.u32 4294901760, %v6177_v42  ;;  %v6253_v48 = vsub.f32 %v1664_v38, %v6209_v6  ;;  %v8256_v22 = vld [vmem:[#allocation123_spill] sm:$0xff]  ;;  %v8258_v38 = vand.u32 4294901760, %v5905_v19  ;;  %v8259_v28 = vld [vmem:[#allocation116_spill] sm:$0xff] }
 0x219   : > { %2412 = vmatpush1.msra.mxu0 %v8248_v26  ;;  %2532 = vmatpush1.msra.mxu1 %v8191_v31  ;;  %v6245_v2 = vsub.f32 %v6181_v51, %v8249_v0  ;;  %v6262_v31 = vsub.f32 %v1661_v15, %v6219_v23  ;;  %v8255_v0 = vld [vmem:[#allocation115_spill] sm:$0xff]  ;;  %v1657_v4 = vmul.f32 %v4491_v27, %v8256_v22  ;;  %v8260_v43 = vand.u32 4294901760, %v6198_v5  ;;  %v8291_v22 = vld [vmem:[#allocation85_spill] sm:$0xff] }
 0x21a   : > { %v6250_v12 = vsub.f32 %v6177_v42, %v8250_v29  ;;  %8251 = vst [vmem:[#allocation107_spill] sm:$0xff] %v6253_v48  ;;  %2416 = vmatprep.subr.mxu0 %v8253_v33  ;;  %2534 = vmatprep.subr.mxu1 %v5761_v54  ;;  %v1659_v26 = vmul.f32 %v4493_v49, %v8255_v0  ;;  %v8257_v29 = vld [vmem:[#allocation68_spill] sm:$0xff]  ;;  %v8261_v15 = vand.u32 4294901760, %v6194_v63  ;;  %v4489_v27 = vadd.f32 -2.0, %v1591_v16  ;;  %v8297_v0 = vld [vmem:[#allocation78_spill] sm:$0xff] }
 0x21b   : > { %8254 = vst [vmem:[#allocation113_spill] sm:$0xff] %v6262_v31  ;;  %v1589_v45 = vmul.f32 6.0, %v8257_v29  ;;  %2420 = vmatpush1.msra.mxu0 %v8258_v38  ;;  %2536 = vmatpush1.msra.mxu1 %v5772_v40  ;;  %v1658_v11 = vmul.f32 %v4492_v7, %v8259_v28  ;;  %v6274_v54 = vsub.f32 %v6198_v5, %v8260_v43  ;;  %v8262_v33 = vand.u32 4294901760, %v5914_v39  ;;  %v8263_v7 = vld [vmem:[#allocation87_spill] sm:$0xff] }
 0x21c   : > { %v6279_v49 = vsub.f32 %v6194_v63, %v8261_v15  ;;  %2538 = vmatprep.subr.mxu1 %v5775_v53  ;;  %v6284_v19 = vand.u32 4294901760, %v1660_v41  ;;  %v4490_v40 = vadd.f32 -2.0, %v1592_v52  ;;  %v1590_v38 = vmul.f32 6.0, %v8263_v7  ;;  %v8284_v53 = vld [vmem:[#allocation90_spill] sm:$0xff]  ;;  %2613 = vmatprep.mubr.f32.mxu1 %v8198_v62 }
 0x21d   : > { %2424 = vmatprep.subr.mxu0 %v8262_v33  ;;  %v6288_v29 = vsub.f32 %v1662_v61, %v6235_v17  ;;  %v8265_v43 = vand.u32 4294901760, %v5923_v58  ;;  %2540 = vmatpush1.msra.mxu1 %v5797_v32  ;;  %v8266_v52 = vand.u32 4294901760, %v5932_v24  ;;  %v6300_v61 = vand.u32 4294901760, %v1659_v26 }
 0x21e   : > { %2542 = vmatprep.subr.mxu1 %v5810_v8  ;;  %v6302_v33 = vand.u32 4294901760, %v1657_v4  ;;  %v4487_v58 = vadd.f32 -2.0, %v1589_v45  ;;  %v8270_v16 = vand.u32 4294901760, %v5941_v35  ;;  %v6308_v39 = vand.u32 4294901760, %v1658_v11  ;;  %v8274_v45 = vld [vmem:[#allocation125_spill] sm:$0xff] }
 0x21f   : > { %8264 = vst [vmem:[#allocation114_spill] sm:$0xff] %v6288_v29  ;;  %2428 = vmatpush1.msra.mxu0 %v8265_v43  ;;  %8267 = vst [vmem:[#allocation120_spill] sm:$0xff] %v6300_v61  ;;  %v8269_v43 = vld [vmem:[#allocation46_spill] sm:$0xff]  ;;  %2544 = vmatpush1.msra.mxu1 %v5822_v18  ;;  %v8273_v15 = vand.u32 4294901760, %v5950_v30  ;;  %v4488_v7 = vadd.f32 -2.0, %v1590_v38  ;;  %v8276_v28 = vand.u32 4294901760, %v5959_v9  ;;  %v6334_v38 = vsub.f32 %v1660_v41, %v6284_v19 }
 0x220   : > { %2432 = vmatprep.subr.mxu0 %v8266_v52  ;;  %8268 = vst [vmem:[#allocation122_spill] sm:$0xff] %v6302_v33  ;;  %v1587_v32 = vmul.f32 6.0, %v8269_v43  ;;  %8271 = vst [vmem:[#allocation10_spill] sm:$0xff] %v6308_v39  ;;  %v8272_v52 = vld [vmem:[#allocation128_spill] sm:$0xff]  ;;  %2546 = vmatprep.subr.mxu1 %v5801_v55  ;;  %v1656_v43 = vmul.f32 %v4490_v40, %v8274_v45  ;;  %v8277_v24 = vand.u32 4294901760, %v6253_v48  ;;  %v8278_v30 = vand.u32 4294901760, %v6233_v60 }
 0x221   : > { %2436 = vmatpush1.msra.mxu0 %v8270_v16  ;;  %v1655_v8 = vmul.f32 %v4489_v27, %v8272_v52  ;;  %v8275_v16 = vld [vmem:[#allocation54_spill] sm:$0xff]  ;;  %2548 = vmatpush1.msra.mxu1 %v5846_v46  ;;  %8279 = vst [vmem:[#allocation65_spill] sm:$0xff] %v6334_v38  ;;  %v6340_v46 = vsub.f32 %v1659_v26, %v6300_v61  ;;  %v8286_v40 = vld [vmem:[#allocation84_spill] sm:$0xff]  ;;  %v8306_v50 = vand.u32 4294901760, %v8305_v1  ;;  %v8313_v1 = vld [vmem:[#allocation73_spill] sm:$0xff] }
 0x222   : > { %2440 = vmatprep.subr.mxu0 %v8273_v15  ;;  %v1588_v18 = vmul.f32 6.0, %v8275_v16  ;;  %v6325_v27 = vsub.f32 %v6253_v48, %v8277_v24  ;;  %v6330_v55 = vsub.f32 %v6233_v60, %v8278_v30  ;;  %v8280_v15 = vld [vmem:[#allocation129_spill] sm:$0xff]  ;;  %v6343_v24 = vsub.f32 %v1657_v4, %v6302_v33  ;;  %v8288_v26 = vld [vmem:[#allocation42_spill] sm:$0xff] }
 0x223   : > { %2444 = vmatpush1.msra.mxu0 %v8276_v28  ;;  %v8281_v9 = vand.u32 4294901760, %v8280_v15  ;;  %v8282_v28 = vld [vmem:[#allocation95_spill] sm:$0xff]  ;;  %8283 = vst [vmem:[#allocation66_spill] sm:$0xff] %v6340_v46  ;;  %v1653_v35 = vmul.f32 %v4487_v58, %v8284_v53  ;;  %v4485_v30 = vadd.f32 -2.0, %v1587_v32  ;;  %v8285_v16 = vand.u32 4294901760, %v5977_v44  ;;  %v8287_v15 = vld [vmem:[#allocation45_spill] sm:$0xff] }
 0x224   : > { %2550 = vmatprep.subr.mxu1 %v8282_v28  ;;  %v6349_v41 = vand.u32 4294901760, %v1655_v8  ;;  %v6353_v28 = vsub.f32 %v1658_v11, %v6308_v39  ;;  %v1585_v45 = vmul.f32 6.0, %v8288_v26  ;;  %v8289_v52 = vld [vmem:[#allocation130_spill] sm:$0xff]  ;;  %v6359_v58 = vand.u32 4294901760, %v1656_v43  ;;  %v8293_v44 = vld [vmem:[#allocation117_spill] sm:$0xff]  ;;  %v8295_v53 = vld [vmem:[#allocation131_spill] sm:$0xff] }
 0x225   : > { %2448 = vmatprep.subr.mxu0 %v8281_v9  ;;  %2552 = vmatpush1.msra.mxu1 %v8286_v40  ;;  %v1586_v9 = vmul.f32 6.0, %v8287_v15  ;;  %v8290_v4 = vand.u32 4294901760, %v8289_v52  ;;  %v1654_v32 = vmul.f32 %v4488_v7, %v8293_v44  ;;  %v4486_v15 = vadd.f32 -2.0, %v1588_v18  ;;  %v8299_v44 = vld [vmem:[#allocation132_spill] sm:$0xff]  ;;  %v8301_v18 = vld [vmem:[#allocation79_spill] sm:$0xff]  ;;  %v8328_v60 = vld [vmem:[#allocation37_spill] sm:$0xff] }
 0x226   : > { %2452 = vmatpush1.msra.mxu0 %v8285_v16  ;;  %2554 = vmatprep.subr.mxu1 %v8291_v22  ;;  %8292 = vst [vmem:[#allocation129_spill] sm:$0xff] %v6359_v58  ;;  %v8294_v16 = vand.u32 4294901760, %v6288_v29  ;;  %v8296_v11 = vand.u32 4294901760, %v8295_v53  ;;  %v8298_v22 = vand.u32 4294901760, %v6262_v31  ;;  %v6381_v53 = vand.u32 4294901760, %v1653_v35 }
 0x227   : > { %2456 = vmatprep.subr.mxu0 %v8290_v4  ;;  %2556 = vmatpush1.msra.mxu1 %v8297_v0  ;;  %v1583_v4 = vmul.f32 6.0, %v8304_v13  ;;  %v6390_v7 = vsub.f32 %v1655_v8, %v6349_v41  ;;  %v6396_v52 = vand.u32 4294901760, %v1654_v32  ;;  %v8315_v8 = vld [vmem:[#allocation135_spill] sm:$0xff]  ;;  %v8320_v13 = vld [vmem:[#allocation5_spill] sm:$0xff]  ;;  %v1581_v48 = vmul.f32 6.0, %v8328_v60 }
 0x228   : > { %v6365_v40 = vsub.f32 %v6288_v29, %v8294_v16  ;;  %2460 = vmatpush1.msra.mxu0 %v8296_v11  ;;  %v6375_v26 = vsub.f32 %v6262_v31, %v8298_v22  ;;  %v8300_v16 = vand.u32 4294901760, %v8299_v44  ;;  %2558 = vmatprep.subr.mxu1 %v8301_v18  ;;  %8302 = vst [vmem:[#allocation95_spill] sm:$0xff] %v6381_v53  ;;  %v8303_v11 = vld [vmem:[#allocation63_spill] sm:$0xff]  ;;  %v8307_v22 = vld [vmem:[#allocation80_spill] sm:$0xff]  ;;  %v4484_v44 = vadd.f32 -2.0, %v1586_v9 }
 0x229   : > { %v1651_v0 = vmul.f32 %v4485_v30, %v8303_v11  ;;  %2560 = vmatpush1.msra.mxu1 %v8307_v22  ;;  %8308 = vst [vmem:[#allocation84_spill] sm:$0xff] %v6390_v7  ;;  %v4483_v18 = vadd.f32 -2.0, %v1585_v45  ;;  %v8310_v31 = vand.u32 4294901760, %v8309_v57  ;;  %v8311_v30 = vld [vmem:[#allocation74_spill] sm:$0xff]  ;;  %8312 = vst [vmem:[#allocation130_spill] sm:$0xff] %v6396_v52  ;;  %v8314_v22 = vld [vmem:[#allocation41_spill] sm:$0xff] }
 0x22a   : > { %2464 = vmatprep.subr.mxu0 %v8300_v16  ;;  %2562 = vmatprep.subr.mxu1 %v8311_v30  ;;  %v1584_v11 = vmul.f32 6.0, %v8314_v22  ;;  %v8316_v29 = vand.u32 4294901760, %v8315_v8  ;;  %v8317_v57 = vand.u32 4294901760, %v6334_v38  ;;  %v6414_v30 = vsub.f32 %v1656_v43, %v6359_v58  ;;  %v8324_v22 = vld [vmem:[#allocation69_spill] sm:$0xff]  ;;  %v8325_v43 = vld [vmem:[#allocation64_spill] sm:$0xff] }
 0x22b   : > { %2468 = vmatpush1.msra.mxu0 %v8306_v50  ;;  %v6400_v50 = vmul.f32 %v4486_v15, %v8313_v1  ;;  %v8319_v15 = vld [vmem:[#allocation75_spill] sm:$0xff]  ;;  %v6421_v8 = vand.u32 4294901760, %v1651_v0  ;;  %v8323_v45 = vand.u32 4294901760, %v6340_v46  ;;  %v6431_v9 = vmul.f32 %v4484_v44, %v8325_v43 }
 0x22c   : > { %2472 = vmatprep.subr.mxu0 %v8310_v31  ;;  %v6410_v31 = vsub.f32 %v6334_v38, %v8317_v57  ;;  %8318 = vst [vmem:[#allocation85_spill] sm:$0xff] %v6414_v30  ;;  %2564 = vmatpush1.msra.mxu1 %v8319_v15  ;;  %v4481_v57 = vadd.f32 -2.0, %v1583_v4  ;;  %v8326_v15 = vand.u32 4294901760, %v6353_v28  ;;  %v8327_v1 = vld [vmem:[#allocation59_spill] sm:$0xff]  ;;  %v6447_v43 = vsub.f32 %v1654_v32, %v6396_v52 }
 0x22d   : > { %2476 = vmatpush1.msra.mxu0 %v8316_v29  ;;  %v6419_v29 = vsub.f32 %v1653_v35, %v6381_v53  ;;  %8322 = vst [vmem:[#allocation78_spill] sm:$0xff] %v6421_v8  ;;  %v6426_v16 = vsub.f32 %v6340_v46, %v8323_v45  ;;  %2566 = vmatprep.subr.mxu1 %v8324_v22  ;;  %v6443_v4 = vand.u32 4294901760, %v6400_v50  ;;  %v4482_v22 = vadd.f32 -2.0, %v1584_v11  ;;  %v8329_v45 = vld [vmem:[#allocation38_spill] sm:$0xff] }
 0x22e   : > { %2511 = vmatmul.mubr.f32.vlgmr.msra.gmra.mxu0 %v8320_v13  ;;  %2625 = vmatprep.subr.mxu0 %v6154_v37  ;;  %v6436_v35 = vsub.f32 %v6353_v28, %v8326_v15  ;;  %v1649_v38 = vmul.f32 %v4483_v18, %v8327_v1  ;;  %v1582_v44 = vmul.f32 6.0, %v8329_v45  ;;  %v8330_v46 = vld [vmem:[#allocation70_spill] sm:$0xff]  ;;  %v8331_v15 = vand.u32 4294901760, %v6343_v24  ;;  %v8332_v45 = vld [vmem:[#allocation61_spill] sm:$0xff]  ;;  %v8333_v1 = vld [vmem:[#allocation35_spill] sm:$0xff] }
 0x22f   : > { %8321 = vst [vmem:[#allocation131_spill] sm:$0xff] %v6419_v29  ;;  %2568 = vmatpush1.msra.mxu1 %v5577_v56  ;;  %2627 = vmatpush1.msra.mxu0 %v6156_v3  ;;  %v6462_v32 = vsub.f32 %v1651_v0, %v6421_v8  ;;  %v1647_v18 = vmul.f32 %v4481_v57, %v8332_v45  ;;  %v4479_v60 = vadd.f32 -2.0, %v1581_v48  ;;  %v8336_v0 = vld [vmem:[#allocation60_spill] sm:$0xff]  ;;  %v8339_v48 = vand.u32 4294901760, %v6414_v30 }
 0x230   : > { %2570 = vmatprep.subr.mxu1 %v8330_v46  ;;  %2629 = vmatprep.subr.mxu0 %v6164_v59  ;;  %v6455_v56 = vsub.f32 %v6343_v24, %v8331_v15  ;;  %v1580_v59 = vmul.f32 6.0, %v8333_v1  ;;  %v6470_v15 = vand.u32 4294901760, %v6431_v9  ;;  %v6473_v11 = vand.u32 4294901760, %v1649_v38  ;;  %v8337_v1 = vld [vmem:[#allocation34_spill] sm:$0xff] }
 0x231   : > { %2572 = vmatpush1.msra.mxu1 %v8211_v20  ;;  %2631 = vmatpush1.msra.mxu0 %v6166_v10  ;;  %v6478_v57 = vmul.f32 %v4482_v22, %v8336_v0  ;;  %v4480_v46 = vadd.f32 -2.0, %v1582_v44  ;;  %v1579_v45 = vmul.f32 6.0, %v8337_v1  ;;  %v8341_v44 = vld [vmem:[#allocation33_spill] sm:$0xff]  ;;  %v8342_v0 = vld [vmem:[#allocation52_spill] sm:$0xff] }
 0x232   : > { %2574 = vmatprep.subr.mxu1 %v8214_v34  ;;  %2633 = vmatprep.subr.mxu0 %v6209_v6  ;;  %8334 = vst [vmem:[#allocation132_spill] sm:$0xff] %v6470_v15  ;;  %8335 = vst [vmem:[#allocation79_spill] sm:$0xff] %v6473_v11  ;;  %v8338_v6 = vld [vmem:[#allocation57_spill] sm:$0xff]  ;;  %v1578_v34 = vmul.f32 6.0, %v8341_v44  ;;  %v4478_v1 = vadd.f32 -2.0, %v1580_v59  ;;  %v8349_v59 = vand.u32 4294901760, %v6245_v2 }
 0x233   : > { %2576 = vmatpush1.msra.mxu1 %v5551_v14  ;;  %2635 = vmatpush1.msra.mxu0 %v6203_v25  ;;  %v6488_v14 = vsub.f32 %v6414_v30, %v8339_v48  ;;  %v8340_v25 = vand.u32 4294901760, %v6390_v7  ;;  %v8346_v48 = vld [vmem:[#allocation56_spill] sm:$0xff]  ;;  %v6517_v20 = vand.u32 4294901760, %v6478_v57 }
 0x234   : > { %2578 = vmatprep.subr.mxu1 %v8338_v6  ;;  %2637 = vmatprep.subr.mxu0 %v6235_v17  ;;  %v6498_v6 = vand.u32 4294901760, %v1647_v18  ;;  %v8344_v17 = vld [vmem:[#allocation31_spill] sm:$0xff]  ;;  %v1645_v44 = vmul.f32 %v4479_v60, %v8346_v48  ;;  %v4477_v48 = vadd.f32 -2.0, %v1579_v45  ;;  %v8355_v45 = vand.u32 4294901760, %v6274_v54 }
 0x235   : > { %v6493_v22 = vsub.f32 %v6390_v7, %v8340_v25  ;;  %2580 = vmatpush1.msra.mxu1 %v8342_v0  ;;  %v1577_v10 = vmul.f32 6.0, %v8344_v17  ;;  %2639 = vmatpush1.msra.mxu0 %v6219_v23  ;;  %v6505_v25 = vsub.f32 %v1649_v38, %v6473_v11  ;;  %v6510_v0 = vsub.f32 %v6400_v50, %v6443_v4  ;;  %v8348_v7 = vld [vmem:[#allocation27_spill] sm:$0xff] }
 0x236   : > { %8343 = vst [vmem:[#allocation133_spill] sm:$0xff] %v6498_v6  ;;  %2615 = vmatmul.mubr.f32.vlgmr.msra.gmra.mxu1 %v8320_v13  ;;  %v1576_v30 = vmul.f32 6.0, %v8348_v7  ;;  %2641 = vmatprep.subr.mxu0 %v6284_v19  ;;  %8350 = vst [vmem:[#allocation74_spill] sm:$0xff] %v6517_v20  ;;  %v8351_v13 = vld [vmem:[#allocation55_spill] sm:$0xff]  ;;  %v8352_v38 = vand.u32 4294901760, %v6447_v43  ;;  %v8353_v50 = vand.u32 4294901760, %v6250_v12  ;;  %v6540_v12 = vsub.f32 %v1647_v18, %v6498_v6 }
 0x237   : > { %8345 = vst [vmem:[#allocation80_spill] sm:$0xff] %v6505_v25  ;;  %8347 = vst [vmem:[#allocation134_spill] sm:$0xff] %v6510_v0  ;;  %2737 = vmatprep.subr.mxu1 %v8349_v59  ;;  %v1646_v17 = vmul.f32 %v4480_v46, %v8351_v13  ;;  %2643 = vmatpush1.msra.mxu0 %v6300_v61  ;;  %v4476_v59 = vadd.f32 -2.0, %v1578_v34  ;;  %v6533_v46 = vld [vmem:[%s7653_s2] sm:$0xff]  ;;  %v8358_v34 = vld [vmem:[#allocation49_spill] sm:$0xff]  ;;  %v4475_v7 = vadd.f32 -2.0, %v1577_v10 }
 0x238   : > { %v6523_v60 = vsub.f32 %v6447_v43, %v8352_v38  ;;  %2743 = vmatpush1.msra.mxu1 %v8353_v50  ;;  %8354 = vst [vmem:[#allocation135_spill] sm:$0xff] %v6533_v46  ;;  %v2622_v13 = vrot.slane %v6533_v46, 2  ;;  %2645 = vmatprep.subr.mxu0 %v6308_v39  ;;  %8356 = vst [vmem:[#allocation75_spill] sm:$0xff] %v6540_v12  ;;  %v8357_v38 = vand.u32 4294901760, %v6419_v29  ;;  %v8359_v46 = vand.u32 4294901760, %v6279_v49  ;;  %v8364_v49 = vld [vmem:[#allocation50_spill] sm:$0xff] }
 0x239   : > { %2749 = vmatprep.subr.mxu1 %v8355_v45  ;;  %v1644_v2 = vmul.f32 %v4478_v1, %v8358_v34  ;;  %2647 = vmatpush1.msra.mxu0 %v6302_v33  ;;  %v6551_v39 = vand.u32 4294901760, %v1645_v44  ;;  %v6556_v18 = vsub.f32 %v6431_v9, %v6470_v15  ;;  %v4474_v45 = vadd.f32 -2.0, %v1576_v30  ;;  %v8366_v30 = vld [vmem:[#allocation51_spill] sm:$0xff] }
 0x23a   : > { %v6545_v50 = vsub.f32 %v6419_v29, %v8357_v38  ;;  %2755 = vmatpush1.msra.mxu1 %v8359_v46  ;;  %2649 = vmatprep.subr.mxu0 %v6359_v58  ;;  %v8362_v38 = vand.u32 4294901760, %v6325_v27  ;;  %v6561_v10 = vand.u32 4294901760, %v1646_v17  ;;  %v2820_v1 = vand.u32 4294901760, %v6523_v60  ;;  %v8373_v9 = vld [vmem:[#allocation43_spill] sm:$0xff] }
 0x23b   : > { %8360 = vst [vmem:[#allocation5_spill] sm:$0xff] %v6551_v39  ;;  %8361 = vst [vmem:[#allocation69_spill] sm:$0xff] %v6556_v18  ;;  %v1643_v46 = vmul.f32 %v4477_v48, %v8364_v49  ;;  %v4473_v34 = vadd.f32 -2.0, %v6256_v36  ;;  %2651 = vmatpush1.msra.mxu0 %v6349_v41  ;;  %v8365_v54 = vand.u32 4294901760, %v6330_v55  ;;  %v1642_v58 = vmul.f32 %v4476_v59, %v8366_v30  ;;  %v8369_v49 = vld [vmem:[#allocation47_spill] sm:$0xff] }
 0x23c   : > { %2761 = vmatprep.subr.mxu1 %v8362_v38  ;;  %8363 = vst [vmem:[#allocation70_spill] sm:$0xff] %v6561_v10  ;;  %v4472_v27 = vadd.f32 -2.0, %v6214_v21  ;;  %v6572_v38 = vand.u32 4294901760, %v2622_v13  ;;  %2653 = vmatprep.subr.mxu0 %v6396_v52  ;;  %v8368_v60 = vand.u32 4294901760, %v6365_v40  ;;  %v2826_v36 = vand.u32 4294901760, %v6545_v50 }
 0x23d   : > { %2767 = vmatpush1.msra.mxu1 %v8365_v54  ;;  %v6578_v48 = vand.u32 4294901760, %v1644_v2  ;;  %v1641_v55 = vmul.f32 %v4475_v7, %v8369_v49  ;;  %v6583_v54 = vsub.f32 %v6478_v57, %v6517_v20  ;;  %2655 = vmatpush1.msra.mxu0 %v6381_v53  ;;  %v8371_v21 = vand.u32 4294901760, %v6375_v26 }
 0x23e   : > { %8367 = vst [vmem:[#allocation57_spill] sm:$0xff] %v6572_v38  ;;  %2773 = vmatprep.subr.mxu1 %v8368_v60  ;;  %v6589_v59 = vsub.f32 %v1645_v44, %v6551_v39  ;;  %v8372_v40 = vand.u32 4294901760, %v6510_v0  ;;  %v1640_v7 = vmul.f32 %v4474_v45, %v8373_v9  ;;  %2657 = vmatprep.subr.mxu0 %v6443_v4  ;;  %v8374_v57 = vand.u32 4294901760, %v6410_v31 }
 0x23f   : > { %8370 = vst [vmem:[#allocation52_spill] sm:$0xff] %v6583_v54  ;;  %2779 = vmatpush1.msra.mxu1 %v8371_v21  ;;  %v6599_v49 = vand.u32 4294901760, %v1643_v46  ;;  %v8376_v21 = vld [vmem:[#allocation28_spill] sm:$0xff]  ;;  %v6604_v30 = vsub.f32 %v1646_v17, %v6561_v10  ;;  %2659 = vmatpush1.msra.mxu0 %v6421_v8  ;;  %v8379_v45 = vand.u32 4294901760, %v6462_v32  ;;  %v6612_v31 = vand.u32 4294901760, %v1642_v58 }
 0x240   : > { %v2831_v50 = vsub.f32 %v6510_v0, %v8372_v40  ;;  %2785 = vmatprep.subr.mxu1 %v8374_v57  ;;  %v1639_v44 = vmul.f32 %v4473_v34, %v8376_v21  ;;  %v8378_v40 = vand.u32 4294901760, %v6426_v16  ;;  %v8380_v57 = vld [vmem:[#allocation29_spill] sm:$0xff]  ;;  %v6616_v26 = vsub.f32 %v2622_v13, %v6572_v38  ;;  %2661 = vmatprep.subr.mxu0 %v6470_v15 }
 0x241   : > { %8375 = vst [vmem:[#allocation136_spill] sm:$0xff] %v6599_v49  ;;  %8377 = vst [vmem:[#allocation137_spill] sm:$0xff] %v6604_v30  ;;  %v2837_v60 = vsub.f32 %v6462_v32, %v8379_v45  ;;  %v1638_v9 = vmul.f32 %v4472_v27, %v8380_v57  ;;  %v8381_v17 = vand.u32 4294901760, %v6436_v35  ;;  %v6621_v34 = vand.u32 4294901760, %v1641_v55  ;;  %2663 = vmatpush1.msra.mxu0 %v6473_v11 }
 0x242   : > { %2791 = vmatpush1.msra.mxu1 %v8378_v40  ;;  %v8382_v40 = vld [vmem:[#allocation25_spill] sm:$0xff]  ;;  %v6627_v45 = vsub.f32 %v1644_v2, %v6578_v48  ;;  %v8384_v13 = vand.u32 4294901760, %v6455_v56  ;;  %v2832_v27 = vand.u32 4294901760, %v2831_v50  ;;  %v8385_v57 = vand.u32 4294901760, %v6556_v18  ;;  %2665 = vmatprep.subr.mxu0 %v6517_v20 }
 0x243   : > { %2797 = vmatprep.subr.mxu1 %v8381_v17  ;;  %v1637_v21 = vmul.f32 %v6221_v47, %v8382_v40  ;;  %v6635_v17 = vand.u32 4294901760, %v1640_v7  ;;  %v8386_v47 = vand.u32 4294901760, %v6488_v14  ;;  %v6642_v2 = vsub.f32 %v1643_v46, %v6599_v49  ;;  %2667 = vmatpush1.msra.mxu0 %v6498_v6 }
 0x244   : > { %8383 = vst [vmem:[#allocation138_spill] sm:$0xff] %v6627_v45  ;;  %2803 = vmatpush1.msra.mxu1 %v8384_v13  ;;  %v2843_v35 = vsub.f32 %v6556_v18, %v8385_v57  ;;  %v8388_v56 = vand.u32 4294901760, %v6505_v25  ;;  %v6647_v13 = vand.u32 4294901760, %v1639_v44  ;;  %v8389_v16 = vand.u32 4294901760, %v6493_v22  ;;  %2669 = vmatprep.subr.mxu0 %v6561_v10 }
 0x245   : > { %2809 = vmatprep.subr.mxu1 %v8386_v47  ;;  %8387 = vst [vmem:[#allocation139_spill] sm:$0xff] %v6642_v2  ;;  %v6653_v40 = vand.u32 4294901760, %v1638_v9  ;;  %v6658_v47 = vsub.f32 %v1642_v58, %v6612_v31  ;;  %v8391_v57 = vand.u32 4294901760, %v6583_v54  ;;  %2671 = vmatpush1.msra.mxu0 %v6551_v39  ;;  %v2838_v46 = vand.u32 4294901760, %v2837_v60 }
 0x246   : > { %v2849_v50 = vsub.f32 %v6505_v25, %v8388_v56  ;;  %2815 = vmatpush1.msra.mxu1 %v8389_v16  ;;  %v6662_v56 = vsub.f32 %v1641_v55, %v6621_v34  ;;  %v6667_v16 = vand.u32 4294901760, %v1637_v21  ;;  %v2844_v58 = vand.u32 4294901760, %v2843_v35  ;;  %2673 = vmatprep.subr.mxu0 %v6578_v48 }
 0x247   : > { %2821 = vmatprep.subr.mxu1 %v2820_v1  ;;  %v2855_v22 = vsub.f32 %v6583_v54, %v8391_v57  ;;  %v8392_v14 = vand.u32 4294901760, %v6540_v12  ;;  %v6675_v55 = vsub.f32 %v1640_v7, %v6635_v17  ;;  %v6679_v10 = vsub.f32 %v1639_v44, %v6647_v13  ;;  %2675 = vmatpush1.msra.mxu0 %v6599_v49 }
 0x248   : > { %8390 = vst [vmem:[#allocation140_spill] sm:$0xff] %v6662_v56  ;;  %2827 = vmatpush1.msra.mxu1 %v2826_v36  ;;  %v2850_v57 = vand.u32 4294901760, %v2849_v50  ;;  %v8395_v6 = vand.u32 4294901760, %v6604_v30  ;;  %v8396_v35 = vand.u32 4294901760, %v6589_v59  ;;  %v6694_v50 = vsub.f32 %v1638_v9, %v6653_v40  ;;  %2677 = vmatprep.subr.mxu0 %v6612_v31 }
 0x249   : > { %v2861_v1 = vsub.f32 %v6540_v12, %v8392_v14  ;;  %8393 = vst [vmem:[#allocation141_spill] sm:$0xff] %v6675_v55  ;;  %2833 = vmatprep.subr.mxu1 %v2832_v27  ;;  %8394 = vst [vmem:[#allocation142_spill] sm:$0xff] %v6679_v10  ;;  %v8397_v14 = vand.u32 4294901760, %v6616_v26  ;;  %v6698_v60 = vsub.f32 %v1637_v21, %v6667_v16  ;;  %2679 = vmatpush1.msra.mxu0 %v6621_v34 }
 0x24a   : > { %v2867_v36 = vsub.f32 %v6604_v30, %v8395_v6  ;;  %2839 = vmatpush1.msra.mxu1 %v2838_v46  ;;  %v2873_v7 = vsub.f32 %v6589_v59, %v8396_v35  ;;  %8398 = vst [vmem:[#allocation143_spill] sm:$0xff] %v6694_v50  ;;  %v2856_v6 = vand.u32 4294901760, %v2855_v22  ;;  %v8400_v46 = vand.u32 4294901760, %v6627_v45  ;;  %2681 = vmatprep.subr.mxu0 %v6635_v17 }
 0x24b   : > { %v2724_v27 = vsub.f32 %v6616_v26, %v8397_v14  ;;  %2845 = vmatprep.subr.mxu1 %v2844_v58  ;;  %8399 = vst [vmem:[#allocation144_spill] sm:$0xff] %v6698_v60  ;;  %v2862_v14 = vand.u32 4294901760, %v2861_v1  ;;  %v8401_v22 = vand.u32 4294901760, %v6642_v2  ;;  %2683 = vmatpush1.msra.mxu0 %v6647_v13  ;;  %v7911_v9 = vand.u32 4294901760, %v6694_v50 }
 0x24c   : > { %v2879_v35 = vsub.f32 %v6627_v45, %v8400_v46  ;;  %2851 = vmatpush1.msra.mxu1 %v2850_v57  ;;  %v2868_v58 = vand.u32 4294901760, %v2867_v36  ;;  %v2874_v46 = vand.u32 4294901760, %v2873_v7  ;;  %v8402_v57 = vand.u32 4294901760, %v6658_v47  ;;  %2685 = vmatprep.subr.mxu0 %v6653_v40 }
 0x24d   : > { %2857 = vmatprep.subr.mxu1 %v2856_v6  ;;  %v2885_v21 = vsub.f32 %v6642_v2, %v8401_v22  ;;  %v2725_v49 = vand.u32 4294901760, %v2724_v27  ;;  %v8403_v6 = vand.u32 4294901760, %v6662_v56  ;;  %v7910_v44 = vand.u32 4294901760, %v6698_v60  ;;  %2687 = vmatpush1.msra.mxu0 %v6667_v16 }
 0x24e   : > { %2863 = vmatpush1.msra.mxu1 %v2862_v14  ;;  %v2891_v1 = vsub.f32 %v6658_v47, %v8402_v57  ;;  %v2880_v36 = vand.u32 4294901760, %v2879_v35  ;;  %v8404_v7 = vand.u32 4294901760, %v6675_v55  ;;  %2720 = vmatprep.mubr.f32.mxu0 %v8198_v62 }
 0x24f   : > { %2869 = vmatprep.subr.mxu1 %v2868_v58  ;;  %v2897_v22 = vsub.f32 %v6662_v56, %v8403_v6  ;;  %v2886_v14 = vand.u32 4294901760, %v2885_v21  ;;  %v8405_v58 = vand.u32 4294901760, %v6679_v10  ;;  %2966 = vmatprep.subr.mxu0 %v6181_v51  ;;  %v2921_v21 = vsub.f32 %v6698_v60, %v7910_v44  ;;  %v8419_v44 = vld [vmem:[#allocation10_spill] sm:$0xff] }
 0x250   : > { %2875 = vmatpush1.msra.mxu1 %v2874_v46  ;;  %v2903_v27 = vsub.f32 %v6675_v55, %v8404_v7  ;;  %2726 = vmatmul.mubr.f32.vlgmr.msra.gmra.mxu0 %v2725_v49  ;;  %v2892_v57 = vand.u32 4294901760, %v2891_v1  ;;  %v2915_v46 = vsub.f32 %v6694_v50, %v7911_v9  ;;  %v8406_v1 = vld [vmem:[#allocation107_spill] sm:$0xff]  ;;  %v8420_v9 = vld [vmem:[#allocation102_spill] sm:$0xff] }
 0x251   : > { %2881 = vmatprep.subr.mxu1 %v2880_v36  ;;  %v2909_v35 = vsub.f32 %v6679_v10, %v8405_v58  ;;  %2969 = vmatpush1.msra.mxu0 %v6177_v42  ;;  %v2898_v6 = vand.u32 4294901760, %v2897_v22  ;;  %v2922_v22 = vand.u32 4294901760, %v2921_v21  ;;  %v8408_v58 = vld [vmem:[#allocation114_spill] sm:$0xff]  ;;  %v8414_v21 = vld [vmem:[#allocation85_spill] sm:$0xff] }
 0x252   : > { %2887 = vmatpush1.msra.mxu1 %v2886_v14  ;;  %2972 = vmatprep.subr.mxu0 %v6198_v5  ;;  %v2904_v36 = vand.u32 4294901760, %v2903_v27  ;;  %v2916_v7 = vand.u32 4294901760, %v2915_v46  ;;  %v8407_v14 = vld [vmem:[#allocation119_spill] sm:$0xff]  ;;  %v8410_v27 = vld [vmem:[#allocation65_spill] sm:$0xff] }
 0x253   : > { %2893 = vmatprep.subr.mxu1 %v2892_v57  ;;  %2975 = vmatpush1.msra.mxu0 %v6194_v63  ;;  %v2910_v49 = vand.u32 4294901760, %v2909_v35  ;;  %v8409_v57 = vld [vmem:[#allocation113_spill] sm:$0xff]  ;;  %v8411_v35 = vld [vmem:[#allocation66_spill] sm:$0xff]  ;;  %v8412_v46 = vld [vmem:[#allocation23_spill] sm:$0xff] }
 0x254   : > { %2899 = vmatpush1.msra.mxu1 %v2898_v6  ;;  %2978 = vmatprep.subr.mxu0 %v8406_v1  ;;  %v8413_v6 = vld [vmem:[#allocation127_spill] sm:$0xff] }
 0x255   : > { %2905 = vmatprep.subr.mxu1 %v2904_v36  ;;  %2981 = vmatpush1.msra.mxu0 %v8407_v14  ;;  %v8415_v36 = vld [vmem:[#allocation124_spill] sm:$0xff] }
 0x256   : > { %2911 = vmatpush1.msra.mxu1 %v2910_v49  ;;  %2984 = vmatprep.subr.mxu0 %v8408_v58  ;;  %v8416_v49 = vld [vmem:[#allocation84_spill] sm:$0xff] }
 0x257   : > { %2917 = vmatprep.subr.mxu1 %v2916_v7  ;;  %2987 = vmatpush1.msra.mxu0 %v8409_v57  ;;  %v8417_v7 = vld [vmem:[#allocation121_spill] sm:$0xff] }
 0x258   : > { %2923 = vmatpush1.msra.mxu1 %v2922_v22  ;;  %2956 = vmatprep.mubr.f32.mxu1 %v8198_v62  ;;  %v8418_v22 = vld [vmem:[#allocation112_spill] sm:$0xff] }
 0x259   : > { %2990 = vmatprep.subr.mxu0 %v8410_v27  ;;  %3102 = vmatprep.subr.mxu1 %v6154_v37 }
 0x25a   : > { %2958 = vmatmul.mubr.f32.vlgmr.msra.gmra.mxu1 %v6572_v38  ;;  %2993 = vmatpush1.msra.mxu0 %v8411_v35  ;;  %v1699_v38 = vmul.f32 24.0, %v8420_v9  ;;  %v8424_v9 = vld [vmem:[#allocation96_spill] sm:$0xff] }
 0x25b   : > { %3104 = vmatpush1.msra.mxu1 %v6156_v3  ;;  %2996 = vmatprep.subr.mxu0 %v6353_v28 }
 0x25c   : > { %3106 = vmatprep.subr.mxu1 %v8412_v46  ;;  %2999 = vmatpush1.msra.mxu0 %v6343_v24 }
 0x25d   : > { %3108 = vmatpush1.msra.mxu1 %v8413_v6  ;;  %3002 = vmatprep.subr.mxu0 %v8414_v21 }
 0x25e   : > { %3110 = vmatprep.subr.mxu1 %v8415_v36  ;;  %3005 = vmatpush1.msra.mxu0 %v8416_v49 }
 0x25f   : > { %3112 = vmatpush1.msra.mxu1 %v8417_v7  ;;  %3008 = vmatprep.subr.mxu0 %v6447_v43 }
 0x260   : > { %3114 = vmatprep.subr.mxu1 %v8418_v22  ;;  %3011 = vmatpush1.msra.mxu0 %v6419_v29  ;;  %v8421_v29 = vld [vmem:[#allocation110_spill] sm:$0xff] }
 0x261   : > { %3116 = vmatpush1.msra.mxu1 %v6219_v23  ;;  %3014 = vmatprep.subr.mxu0 %v6510_v0  ;;  %v1700_v23 = vmul.f32 24.0, %v8421_v29  ;;  %v8422_v0 = vld [vmem:[#allocation129_spill] sm:$0xff]  ;;  %v8426_v29 = vld [vmem:[#allocation118_spill] sm:$0xff] }
 0x262   : > { %3118 = vmatprep.subr.mxu1 %v6284_v19  ;;  %3017 = vmatpush1.msra.mxu0 %v6462_v32 }
 0x263   : > { %3120 = vmatpush1.msra.mxu1 %v6300_v61  ;;  %3020 = vmatprep.subr.mxu0 %v6556_v18  ;;  %v8425_v61 = vld [vmem:[#allocation83_spill] sm:$0xff] }
 0x264   : > { %3122 = vmatprep.subr.mxu1 %v8419_v44  ;;  %3023 = vmatpush1.msra.mxu0 %v6505_v25  ;;  %v8423_v44 = vld [vmem:[#allocation111_spill] sm:$0xff]  ;;  %v1731_v25 = vsub.f32 16.0, %v1699_v38  ;;  %v8429_v38 = vld [vmem:[#allocation77_spill] sm:$0xff] }
 0x265   : > { %3124 = vmatpush1.msra.mxu1 %v6302_v33  ;;  %3026 = vmatprep.subr.mxu0 %v6583_v54  ;;  %v1571_v18 = vmul.f32 %v8424_v9, %v8423_v44  ;;  %v1697_v33 = vmul.f32 24.0, %v8425_v61  ;;  %v1695_v61 = vmul.f32 24.0, %v8429_v38  ;;  %v8430_v9 = vld [vmem:[#allocation93_spill] sm:$0xff]  ;;  %v8434_v38 = vld [vmem:[#allocation103_spill] sm:$0xff] }
 0x266   : > { %3126 = vmatprep.subr.mxu1 %v8422_v0  ;;  %3029 = vmatpush1.msra.mxu0 %v6540_v12  ;;  %v8427_v0 = vld [vmem:[#allocation105_spill] sm:$0xff]  ;;  %v1732_v12 = vsub.f32 16.0, %v1700_v23 }
 0x267   : > { %3128 = vmatpush1.msra.mxu1 %v6349_v41  ;;  %3032 = vmatprep.subr.mxu0 %v6604_v30  ;;  %v1572_v54 = vmul.f32 %v8427_v0, %v8426_v29  ;;  %v8428_v30 = vld [vmem:[#allocation92_spill] sm:$0xff]  ;;  %v1763_v44 = vmul.f32 %v1731_v25, %v1571_v18  ;;  %v1729_v29 = vsub.f32 16.0, %v1697_v33  ;;  %v8436_v33 = vld [vmem:[#allocation133_spill] sm:$0xff] }
 0x268   : > { %3130 = vmatprep.subr.mxu1 %v6396_v52  ;;  %3035 = vmatpush1.msra.mxu0 %v6589_v59  ;;  %v1698_v52 = vmul.f32 24.0, %v8428_v30  ;;  %v8431_v0 = vld [vmem:[#allocation76_spill] sm:$0xff] }
 0x269   : > { %3132 = vmatpush1.msra.mxu1 %v6381_v53  ;;  %3038 = vmatprep.subr.mxu0 %v6627_v45  ;;  %v1569_v23 = vmul.f32 %v8431_v0, %v8430_v9  ;;  %v8432_v45 = vld [vmem:[#allocation72_spill] sm:$0xff]  ;;  %v1764_v30 = vmul.f32 %v1732_v12, %v1572_v54  ;;  %v8438_v9 = vld [vmem:[#allocation62_spill] sm:$0xff] }
 0x26a   : > { %3134 = vmatprep.subr.mxu1 %v6443_v4  ;;  %3041 = vmatpush1.msra.mxu0 %v6642_v2  ;;  %v1696_v53 = vmul.f32 24.0, %v8432_v45  ;;  %v8433_v2 = vld [vmem:[#allocation89_spill] sm:$0xff]  ;;  %v1730_v18 = vsub.f32 16.0, %v1698_v52  ;;  %v8437_v45 = vld [vmem:[#allocation100_spill] sm:$0xff]  ;;  %v8440_v54 = vld [vmem:[#allocation70_spill] sm:$0xff] }
 0x26b   : > { %3136 = vmatpush1.msra.mxu1 %v6421_v8  ;;  %3044 = vmatprep.subr.mxu0 %v6658_v47  ;;  %v1693_v8 = vmul.f32 24.0, %v8433_v2  ;;  %v1567_v0 = vmul.f32 %v8438_v9, %v8437_v45  ;;  %v6809_v2 = vand.u32 4294901760, %v1763_v44  ;;  %v8444_v45 = vld [vmem:[#allocation71_spill] sm:$0xff] }
 0x26c   : > { %3138 = vmatprep.subr.mxu1 %v6470_v15  ;;  %3047 = vmatpush1.msra.mxu0 %v6662_v56  ;;  %v8435_v15 = vld [vmem:[#allocation86_spill] sm:$0xff]  ;;  %v1727_v56 = vsub.f32 16.0, %v1695_v61  ;;  %v8443_v61 = vld [vmem:[#allocation108_spill] sm:$0xff] }
 0x26d   : > { %3140 = vmatpush1.msra.mxu1 %v6473_v11  ;;  %3050 = vmatprep.subr.mxu0 %v6675_v55  ;;  %v1570_v25 = vmul.f32 %v8435_v15, %v8434_v38  ;;  %v8439_v11 = vld [vmem:[#allocation82_spill] sm:$0xff]  ;;  %v8442_v15 = vld [vmem:[#allocation67_spill] sm:$0xff]  ;;  %v1728_v38 = vsub.f32 16.0, %v1696_v53  ;;  %v1725_v9 = vsub.f32 16.0, %v1693_v8  ;;  %v8450_v8 = vand.u32 4294901760, %v6177_v42 }
 0x26e   : > { %3142 = vmatprep.subr.mxu1 %v6517_v20  ;;  %3053 = vmatpush1.msra.mxu0 %v6679_v10  ;;  %v1694_v12 = vmul.f32 24.0, %v8439_v11  ;;  %v1761_v20 = vmul.f32 %v1729_v29, %v1569_v23  ;;  %v8441_v55 = vld [vmem:[#allocation94_spill] sm:$0xff]  ;;  %v1565_v11 = vmul.f32 %v8444_v45, %v8443_v61  ;;  %v1759_v53 = vmul.f32 %v1727_v56, %v1567_v0  ;;  %v8447_v29 = vld [vmem:[#allocation104_spill] sm:$0xff]  ;;  %v8455_v45 = vld [vmem:[#allocation53_spill] sm:$0xff] }
 0x26f   : > { %3144 = vmatpush1.msra.mxu1 %v8436_v33  ;;  %3056 = vmatprep.subr.mxu0 %v6694_v50  ;;  %v1568_v52 = vmul.f32 %v8442_v15, %v8441_v55  ;;  %v6815_v33 = vand.u32 4294901760, %v1764_v30  ;;  %v8445_v50 = vld [vmem:[#allocation88_spill] sm:$0xff]  ;;  %v1762_v23 = vmul.f32 %v1730_v18, %v1570_v25  ;;  %v8446_v55 = vand.u32 4294901760, %v6181_v51  ;;  %v8448_v15 = vld [vmem:[#allocation58_spill] sm:$0xff]  ;;  %v8452_v51 = vld [vmem:[#allocation99_spill] sm:$0xff] }
 0x270   : > { %3146 = vmatprep.subr.mxu1 %v8440_v54  ;;  %3059 = vmatpush1.msra.mxu0 %v6698_v60  ;;  %v1692_v10 = vmul.f32 24.0, %v8445_v50  ;;  %v1726_v60 = vsub.f32 16.0, %v1694_v12  ;;  %v8449_v54 = vld [vmem:[#allocation136_spill] sm:$0xff]  ;;  %v6831_v50 = vsub.f32 %v1763_v44, %v6809_v2  ;;  %v6833_v61 = vand.u32 4294901760, %v1761_v20  ;;  %v8454_v12 = vld [vmem:[#allocation109_spill] sm:$0xff] }
 0x271   : > { %3148 = vmatpush1.msra.mxu1 %v6551_v39  ;;  %3092 = vmatprep.mubr.f32.mxu0 %v8198_v62  ;;  %v1566_v39 = vmul.f32 %v8448_v15, %v8447_v29  ;;  %v1760_v25 = vmul.f32 %v1728_v38, %v1568_v52  ;;  %v1691_v18 = vmul.f32 24.0, %v8452_v51  ;;  %v8453_v56 = vand.u32 4294901760, %v6198_v5  ;;  %v8458_v38 = vld [vmem:[#allocation106_spill] sm:$0xff]  ;;  %v8465_v51 = vld [vmem:[#allocation81_spill] sm:$0xff] }
 0x272   : > { %3150 = vmatprep.subr.mxu1 %v6578_v48  ;;  %3210 = vmatprep.subr.mxu0 %v8446_v55  ;;  %8451 = vst [vmem:[#allocation107_spill] sm:$0xff] %v6831_v50  ;;  %v1757_v0 = vmul.f32 %v1725_v9, %v1565_v11  ;;  %v1564_v55 = vmul.f32 %v8455_v45, %v8454_v12  ;;  %v1724_v29 = vsub.f32 16.0, %v1692_v10  ;;  %v8457_v44 = vand.u32 4294901760, %v6194_v63 }
 0x273   : > { %3095 = vmatmul.mubr.f32.vlgmr.msra.gmra.mxu0 %v6616_v26  ;;  %3152 = vmatpush1.msra.mxu1 %v8449_v54  ;;  %v6842_v42 = vsub.f32 %v1764_v30, %v6815_v33  ;;  %v6847_v52 = vand.u32 4294901760, %v1762_v23  ;;  %v1689_v15 = vmul.f32 24.0, %v8458_v38  ;;  %v8459_v5 = vand.u32 4294901760, %v8406_v1 }
 0x274   : > { %3214 = vmatpush1.msra.mxu0 %v8450_v8  ;;  %3154 = vmatprep.subr.mxu1 %v6612_v31  ;;  %v6853_v11 = vand.u32 4294901760, %v1759_v53  ;;  %v1758_v10 = vmul.f32 %v1726_v60, %v1566_v39  ;;  %v8461_v30 = vand.u32 4294901760, %v8407_v14  ;;  %v6859_v63 = vsub.f32 %v1761_v20, %v6833_v61  ;;  %v8464_v8 = vld [vmem:[#allocation115_spill] sm:$0xff] }
 0x275   : > { %3218 = vmatprep.subr.mxu0 %v8453_v56  ;;  %8456 = vst [vmem:[#allocation119_spill] sm:$0xff] %v6842_v42  ;;  %3156 = vmatpush1.msra.mxu1 %v6621_v34  ;;  %v6861_v9 = vand.u32 4294901760, %v1760_v25  ;;  %v1563_v56 = vmul.f32 %v8465_v51, %v8464_v8  ;;  %v1723_v12 = vsub.f32 16.0, %v1691_v18  ;;  %v8466_v1 = vand.u32 4294901760, %v8408_v58  ;;  %v8471_v58 = vld [vmem:[#allocation123_spill] sm:$0xff] }
 0x276   : > { %3222 = vmatpush1.msra.mxu0 %v8457_v44  ;;  %3158 = vmatprep.subr.mxu1 %v6635_v17  ;;  %8460 = vst [vmem:[#allocation114_spill] sm:$0xff] %v6853_v11  ;;  %8462 = vst [vmem:[#allocation113_spill] sm:$0xff] %v6859_v63  ;;  %v6868_v39 = vand.u32 4294901760, %v1757_v0  ;;  %v6870_v60 = vmul.f32 %v1724_v29, %v1564_v55  ;;  %v7939_v14 = vand.u32 4294901760, %v6842_v42  ;;  %v8468_v45 = vand.u32 4294901760, %v8409_v57  ;;  %v8469_v44 = vld [vmem:[#allocation98_spill] sm:$0xff] }
 0x277   : > { %3226 = vmatprep.subr.mxu0 %v8459_v5  ;;  %3160 = vmatpush1.msra.mxu1 %v6647_v13  ;;  %8463 = vst [vmem:[#allocation65_spill] sm:$0xff] %v6861_v9  ;;  %v1690_v18 = vmul.f32 24.0, %v8469_v44  ;;  %v6879_v38 = vsub.f32 %v1762_v23, %v6847_v52  ;;  %v8472_v5 = vld [vmem:[#allocation91_spill] sm:$0xff]  ;;  %v1721_v8 = vsub.f32 16.0, %v1689_v15  ;;  %v8473_v55 = vand.u32 4294901760, %v8410_v27  ;;  %v8476_v57 = vld [vmem:[#allocation97_spill] sm:$0xff] }
 0x278   : > { %3230 = vmatpush1.msra.mxu0 %v8461_v30  ;;  %3162 = vmatprep.subr.mxu1 %v6653_v40  ;;  %8467 = vst [vmem:[#allocation66_spill] sm:$0xff] %v6868_v39  ;;  %v1561_v30 = vmul.f32 %v8472_v5, %v8471_v58  ;;  %v6887_v29 = vsub.f32 %v1759_v53, %v6853_v11  ;;  %v6889_v51 = vand.u32 4294901760, %v1758_v10  ;;  %v8477_v23 = vand.u32 4294901760, %v6616_v26  ;;  %v8478_v44 = vld [vmem:[#allocation116_spill] sm:$0xff]  ;;  %v8480_v5 = vld [vmem:[#allocation101_spill] sm:$0xff] }
 0x279   : > { %3234 = vmatprep.subr.mxu0 %v8466_v1  ;;  %3164 = vmatpush1.msra.mxu1 %v6667_v16  ;;  %8470 = vst [vmem:[#allocation23_spill] sm:$0xff] %v6879_v38  ;;  %v1687_v1 = vmul.f32 24.0, %v8476_v57  ;;  %v8479_v15 = vld [vmem:[#allocation48_spill] sm:$0xff]  ;;  %v1688_v20 = vmul.f32 24.0, %v8480_v5  ;;  %v6899_v27 = vsub.f32 %v1760_v25, %v6861_v9  ;;  %v8482_v53 = vand.u32 4294901760, %v8411_v35 }
 0x27a   : > { %3238 = vmatpush1.msra.mxu0 %v8468_v45  ;;  %3197 = vmatprep.mubr.f32.mxu1 %v8198_v62  ;;  %8474 = vst [vmem:[#allocation127_spill] sm:$0xff] %v6887_v29  ;;  %8475 = vst [vmem:[#allocation85_spill] sm:$0xff] %v6889_v51  ;;  %v1755_v45 = vmul.f32 %v1723_v12, %v1563_v56  ;;  %v1562_v58 = vmul.f32 %v8479_v15, %v8478_v44  ;;  %v8485_v56 = vand.u32 4294901760, %v6831_v50  ;;  %v8488_v44 = vld [vmem:[#allocation128_spill] sm:$0xff]  ;;  %v8489_v15 = vld [vmem:[#allocation39_spill] sm:$0xff] }
 0x27b   : > { %3242 = vmatprep.subr.mxu0 %v8473_v55  ;;  %3376 = vmatprep.subr.mxu1 %v6154_v37  ;;  %8481 = vst [vmem:[#allocation124_spill] sm:$0xff] %v6899_v27  ;;  %v6905_v55 = vsub.f32 %v1757_v0, %v6868_v39  ;;  %v6908_v37 = vand.u32 4294901760, %v6870_v60  ;;  %v6913_v26 = vsub.f32 %v6842_v42, %v7939_v14  ;;  %v8486_v35 = vand.u32 4294901760, %v6353_v28  ;;  %v8555_v42 = vld [vmem:[#allocation140_spill] sm:$0xff] }
 0x27c   : > { %3201 = vmatmul.mubr.f32.vlgmr.msra.gmra.mxu1 %v8477_v23  ;;  %3246 = vmatpush1.msra.mxu0 %v8482_v53  ;;  %v6918_v25 = vsub.f32 %v6831_v50, %v8485_v56  ;;  %v7938_v0 = vand.u32 4294901760, %v6879_v38  ;;  %v1753_v12 = vmul.f32 %v1721_v8, %v1561_v30  ;;  %v7940_v57 = vand.u32 4294901760, %v6859_v63  ;;  %v8490_v56 = vld [vmem:[#allocation87_spill] sm:$0xff]  ;;  %v8494_v30 = vld [vmem:[#allocation44_spill] sm:$0xff] }
 0x27d   : > { %3378 = vmatpush1.msra.mxu1 %v6156_v3  ;;  %8483 = vst [vmem:[#allocation84_spill] sm:$0xff] %v6905_v55  ;;  %8484 = vst [vmem:[#allocation121_spill] sm:$0xff] %v6908_v37  ;;  %3250 = vmatprep.subr.mxu0 %v8486_v35  ;;  %v1722_v3 = vsub.f32 16.0, %v1690_v18  ;;  %v8487_v23 = vand.u32 4294901760, %v6343_v24  ;;  %v1559_v5 = vmul.f32 %v8489_v15, %v8488_v44  ;;  %v1719_v53 = vsub.f32 16.0, %v1687_v1  ;;  %v8493_v24 = vld [vmem:[#allocation125_spill] sm:$0xff] }
 0x27e   : > { %3380 = vmatprep.subr.mxu1 %v8412_v46  ;;  %v1686_v28 = vmul.f32 24.0, %v8490_v56  ;;  %v6932_v35 = vsub.f32 %v1758_v10, %v6889_v51  ;;  %v8492_v46 = vand.u32 4294901760, %v8414_v21  ;;  %v6937_v18 = vand.u32 4294901760, %v1755_v45  ;;  %v8517_v10 = vld [vmem:[#allocation80_spill] sm:$0xff]  ;;  %3367 = vmatprep.mubr.f32.mxu0 %v8198_v62 }
 0x27f   : > { %3254 = vmatpush1.msra.mxu0 %v8487_v23  ;;  %3382 = vmatpush1.msra.mxu1 %v8413_v6  ;;  %v1560_v8 = vmul.f32 %v8494_v30, %v8493_v24  ;;  %v1720_v6 = vsub.f32 16.0, %v1688_v20  ;;  %v7941_v23 = vand.u32 4294901760, %v6899_v27  ;;  %v8495_v1 = vand.u32 4294901760, %v8416_v49  ;;  %v8499_v24 = vld [vmem:[#allocation131_spill] sm:$0xff] }
 0x280   : > { %8491 = vst [vmem:[#allocation112_spill] sm:$0xff] %v6932_v35  ;;  %3258 = vmatprep.subr.mxu0 %v8492_v46  ;;  %3384 = vmatprep.subr.mxu1 %v8415_v36  ;;  %v7942_v44 = vand.u32 4294901760, %v6887_v29  ;;  %v8496_v36 = vld [vmem:[#allocation68_spill] sm:$0xff]  ;;  %v8497_v56 = vand.u32 4294901760, %v6447_v43  ;;  %v1754_v20 = vmul.f32 %v1722_v3, %v1562_v58  ;;  %v6955_v49 = vsub.f32 %v6879_v38, %v7938_v0  ;;  %v8501_v43 = vld [vmem:[#allocation126_spill] sm:$0xff] }
 0x281   : > { %3262 = vmatpush1.msra.mxu0 %v8495_v1  ;;  %3386 = vmatpush1.msra.mxu1 %v8417_v7  ;;  %v1685_v15 = vmul.f32 24.0, %v8496_v36  ;;  %v6957_v7 = vand.u32 4294901760, %v1753_v12  ;;  %v6962_v46 = vsub.f32 %v6859_v63, %v7940_v57  ;;  %v8500_v30 = vand.u32 4294901760, %v8499_v24  ;;  %v8503_v58 = vld [vmem:[#allocation36_spill] sm:$0xff]  ;;  %v8504_v0 = vld [vmem:[#allocation134_spill] sm:$0xff] }
 0x282   : > { %3266 = vmatprep.subr.mxu0 %v8497_v56  ;;  %3388 = vmatprep.subr.mxu1 %v8418_v22  ;;  %v1751_v1 = vmul.f32 %v1719_v53, %v1559_v5  ;;  %v8502_v22 = vld [vmem:[#allocation117_spill] sm:$0xff]  ;;  %v1718_v36 = vsub.f32 16.0, %v1686_v28  ;;  %v7943_v56 = vand.u32 4294901760, %v6932_v35  ;;  %v8505_v14 = vand.u32 4294901760, %v8504_v0  ;;  %v8508_v24 = vld [vmem:[#allocation120_spill] sm:$0xff] }
 0x283   : > { %8498 = vst [vmem:[#allocation102_spill] sm:$0xff] %v6957_v7  ;;  %3270 = vmatpush1.msra.mxu0 %v8500_v30  ;;  %3390 = vmatpush1.msra.mxu1 %v8501_v43  ;;  %v1558_v3 = vmul.f32 %v8503_v58, %v8502_v22  ;;  %v6974_v57 = vsub.f32 %v1755_v45, %v6937_v18  ;;  %v8507_v28 = vand.u32 4294901760, %v6462_v32  ;;  %v8510_v45 = vld [vmem:[#allocation32_spill] sm:$0xff]  ;;  %v8512_v43 = vld [vmem:[#allocation69_spill] sm:$0xff]  ;;  %v8514_v58 = vld [vmem:[#allocation10_spill] sm:$0xff]  ;;  %v6998_v32 = vand.u32 4294901760, %v1754_v20 }
 0x284   : > { %3274 = vmatprep.subr.mxu0 %v8505_v14  ;;  %3392 = vmatprep.subr.mxu1 %v6284_v19  ;;  %v6976_v21 = vmul.f32 %v1720_v6, %v1560_v8  ;;  %v6981_v5 = vsub.f32 %v6899_v27, %v7941_v23  ;;  %v6990_v19 = vsub.f32 %v6887_v29, %v7942_v44  ;;  %v8509_v14 = vld [vmem:[#allocation90_spill] sm:$0xff]  ;;  %v1717_v8 = vsub.f32 16.0, %v1685_v15 }
 0x285   : > { %8506 = vst [vmem:[#allocation110_spill] sm:$0xff] %v6974_v57  ;;  %3278 = vmatpush1.msra.mxu0 %v8507_v28  ;;  %3394 = vmatpush1.msra.mxu1 %v8508_v24  ;;  %v1557_v0 = vmul.f32 %v8510_v45, %v8509_v14  ;;  %v8511_v6 = vld [vmem:[#allocation54_spill] sm:$0xff]  ;;  %v8513_v22 = vand.u32 4294901760, %v8512_v43  ;;  %8515 = vst [vmem:[#allocation111_spill] sm:$0xff] %v6998_v32  ;;  %v8518_v53 = vand.u32 4294901760, %v8517_v10  ;;  %v7009_v45 = vand.u32 4294901760, %v1751_v1 }
 0x286   : > { %v1684_v30 = vmul.f32 24.0, %v8511_v6  ;;  %3396 = vmatprep.subr.mxu1 %v8514_v58  ;;  %v8516_v23 = vld [vmem:[#allocation46_spill] sm:$0xff]  ;;  %v7007_v15 = vsub.f32 %v1753_v12, %v6957_v7  ;;  %v1750_v6 = vmul.f32 %v1718_v36, %v1558_v3  ;;  %v7014_v43 = vsub.f32 %v6932_v35, %v7943_v56  ;;  %v8527_v36 = vld [vmem:[#allocation75_spill] sm:$0xff]  ;;  %v8531_v35 = vld [vmem:[#allocation137_spill] sm:$0xff]  ;;  %3471 = vmatprep.mubr.f32.mxu1 %v8198_v62 }
 0x287   : > { %3282 = vmatprep.subr.mxu0 %v8513_v22  ;;  %v1683_v44 = vmul.f32 24.0, %v8516_v23  ;;  %v8519_v14 = vld [vmem:[#allocation122_spill] sm:$0xff]  ;;  %v8520_v22 = vld [vmem:[#allocation52_spill] sm:$0xff]  ;;  %v8522_v23 = vld [vmem:[#allocation129_spill] sm:$0xff]  ;;  %v7020_v10 = vand.u32 4294901760, %v6976_v21  ;;  %v8524_v12 = vand.u32 4294901760, %v6905_v55  ;;  %v7030_v3 = vsub.f32 %v6870_v60, %v6908_v37 }
 0x288   : > { %3286 = vmatpush1.msra.mxu0 %v8518_v53  ;;  %3398 = vmatpush1.msra.mxu1 %v8519_v14  ;;  %v8521_v58 = vand.u32 4294901760, %v8520_v22  ;;  %v8528_v56 = vand.u32 4294901760, %v8527_v36  ;;  %v8530_v24 = vld [vmem:[#allocation30_spill] sm:$0xff]  ;;  %v1716_v28 = vsub.f32 16.0, %v1684_v30  ;;  %v8532_v29 = vand.u32 4294901760, %v8531_v35  ;;  %v8536_v36 = vld [vmem:[#allocation45_spill] sm:$0xff] }
 0x289   : > { %3400 = vmatprep.subr.mxu1 %v8522_v23  ;;  %8523 = vst [vmem:[#allocation96_spill] sm:$0xff] %v7020_v10  ;;  %v7026_v14 = vsub.f32 %v6905_v55, %v8524_v12  ;;  %8526 = vst [vmem:[#allocation118_spill] sm:$0xff] %v7030_v3  ;;  %v8529_v23 = vld [vmem:[#allocation73_spill] sm:$0xff]  ;;  %v8533_v12 = vld [vmem:[#allocation130_spill] sm:$0xff]  ;;  %v1715_v63 = vsub.f32 16.0, %v1683_v44  ;;  %v7051_v30 = vsub.f32 %v1751_v1, %v7009_v45 }
 0x28a   : > { %3290 = vmatprep.subr.mxu0 %v8521_v58  ;;  %3402 = vmatpush1.msra.mxu1 %v6349_v41  ;;  %v1749_v58 = vmul.f32 %v1717_v8, %v1557_v0  ;;  %v1556_v53 = vmul.f32 %v8530_v24, %v8529_v23  ;;  %v8534_v55 = vld [vmem:[#allocation63_spill] sm:$0xff]  ;;  %v8535_v60 = vld [vmem:[#allocation26_spill] sm:$0xff]  ;;  %v7045_v41 = vsub.f32 %v1754_v20, %v6998_v32  ;;  %v8538_v0 = vand.u32 4294901760, %v6589_v59 }
 0x28b   : > { %8525 = vst [vmem:[#allocation83_spill] sm:$0xff] %v7026_v14  ;;  %3294 = vmatpush1.msra.mxu0 %v8528_v56  ;;  %3404 = vmatprep.subr.mxu1 %v8533_v12  ;;  %v1555_v27 = vmul.f32 %v8535_v60, %v8534_v55  ;;  %v1682_v56 = vmul.f32 24.0, %v8536_v36  ;;  %v8539_v8 = vld [vmem:[#allocation95_spill] sm:$0xff]  ;;  %8540 = vst [vmem:[#allocation92_spill] sm:$0xff] %v7051_v30  ;;  %v8541_v24 = vld [vmem:[#allocation42_spill] sm:$0xff]  ;;  %v8551_v59 = vand.u32 4294901760, %v6658_v47 }
 0x28c   : > { %3298 = vmatprep.subr.mxu0 %v8532_v29  ;;  %8537 = vst [vmem:[#allocation105_spill] sm:$0xff] %v7045_v41  ;;  %3406 = vmatpush1.msra.mxu1 %v8539_v8  ;;  %v7053_v29 = vand.u32 4294901760, %v1750_v6  ;;  %v1681_v55 = vmul.f32 24.0, %v8541_v24  ;;  %v8542_v44 = vld [vmem:[#allocation138_spill] sm:$0xff]  ;;  %v8544_v12 = vld [vmem:[#allocation41_spill] sm:$0xff]  ;;  %v8545_v36 = vld [vmem:[#allocation40_spill] sm:$0xff]  ;;  %v7069_v24 = vmul.f32 %v1716_v28, %v1556_v53 }
 0x28d   : > { %3302 = vmatpush1.msra.mxu0 %v8538_v0  ;;  %v8543_v23 = vand.u32 4294901760, %v8542_v44  ;;  %3408 = vmatprep.subr.mxu1 %v6443_v4  ;;  %v1680_v60 = vmul.f32 24.0, %v8544_v12  ;;  %v1679_v1 = vmul.f32 24.0, %v8545_v36  ;;  %v8546_v0 = vld [vmem:[#allocation139_spill] sm:$0xff]  ;;  %v8548_v22 = vld [vmem:[#allocation78_spill] sm:$0xff]  ;;  %v7067_v35 = vand.u32 4294901760, %v1749_v58 }
 0x28e   : > { %v8547_v8 = vand.u32 4294901760, %v8546_v0  ;;  %3410 = vmatpush1.msra.mxu1 %v8548_v22  ;;  %v8549_v4 = vld [vmem:[#allocation64_spill] sm:$0xff]  ;;  %v1747_v36 = vmul.f32 %v1715_v63, %v1555_v27  ;;  %v1714_v38 = vsub.f32 16.0, %v1682_v56  ;;  %v8554_v22 = vld [vmem:[#allocation22_spill] sm:$0xff]  ;;  %v8556_v28 = vand.u32 4294901760, %v8555_v42  ;;  %v8557_v53 = vld [vmem:[#allocation79_spill] sm:$0xff] }
 0x28f   : > { %3306 = vmatprep.subr.mxu0 %v8543_v23  ;;  %v8550_v23 = vld [vmem:[#allocation24_spill] sm:$0xff]  ;;  %v1713_v44 = vsub.f32 16.0, %v1681_v55  ;;  %v8559_v47 = vld [vmem:[#allocation21_spill] sm:$0xff]  ;;  %v7088_v63 = vsub.f32 %v6976_v21, %v7020_v10  ;;  %v8566_v55 = vld [vmem:[#allocation38_spill] sm:$0xff]  ;;  %v7100_v21 = vand.u32 4294901760, %v7069_v24 }
 0x290   : > { %3310 = vmatpush1.msra.mxu0 %v8547_v8  ;;  %v1554_v20 = vmul.f32 %v8550_v23, %v8549_v4  ;;  %v8552_v12 = vld [vmem:[#allocation132_spill] sm:$0xff]  ;;  %v8553_v8 = vld [vmem:[#allocation59_spill] sm:$0xff]  ;;  %v8561_v27 = vld [vmem:[#allocation141_spill] sm:$0xff]  ;;  %v1678_v0 = vmul.f32 24.0, %v8566_v55 }
 0x291   : > { %3314 = vmatprep.subr.mxu0 %v8551_v59  ;;  %3412 = vmatprep.subr.mxu1 %v8552_v12  ;;  %v1553_v50 = vmul.f32 %v8554_v22, %v8553_v8  ;;  %v8558_v23 = vld [vmem:[#allocation60_spill] sm:$0xff]  ;;  %8560 = vst [vmem:[#allocation77_spill] sm:$0xff] %v7088_v63  ;;  %v8562_v56 = vand.u32 4294901760, %v8561_v27  ;;  %v8563_v12 = vld [vmem:[#allocation74_spill] sm:$0xff]  ;;  %v1712_v8 = vsub.f32 16.0, %v1680_v60  ;;  %v8564_v42 = vld [vmem:[#allocation61_spill] sm:$0xff] }
 0x292   : > { %3318 = vmatpush1.msra.mxu0 %v8556_v28  ;;  %3414 = vmatpush1.msra.mxu1 %v8557_v53  ;;  %v1552_v59 = vmul.f32 %v8559_v47, %v8558_v23  ;;  %v8565_v22 = vld [vmem:[#allocation19_spill] sm:$0xff]  ;;  %v1711_v53 = vsub.f32 16.0, %v1679_v1  ;;  %v8567_v4 = vld [vmem:[#allocation142_spill] sm:$0xff]  ;;  %v8569_v23 = vld [vmem:[#allocation133_spill] sm:$0xff]  ;;  %v8570_v47 = vand.u32 4294901760, %v7030_v3  ;;  %v8571_v60 = vand.u32 4294901760, %v6974_v57 }
 0x293   : > { %3322 = vmatprep.subr.mxu0 %v8562_v56  ;;  %3416 = vmatprep.subr.mxu1 %v8563_v12  ;;  %v1551_v28 = vmul.f32 %v8565_v22, %v8564_v42  ;;  %v8568_v14 = vand.u32 4294901760, %v8567_v4  ;;  %v7113_v1 = vsub.f32 %v1750_v6, %v7053_v29  ;;  %v8573_v4 = vld [vmem:[#allocation143_spill] sm:$0xff]  ;;  %v8575_v12 = vld [vmem:[#allocation70_spill] sm:$0xff]  ;;  %v7119_v42 = vsub.f32 %v1749_v58, %v7067_v35 }
 0x294   : > { %3418 = vmatpush1.msra.mxu1 %v8569_v23  ;;  %v7105_v27 = vsub.f32 %v7030_v3, %v8570_v47  ;;  %v7110_v56 = vsub.f32 %v6974_v57, %v8571_v60  ;;  %v7121_v22 = vand.u32 4294901760, %v1747_v36  ;;  %v7123_v55 = vmul.f32 %v1714_v38, %v1554_v20  ;;  %v8578_v60 = vld [vmem:[#allocation144_spill] sm:$0xff]  ;;  %v8581_v20 = vld [vmem:[#allocation5_spill] sm:$0xff] }
 0x295   : > { %3326 = vmatpush1.msra.mxu0 %v8568_v14  ;;  %8572 = vst [vmem:[#allocation93_spill] sm:$0xff] %v7113_v1  ;;  %v8574_v14 = vand.u32 4294901760, %v8573_v4  ;;  %3420 = vmatprep.subr.mxu1 %v8575_v12  ;;  %8576 = vst [vmem:[#allocation76_spill] sm:$0xff] %v7119_v42  ;;  %v8577_v23 = vand.u32 4294901760, %v7045_v41  ;;  %v8579_v6 = vand.u32 4294901760, %v8578_v60  ;;  %v1745_v4 = vmul.f32 %v1713_v44, %v1553_v50  ;;  %v8582_v57 = vld [vmem:[#allocation57_spill] sm:$0xff] }
 0x296   : > { %3422 = vmatpush1.msra.mxu1 %v8581_v20  ;;  %v1743_v60 = vmul.f32 %v1711_v53, %v1551_v28  ;;  %v1710_v50 = vsub.f32 16.0, %v1678_v0  ;;  %v7967_v38 = vand.u32 4294901760, %v7113_v1  ;;  %v8585_v20 = vld [vmem:[#allocation37_spill] sm:$0xff]  ;;  %v8586_v0 = vld [vmem:[#allocation35_spill] sm:$0xff] }
 0x297   : > { %3330 = vmatprep.subr.mxu0 %v8574_v14  ;;  %v7128_v47 = vsub.f32 %v7045_v41, %v8577_v23  ;;  %v8580_v14 = vand.u32 4294901760, %v7007_v15  ;;  %v7142_v23 = vmul.f32 %v1712_v8, %v1552_v59  ;;  %v8584_v41 = vld [vmem:[#allocation17_spill] sm:$0xff]  ;;  %3424 = vmatprep.subr.mxu1 %v6578_v48  ;;  %v1677_v12 = vmul.f32 24.0, %v8585_v20 }
 0x298   : > { %3334 = vmatpush1.msra.mxu0 %v8579_v6  ;;  %v8583_v6 = vld [vmem:[#allocation55_spill] sm:$0xff]  ;;  %3426 = vmatpush1.msra.mxu1 %v8449_v54  ;;  %v7155_v59 = vsub.f32 %v1747_v36, %v7121_v22  ;;  %v1676_v8 = vmul.f32 24.0, %v8586_v0  ;;  %v7165_v53 = vand.u32 4294901760, %v1745_v4  ;;  %v8587_v54 = vand.u32 4294901760, %v7088_v63 }
 0x299   : > { %v7136_v58 = vsub.f32 %v7007_v15, %v8580_v14  ;;  %3369 = vmatmul.mubr.f32.vlgmr.msra.gmra.mxu0 %v8582_v57  ;;  %v1550_v3 = vmul.f32 %v8584_v41, %v8583_v6  ;;  %3482 = vmatprep.subr.mxu0 %v6815_v33  ;;  %v7158_v41 = vand.u32 4294901760, %v7123_v55  ;;  %v8588_v6 = vand.u32 4294901760, %v7051_v30 }
 0x29a   : > { %3484 = vmatpush1.msra.mxu0 %v6809_v2  ;;  %3428 = vmatprep.subr.mxu1 %v6612_v31  ;;  %v7170_v36 = vsub.f32 %v7088_v63, %v8587_v54  ;;  %v7181_v0 = vand.u32 4294901760, %v7142_v23  ;;  %v7183_v28 = vand.u32 4294901760, %v1743_v60  ;;  %v7192_v54 = vsub.f32 %v7113_v1, %v7967_v38  ;;  %v8594_v38 = vld [vmem:[#allocation14_spill] sm:$0xff]  ;;  %v8607_v63 = vld [vmem:[#allocation135_spill] sm:$0xff] }
 0x29b   : > { %3486 = vmatprep.subr.mxu0 %v6847_v52  ;;  %v7175_v20 = vsub.f32 %v7051_v30, %v8588_v6  ;;  %3430 = vmatpush1.msra.mxu1 %v6621_v34  ;;  %v7185_v14 = vmul.f32 %v1710_v50, %v1550_v3  ;;  %v8590_v34 = vld [vmem:[#allocation56_spill] sm:$0xff]  ;;  %v8591_v6 = vld [vmem:[#allocation15_spill] sm:$0xff]  ;;  %v1709_v31 = vsub.f32 16.0, %v1677_v12  ;;  %v7198_v48 = vsub.f32 %v7069_v24, %v7100_v21  ;;  %v8593_v50 = vld [vmem:[#allocation49_spill] sm:$0xff] }
 0x29c   : > { %3488 = vmatpush1.msra.mxu0 %v6833_v61  ;;  %8589 = vst [vmem:[#allocation72_spill] sm:$0xff] %v7183_v28  ;;  %3432 = vmatprep.subr.mxu1 %v6635_v17  ;;  %v1549_v44 = vmul.f32 %v8591_v6, %v8590_v34  ;;  %v8592_v17 = vand.u32 4294901760, %v7119_v42  ;;  %v1548_v1 = vmul.f32 %v8594_v38, %v8593_v50  ;;  %v1708_v30 = vsub.f32 16.0, %v1676_v8  ;;  %v8596_v6 = vld [vmem:[#allocation33_spill] sm:$0xff]  ;;  %v8599_v50 = vld [vmem:[#allocation31_spill] sm:$0xff]  ;;  %v8606_v12 = vld [vmem:[#allocation18_spill] sm:$0xff] }
 0x29d   : > { %3490 = vmatprep.subr.mxu0 %v6861_v9  ;;  %3434 = vmatpush1.msra.mxu1 %v6647_v13  ;;  %v8595_v9 = vld [vmem:[#allocation34_spill] sm:$0xff]  ;;  %v7213_v24 = vsub.f32 %v1745_v4, %v7165_v53  ;;  %v7221_v38 = vsub.f32 %v1743_v60, %v7183_v28  ;;  %v8598_v8 = vld [vmem:[#allocation13_spill] sm:$0xff]  ;;  %v8600_v13 = vld [vmem:[#allocation27_spill] sm:$0xff] }
 0x29e   : > { %3492 = vmatpush1.msra.mxu0 %v6853_v11  ;;  %v7205_v3 = vsub.f32 %v7119_v42, %v8592_v17  ;;  %v1675_v34 = vmul.f32 24.0, %v8595_v9  ;;  %3436 = vmatprep.subr.mxu1 %v6653_v40  ;;  %v1674_v17 = vmul.f32 24.0, %v8596_v6  ;;  %v7224_v40 = vand.u32 4294901760, %v7185_v14  ;;  %v8597_v9 = vld [vmem:[#allocation50_spill] sm:$0xff]  ;;  %v8602_v11 = vld [vmem:[#allocation20_spill] sm:$0xff] }
 0x29f   : > { %3494 = vmatprep.subr.mxu0 %v6889_v51  ;;  %3438 = vmatpush1.msra.mxu1 %v6667_v16  ;;  %v1547_v4 = vmul.f32 %v8598_v8, %v8597_v9  ;;  %v1673_v42 = vmul.f32 24.0, %v8599_v50  ;;  %v1741_v16 = vmul.f32 %v1709_v31, %v1549_v44  ;;  %v1672_v60 = vmul.f32 24.0, %v8600_v13  ;;  %v8604_v44 = vld [vmem:[#allocation51_spill] sm:$0xff]  ;;  %v8605_v31 = vld [vmem:[#allocation12_spill] sm:$0xff] }
 0x2a0   : > { %3496 = vmatpush1.msra.mxu0 %v6868_v39  ;;  %3473 = vmatmul.mubr.f32.vlgmr.msra.gmra.mxu1 %v8582_v57  ;;  %v8601_v51 = vand.u32 4294901760, %v6913_v26  ;;  %v1740_v8 = vmul.f32 %v1708_v30, %v1548_v1  ;;  %v1707_v50 = vsub.f32 16.0, %v1675_v34  ;;  %v1671_v39 = vmul.f32 24.0, %v8602_v11  ;;  %v8609_v30 = vld [vmem:[#allocation47_spill] sm:$0xff] }
 0x2a1   : > { %3498 = vmatprep.subr.mxu0 %v6908_v37  ;;  %v8603_v57 = vand.u32 4294901760, %v6918_v25  ;;  %v1546_v6 = vmul.f32 %v8605_v31, %v8604_v44  ;;  %v1706_v13 = vsub.f32 16.0, %v1674_v17  ;;  %v1670_v37 = vmul.f32 24.0, %v8606_v12  ;;  %v8610_v1 = vld [vmem:[#allocation11_spill] sm:$0xff]  ;;  %v8615_v44 = vld [vmem:[#allocation9_spill] sm:$0xff]  ;;  %3577 = vmatprep.mubr.f32.mxu0 %v8198_v62 }
 0x2a2   : > { %3594 = vmatprep.subr.mxu1 %v8601_v51  ;;  %3500 = vmatpush1.msra.mxu0 %v6937_v18  ;;  %v3479_v26 = vrot.slane %v8607_v63, 5  ;;  %v8608_v51 = vand.u32 4294901760, %v6955_v49  ;;  %v1545_v34 = vmul.f32 %v8610_v1, %v8609_v30  ;;  %v1705_v25 = vsub.f32 16.0, %v1673_v42  ;;  %v8614_v49 = vld [vmem:[#allocation43_spill] sm:$0xff] }
 0x2a3   : > { %3600 = vmatpush1.msra.mxu1 %v8603_v57  ;;  %3502 = vmatprep.subr.mxu0 %v6998_v32  ;;  %v8611_v57 = vld [vmem:[#allocation16_spill] sm:$0xff]  ;;  %v8612_v17 = vand.u32 4294901760, %v6962_v46  ;;  %v7256_v12 = vand.u32 4294901760, %v1741_v16  ;;  %v7260_v63 = vsub.f32 %v7123_v55, %v7158_v41  ;;  %v1544_v31 = vmul.f32 %v8615_v44, %v8614_v49  ;;  %v8620_v49 = vld [vmem:[#allocation29_spill] sm:$0xff] }
 0x2a4   : > { %3606 = vmatprep.subr.mxu1 %v8608_v51  ;;  %v1669_v9 = vmul.f32 24.0, %v8611_v57  ;;  %3504 = vmatpush1.msra.mxu0 %v6957_v7  ;;  %v1704_v51 = vsub.f32 16.0, %v1672_v60  ;;  %v8616_v42 = vand.u32 4294901760, %v6981_v5  ;;  %v7267_v30 = vand.u32 4294901760, %v1740_v8  ;;  %v8617_v46 = vld [vmem:[#allocation28_spill] sm:$0xff]  ;;  %v8621_v60 = vld [vmem:[#allocation7_spill] sm:$0xff] }
 0x2a5   : > { %3612 = vmatpush1.msra.mxu1 %v8612_v17  ;;  %8613 = vst [vmem:[#allocation89_spill] sm:$0xff] %v7256_v12  ;;  %3506 = vmatprep.subr.mxu0 %v7020_v10  ;;  %v1739_v1 = vmul.f32 %v1707_v50, %v1547_v4  ;;  %v8618_v57 = vld [vmem:[#allocation8_spill] sm:$0xff]  ;;  %v1703_v11 = vsub.f32 16.0, %v1671_v39  ;;  %v8619_v55 = vand.u32 4294901760, %v6990_v19  ;;  %v1738_v7 = vmul.f32 %v1706_v13, %v1546_v6  ;;  %v8624_v50 = vld [vmem:[#allocation25_spill] sm:$0xff]  ;;  %v8625_v19 = vld [vmem:[#allocation6_spill] sm:$0xff] }
 0x2a6   : > { %3618 = vmatprep.subr.mxu1 %v8616_v42  ;;  %v1543_v17 = vmul.f32 %v8618_v57, %v8617_v46  ;;  %3508 = vmatpush1.msra.mxu0 %v7009_v45  ;;  %v1542_v44 = vmul.f32 %v8621_v60, %v8620_v49  ;;  %v1702_v10 = vsub.f32 16.0, %v1670_v37  ;;  %v7276_v32 = vand.u32 4294901760, %v3479_v26  ;;  %v8626_v13 = vld [vmem:[#allocation83_spill] sm:$0xff] }
 0x2a7   : > { %3624 = vmatpush1.msra.mxu1 %v8619_v55  ;;  %3510 = vmatprep.subr.mxu0 %v7053_v29  ;;  %v8623_v5 = vand.u32 4294901760, %v7014_v43  ;;  %v1737_v4 = vmul.f32 %v1705_v25, %v1545_v34  ;;  %v7283_v39 = vsub.f32 %v7142_v23, %v7181_v0  ;;  %v1541_v42 = vmul.f32 %v8625_v19, %v8624_v50 }
 0x2a8   : > { %8622 = vst [vmem:[#allocation103_spill] sm:$0xff] %v7276_v32  ;;  %v1701_v6 = vsub.f32 16.0, %v1669_v9  ;;  %3512 = vmatpush1.msra.mxu0 %v7067_v35  ;;  %v8627_v37 = vand.u32 4294901760, %v8626_v13  ;;  %v8628_v46 = vand.u32 4294901760, %v7198_v48  ;;  %v8629_v43 = vand.u32 4294901760, %v7155_v59  ;;  %3813 = vmatprep.mubr.f32.mxu1 %v8198_v62 }
 0x2a9   : > { %3630 = vmatprep.subr.mxu1 %v8623_v5  ;;  %v8005_v23 = vand.u32 4294901760, %v7260_v63  ;;  %v1736_v25 = vmul.f32 %v1704_v51, %v1544_v31  ;;  %3514 = vmatprep.subr.mxu0 %v7100_v21  ;;  %v8630_v9 = vand.u32 4294901760, %v7105_v27  ;;  %v7300_v55 = vand.u32 4294901760, %v1739_v1 }
 0x2aa   : > { %3636 = vmatpush1.msra.mxu1 %v8627_v37  ;;  %v3688_v57 = vsub.f32 %v7198_v48, %v8628_v46  ;;  %v3694_v34 = vsub.f32 %v7155_v59, %v8629_v43  ;;  %v8003_v49 = vand.u32 4294901760, %v7213_v24  ;;  %v1735_v60 = vmul.f32 %v1703_v11, %v1543_v17  ;;  %3516 = vmatpush1.msra.mxu0 %v7121_v22 }
 0x2ab   : > { %3642 = vmatprep.subr.mxu1 %v8630_v9  ;;  %v7305_v5 = vsub.f32 %v7185_v14, %v7224_v40  ;;  %v8631_v50 = vand.u32 4294901760, %v7110_v56  ;;  %v7311_v31 = vsub.f32 %v1741_v16, %v7256_v12  ;;  %v7313_v51 = vand.u32 4294901760, %v1738_v7  ;;  %3518 = vmatprep.subr.mxu0 %v7158_v41 }
 0x2ac   : > { %v1734_v27 = vmul.f32 %v1702_v10, %v1542_v44  ;;  %v7316_v19 = vsub.f32 %v3479_v26, %v7276_v32  ;;  %v8632_v11 = vand.u32 4294901760, %v7128_v47  ;;  %v7321_v14 = vand.u32 4294901760, %v1737_v4  ;;  %3520 = vmatpush1.msra.mxu0 %v7165_v53 }
 0x2ad   : > { %3648 = vmatpush1.msra.mxu1 %v8631_v50  ;;  %v7992_v17 = vand.u32 4294901760, %v7283_v39  ;;  %v1733_v56 = vmul.f32 %v1701_v6, %v1541_v42  ;;  %v7325_v13 = vsub.f32 %v1740_v8, %v7267_v30  ;;  %v8633_v10 = vand.u32 4294901760, %v7136_v58  ;;  %3522 = vmatprep.subr.mxu0 %v7181_v0 }
 0x2ae   : > { %3654 = vmatprep.subr.mxu1 %v8632_v11  ;;  %v3689_v16 = vand.u32 4294901760, %v3688_v57  ;;  %v3700_v26 = vsub.f32 %v7260_v63, %v8005_v23  ;;  %v7333_v47 = vand.u32 4294901760, %v1736_v25  ;;  %v7996_v44 = vand.u32 4294901760, %v7221_v38  ;;  %3524 = vmatpush1.msra.mxu0 %v7183_v28  ;;  %v8658_v23 = vld [vmem:[#allocation66_spill] sm:$0xff] }
 0x2af   : > { %3660 = vmatpush1.msra.mxu1 %v8633_v10  ;;  %v8634_v42 = vand.u32 4294901760, %v7170_v36  ;;  %v7340_v8 = vsub.f32 %v1739_v1, %v7300_v55  ;;  %v3706_v58 = vsub.f32 %v7213_v24, %v8003_v49  ;;  %v7345_v6 = vand.u32 4294901760, %v1735_v60  ;;  %3526 = vmatprep.subr.mxu0 %v7224_v40  ;;  %v8646_v49 = vld [vmem:[#allocation112_spill] sm:$0xff] }
 0x2b0   : > { %v7994_v37 = vand.u32 4294901760, %v7305_v5  ;;  %v8635_v46 = vand.u32 4294901760, %v7175_v20  ;;  %v7351_v57 = vand.u32 4294901760, %v1734_v27  ;;  %v7993_v36 = vand.u32 4294901760, %v7311_v31  ;;  %3528 = vmatpush1.msra.mxu0 %v7256_v12 }
 0x2b1   : > { %3666 = vmatprep.subr.mxu1 %v8634_v42  ;;  %v8006_v1 = vand.u32 4294901760, %v7316_v19  ;;  %v7356_v43 = vsub.f32 %v1738_v7, %v7313_v51  ;;  %v8636_v9 = vand.u32 4294901760, %v7192_v54  ;;  %v7362_v50 = vsub.f32 %v1737_v4, %v7321_v14  ;;  %3530 = vmatprep.subr.mxu0 %v7267_v30 }
 0x2b2   : > { %3672 = vmatpush1.msra.mxu1 %v8635_v46  ;;  %v3712_v20 = vsub.f32 %v7283_v39, %v7992_v17  ;;  %v7367_v11 = vand.u32 4294901760, %v1733_v56  ;;  %v7995_v10 = vand.u32 4294901760, %v7325_v13  ;;  %v8637_v7 = vand.u32 4294901760, %v7205_v3  ;;  %3532 = vmatpush1.msra.mxu0 %v7300_v55 }
 0x2b3   : > { %3678 = vmatprep.subr.mxu1 %v8636_v9  ;;  %v3695_v42 = vand.u32 4294901760, %v3694_v34  ;;  %v3701_v46 = vand.u32 4294901760, %v3700_v26  ;;  %v3718_v54 = vsub.f32 %v7221_v38, %v7996_v44  ;;  %v7377_v4 = vsub.f32 %v1736_v25, %v7333_v47  ;;  %3534 = vmatprep.subr.mxu0 %v7313_v51 }
 0x2b4   : > { %3684 = vmatpush1.msra.mxu1 %v8637_v7  ;;  %v3707_v9 = vand.u32 4294901760, %v3706_v58  ;;  %v7381_v17 = vsub.f32 %v1735_v60, %v7345_v6  ;;  %v3724_v3 = vsub.f32 %v7305_v5, %v7994_v37  ;;  %v7997_v34 = vand.u32 4294901760, %v7340_v8  ;;  %3536 = vmatpush1.msra.mxu0 %v7321_v14 }
 0x2b5   : > { %8638 = vst [vmem:[#allocation86_spill] sm:$0xff] %v7377_v4  ;;  %3690 = vmatprep.subr.mxu1 %v3689_v16  ;;  %v3730_v25 = vsub.f32 %v7311_v31, %v7993_v36  ;;  %v3581_v16 = vsub.f32 %v7316_v19, %v8006_v1  ;;  %v8001_v60 = vand.u32 4294901760, %v7356_v43  ;;  %v7396_v26 = vsub.f32 %v1734_v27, %v7351_v57  ;;  %v8659_v1 = vld [vmem:[#allocation121_spill] sm:$0xff] }
 0x2b6   : > { %3696 = vmatpush1.msra.mxu1 %v3695_v42  ;;  %v3713_v58 = vand.u32 4294901760, %v3712_v20  ;;  %v7400_v7 = vsub.f32 %v1733_v56, %v7367_v11  ;;  %v3736_v42 = vsub.f32 %v7325_v13, %v7995_v10  ;;  %v7998_v36 = vand.u32 4294901760, %v7362_v50  ;;  %3538 = vmatprep.subr.mxu0 %v7333_v47 }
 0x2b7   : > { %3702 = vmatprep.subr.mxu1 %v3701_v46  ;;  %v3719_v37 = vand.u32 4294901760, %v3718_v54  ;;  %v7999_v27 = vand.u32 4294901760, %v7377_v4  ;;  %v3725_v46 = vand.u32 4294901760, %v3724_v3  ;;  %v3742_v56 = vsub.f32 %v7340_v8, %v7997_v34  ;;  %3540 = vmatpush1.msra.mxu0 %v7345_v6 }
 0x2b8   : > { %8639 = vst [vmem:[#allocation100_spill] sm:$0xff] %v7400_v7  ;;  %3708 = vmatpush1.msra.mxu1 %v3707_v9  ;;  %v8000_v20 = vand.u32 4294901760, %v7381_v17  ;;  %v3731_v10 = vand.u32 4294901760, %v3730_v25  ;;  %v3582_v44 = vand.u32 4294901760, %v3581_v16  ;;  %v3748_v54 = vsub.f32 %v7356_v43, %v8001_v60  ;;  %3542 = vmatprep.subr.mxu0 %v7351_v57  ;;  %v8643_v60 = vld [vmem:[#allocation113_spill] sm:$0xff] }
 0x2b9   : > { %3714 = vmatprep.subr.mxu1 %v3713_v58  ;;  %v8002_v9 = vand.u32 4294901760, %v7396_v26  ;;  %v3737_v3 = vand.u32 4294901760, %v3736_v42  ;;  %v3754_v58 = vsub.f32 %v7362_v50, %v7998_v36  ;;  %v8004_v34 = vand.u32 4294901760, %v7400_v7  ;;  %3544 = vmatpush1.msra.mxu0 %v7367_v11  ;;  %v8640_v42 = vld [vmem:[#allocation119_spill] sm:$0xff] }
 0x2ba   : > { %3720 = vmatpush1.msra.mxu1 %v3719_v37  ;;  %v3760_v37 = vsub.f32 %v7377_v4, %v7999_v27  ;;  %v3743_v25 = vand.u32 4294901760, %v3742_v56  ;;  %v3766_v16 = vsub.f32 %v7381_v17, %v8000_v20  ;;  %3823 = vmatprep.subr.mxu0 %v8640_v42  ;;  %v8641_v36 = vld [vmem:[#allocation107_spill] sm:$0xff] }
 0x2bb   : > { %3726 = vmatprep.subr.mxu1 %v3725_v46  ;;  %3583 = vmatmul.mubr.f32.vlgmr.msra.gmra.mxu0 %v3582_v44  ;;  %v3749_v46 = vand.u32 4294901760, %v3748_v54  ;;  %v3755_v27 = vand.u32 4294901760, %v3754_v58  ;;  %v3778_v56 = vsub.f32 %v7400_v7, %v8004_v34  ;;  %v8644_v54 = vld [vmem:[#allocation124_spill] sm:$0xff] }
 0x2bc   : > { %3732 = vmatpush1.msra.mxu1 %v3731_v10  ;;  %v3772_v10 = vsub.f32 %v7396_v26, %v8002_v9  ;;  %3826 = vmatpush1.msra.mxu0 %v8641_v36  ;;  %v3761_v20 = vand.u32 4294901760, %v3760_v37  ;;  %v3767_v44 = vand.u32 4294901760, %v3766_v16  ;;  %v8650_v37 = vld [vmem:[#allocation105_spill] sm:$0xff]  ;;  %v8657_v34 = vld [vmem:[#allocation76_spill] sm:$0xff] }
 0x2bd   : > { %3738 = vmatprep.subr.mxu1 %v3737_v3  ;;  %v8642_v3 = vld [vmem:[#allocation23_spill] sm:$0xff]  ;;  %v3779_v58 = vand.u32 4294901760, %v3778_v56  ;;  %v8652_v16 = vld [vmem:[#allocation65_spill] sm:$0xff]  ;;  %v8654_v56 = vld [vmem:[#allocation114_spill] sm:$0xff]  ;;  %3949 = vmatprep.mubr.f32.mxu0 %v8198_v62 }
 0x2be   : > { %3744 = vmatpush1.msra.mxu1 %v3743_v25  ;;  %3829 = vmatprep.subr.mxu0 %v8642_v3  ;;  %v3773_v9 = vand.u32 4294901760, %v3772_v10  ;;  %v8645_v25 = vld [vmem:[#allocation127_spill] sm:$0xff]  ;;  %v8653_v10 = vld [vmem:[#allocation92_spill] sm:$0xff] }
 0x2bf   : > { %3750 = vmatprep.subr.mxu1 %v3749_v46  ;;  %3832 = vmatpush1.msra.mxu0 %v8643_v60  ;;  %v8647_v46 = vld [vmem:[#allocation84_spill] sm:$0xff] }
 0x2c0   : > { %3756 = vmatpush1.msra.mxu1 %v3755_v27  ;;  %3835 = vmatprep.subr.mxu0 %v8644_v54  ;;  %v8648_v27 = vld [vmem:[#allocation118_spill] sm:$0xff] }
 0x2c1   : > { %3762 = vmatprep.subr.mxu1 %v3761_v20  ;;  %3838 = vmatpush1.msra.mxu0 %v8645_v25  ;;  %v8649_v20 = vld [vmem:[#allocation110_spill] sm:$0xff] }
 0x2c2   : > { %3768 = vmatpush1.msra.mxu1 %v3767_v44  ;;  %3841 = vmatprep.subr.mxu0 %v8646_v49  ;;  %v8655_v44 = vld [vmem:[#allocation93_spill] sm:$0xff] }
 0x2c3   : > { %3774 = vmatprep.subr.mxu1 %v3773_v9  ;;  %3844 = vmatpush1.msra.mxu0 %v8647_v46  ;;  %v8651_v9 = vld [vmem:[#allocation77_spill] sm:$0xff] }
 0x2c4   : > { %3780 = vmatpush1.msra.mxu1 %v3779_v58  ;;  %3847 = vmatprep.subr.mxu0 %v8648_v27  ;;  %v8656_v58 = vld [vmem:[#allocation85_spill] sm:$0xff] }
 0x2c5   : > { %3959 = vmatprep.subr.mxu1 %v6815_v33  ;;  %3815 = vmatmul.mubr.f32.vlgmr.msra.gmra.mxu1 %v7276_v32  ;;  %v8660_v32 = vld [vmem:[#allocation111_spill] sm:$0xff] }
 0x2c6   : > { %3850 = vmatpush1.msra.mxu0 %v8649_v20  ;;  %3961 = vmatpush1.msra.mxu1 %v6809_v2 }
 0x2c7   : > { %3853 = vmatprep.subr.mxu0 %v8650_v37  ;;  %3963 = vmatprep.subr.mxu1 %v6847_v52 }
 0x2c8   : > { %3856 = vmatpush1.msra.mxu0 %v7007_v15  ;;  %3965 = vmatpush1.msra.mxu1 %v6833_v61 }
 0x2c9   : > { %3859 = vmatprep.subr.mxu0 %v8651_v9  ;;  %3967 = vmatprep.subr.mxu1 %v8652_v16 }
 0x2ca   : > { %3862 = vmatpush1.msra.mxu0 %v8653_v10  ;;  %3969 = vmatpush1.msra.mxu1 %v8654_v56 }
 0x2cb   : > { %3865 = vmatprep.subr.mxu0 %v8655_v44  ;;  %3971 = vmatprep.subr.mxu1 %v8656_v58  ;;  %v8661_v44 = vld [vmem:[#allocation102_spill] sm:$0xff] }
 0x2cc   : > { %3868 = vmatpush1.msra.mxu0 %v8657_v34  ;;  %3973 = vmatpush1.msra.mxu1 %v8658_v23  ;;  %v8662_v34 = vld [vmem:[#allocation96_spill] sm:$0xff] }
 0x2cd   : > { %3871 = vmatprep.subr.mxu0 %v7198_v48  ;;  %3975 = vmatprep.subr.mxu1 %v8659_v1 }
 0x2ce   : > { %3874 = vmatpush1.msra.mxu0 %v7155_v59  ;;  %3977 = vmatpush1.msra.mxu1 %v6937_v18 }
 0x2cf   : > { %3877 = vmatprep.subr.mxu0 %v7260_v63  ;;  %3979 = vmatprep.subr.mxu1 %v8660_v32 }
 0x2d0   : > { %3880 = vmatpush1.msra.mxu0 %v7213_v24  ;;  %3981 = vmatpush1.msra.mxu1 %v8661_v44 }
 0x2d1   : > { %3883 = vmatprep.subr.mxu0 %v7283_v39  ;;  %3983 = vmatprep.subr.mxu1 %v8662_v34 }
 0x2d2   : > { %3886 = vmatpush1.msra.mxu0 %v7221_v38  ;;  %3985 = vmatpush1.msra.mxu1 %v7009_v45 }
 0x2d3   : > { %3889 = vmatprep.subr.mxu0 %v7305_v5  ;;  %3987 = vmatprep.subr.mxu1 %v7053_v29 }
 0x2d4   : > { %3892 = vmatpush1.msra.mxu0 %v7311_v31  ;;  %3989 = vmatpush1.msra.mxu1 %v7067_v35 }
 0x2d5   : > { %3895 = vmatprep.subr.mxu0 %v7325_v13  ;;  %3991 = vmatprep.subr.mxu1 %v7100_v21 }
 0x2d6   : > { %3898 = vmatpush1.msra.mxu0 %v7340_v8  ;;  %3993 = vmatpush1.msra.mxu1 %v7121_v22 }
 0x2d7   : > { %3901 = vmatprep.subr.mxu0 %v7356_v43  ;;  %3995 = vmatprep.subr.mxu1 %v7158_v41 }
 0x2d8   : > { %3904 = vmatpush1.msra.mxu0 %v7362_v50  ;;  %3997 = vmatpush1.msra.mxu1 %v7165_v53 }
 0x2d9   : > { %3907 = vmatprep.subr.mxu0 %v7377_v4  ;;  %3999 = vmatprep.subr.mxu1 %v7181_v0  ;;  %v8663_v4 = vand.u32 4294901760, %v8640_v42  ;;  %v8673_v42 = vand.u32 4294901760, %v8649_v20 }
 0x2da   : > { %3910 = vmatpush1.msra.mxu0 %v7381_v17  ;;  %4001 = vmatpush1.msra.mxu1 %v7183_v28  ;;  %v8664_v28 = vand.u32 4294901760, %v8641_v36  ;;  %v8668_v36 = vand.u32 4294901760, %v8645_v25 }
 0x2db   : > { %3913 = vmatprep.subr.mxu0 %v7396_v26  ;;  %4003 = vmatprep.subr.mxu1 %v7224_v40 }
 0x2dc   : > { %3916 = vmatpush1.msra.mxu0 %v7400_v7  ;;  %4005 = vmatpush1.msra.mxu1 %v7256_v12  ;;  %v8665_v7 = vand.u32 4294901760, %v8642_v3  ;;  %v8666_v12 = vand.u32 4294901760, %v8643_v60  ;;  %v8670_v60 = vand.u32 4294901760, %v8647_v46  ;;  %v1869_v3 = vpop.f32.mrf.mxu0  ;;  %v8680_v46 = vld [vmem:[#allocation76_spill] sm:$0xff] }
 0x2dd   : > { %4007 = vmatprep.subr.mxu1 %v7267_v30  ;;  %4067 = vmatprep.subr.mxu0 %v8663_v4  ;;  %v8667_v4 = vand.u32 4294901760, %v8644_v54  ;;  %v8675_v54 = vand.u32 4294901760, %v7007_v15  ;;  %v2101_v15 = vpop.f32.mrf.mxu1 }
 0x2de   : > { %3952 = vmatmul.mubr.f32.vlgmr.msra.gmra.mxu0 %v7316_v19  ;;  %4009 = vmatpush1.msra.mxu1 %v7300_v55 }
 0x2df   : > { %4071 = vmatpush1.msra.mxu0 %v8664_v28  ;;  %4011 = vmatprep.subr.mxu1 %v7313_v51  ;;  %v8669_v28 = vand.u32 4294901760, %v8646_v49  ;;  %v8674_v49 = vand.u32 4294901760, %v8650_v37  ;;  %v8683_v37 = vand.u32 4294901760, %v7155_v59 }
 0x2e0   : > { %4075 = vmatprep.subr.mxu0 %v8665_v7  ;;  %4013 = vmatpush1.msra.mxu1 %v7321_v14  ;;  %v8672_v7 = vand.u32 4294901760, %v7316_v19  ;;  %v8677_v19 = vand.u32 4294901760, %v8653_v10  ;;  %v8685_v10 = vand.u32 4294901760, %v7213_v24  ;;  %v8689_v24 = vand.u32 4294901760, %v7311_v31 }
 0x2e1   : > { %4079 = vmatpush1.msra.mxu0 %v8666_v12  ;;  %4015 = vmatprep.subr.mxu1 %v7333_v47  ;;  %v8671_v12 = vand.u32 4294901760, %v8648_v27  ;;  %v8681_v27 = vand.u32 4294901760, %v8680_v46  ;;  %v8692_v31 = vand.u32 4294901760, %v7356_v43  ;;  %v8697_v43 = vld [vmem:[#allocation72_spill] sm:$0xff] }
 0x2e2   : > { %4083 = vmatprep.subr.mxu0 %v8667_v4  ;;  %4017 = vmatpush1.msra.mxu1 %v7345_v6  ;;  %v8699_v4 = vld [vmem:[#allocation100_spill] sm:$0xff] }
 0x2e3   : > { %4087 = vmatpush1.msra.mxu0 %v8668_v36  ;;  %4019 = vmatprep.subr.mxu1 %v7351_v57  ;;  %v8700_v36 = vand.u32 4294901760, %v8699_v4 }
 0x2e4   : > { %4091 = vmatprep.subr.mxu0 %v8669_v28  ;;  %4021 = vmatpush1.msra.mxu1 %v7367_v11  ;;  %v8702_v28 = vld [vmem:[#allocation103_spill] sm:$0xff] }
 0x2e5   : > { %4095 = vmatpush1.msra.mxu0 %v8670_v60  ;;  %4054 = vmatprep.mubr.f32.mxu1 %v8198_v62 }
 0x2e6   : > { %4099 = vmatprep.subr.mxu0 %v8671_v12  ;;  %4233 = vmatprep.subr.mxu1 %v6815_v33  ;;  %v8676_v33 = vand.u32 4294901760, %v8651_v9  ;;  %v8684_v9 = vand.u32 4294901760, %v7260_v63 }
 0x2e7   : > { %4058 = vmatmul.mubr.f32.vlgmr.msra.gmra.mxu1 %v8672_v7  ;;  %4103 = vmatpush1.msra.mxu0 %v8673_v42 }
 0x2e8   : > { %4235 = vmatpush1.msra.mxu1 %v6809_v2  ;;  %4107 = vmatprep.subr.mxu0 %v8674_v49  ;;  %v8678_v2 = vld [vmem:[#allocation93_spill] sm:$0xff] }
 0x2e9   : > { %4237 = vmatprep.subr.mxu1 %v6847_v52  ;;  %4111 = vmatpush1.msra.mxu0 %v8675_v54  ;;  %v8679_v25 = vand.u32 4294901760, %v8678_v2  ;;  %v1871_v52 = vpop.f32.mrf.mxu0 }
 0x2ea   : > { %4239 = vmatpush1.msra.mxu1 %v6833_v61  ;;  %4115 = vmatprep.subr.mxu0 %v8676_v33  ;;  %v8682_v61 = vand.u32 4294901760, %v7198_v48  ;;  %v8686_v48 = vand.u32 4294901760, %v7283_v39  ;;  %v2102_v39 = vadd.f32 %v2101_v15, %v1869_v3 }
 0x2eb   : > { %4241 = vmatprep.subr.mxu1 %v8652_v16  ;;  %4119 = vmatpush1.msra.mxu0 %v8677_v19  ;;  %v2238_v20 = vpop.f32.mrf.mxu0  ;;  %v2103_v16 = vpop.f32.mrf.mxu1 }
 0x2ec   : > { %4243 = vmatpush1.msra.mxu1 %v8654_v56  ;;  %4123 = vmatprep.subr.mxu0 %v8679_v25  ;;  %v8694_v56 = vld [vmem:[#allocation86_spill] sm:$0xff] }
 0x2ed   : > { %4245 = vmatprep.subr.mxu1 %v8656_v58  ;;  %4127 = vmatpush1.msra.mxu0 %v8681_v27  ;;  %v2240_v59 = vpop.f32.mrf.mxu0 }
 0x2ee   : > { %4247 = vmatpush1.msra.mxu1 %v8658_v23  ;;  %4131 = vmatprep.subr.mxu0 %v8682_v61  ;;  %v2344_v23 = vpop.f32.mrf.mxu1 }
 0x2ef   : > { %4249 = vmatprep.subr.mxu1 %v8659_v1  ;;  %4135 = vmatpush1.msra.mxu0 %v8683_v37  ;;  %v2512_v63 = vpop.f32.mrf.mxu0  ;;  %v2104_v1 = vadd.f32 %v2103_v16, %v1871_v52 }
 0x2f0   : > { %4251 = vmatpush1.msra.mxu1 %v6937_v18  ;;  %4139 = vmatprep.subr.mxu0 %v8684_v9  ;;  %v8687_v18 = vand.u32 4294901760, %v7221_v38  ;;  %v8691_v38 = vand.u32 4294901760, %v7340_v8 }
 0x2f1   : > { %4253 = vmatprep.subr.mxu1 %v8660_v32  ;;  %4143 = vmatpush1.msra.mxu0 %v8685_v10  ;;  %v8688_v32 = vand.u32 4294901760, %v7305_v5  ;;  %v2241_v5 = vadd.f32 %v2240_v59, %v2104_v1 }
 0x2f2   : > { %4255 = vmatpush1.msra.mxu1 %v8661_v44  ;;  %4147 = vmatprep.subr.mxu0 %v8686_v48  ;;  %v8695_v44 = vand.u32 4294901760, %v8694_v56 }
 0x2f3   : > { %4257 = vmatprep.subr.mxu1 %v8662_v34  ;;  %4151 = vmatpush1.msra.mxu0 %v8687_v18  ;;  %v8690_v34 = vand.u32 4294901760, %v7325_v13 }
 0x2f4   : > { %4259 = vmatpush1.msra.mxu1 %v7009_v45  ;;  %4155 = vmatprep.subr.mxu0 %v8688_v32  ;;  %v2346_v45 = vpop.f32.mrf.mxu1 }
 0x2f5   : > { %4261 = vmatprep.subr.mxu1 %v7053_v29  ;;  %4159 = vmatpush1.msra.mxu0 %v8689_v24  ;;  %v2239_v29 = vadd.f32 %v2238_v20, %v2102_v39  ;;  %v2347_v8 = vadd.f32 %v2346_v45, %v2241_v5 }
 0x2f6   : > { %4263 = vmatpush1.msra.mxu1 %v7067_v35  ;;  %4163 = vmatprep.subr.mxu0 %v8690_v34  ;;  %v8693_v35 = vand.u32 4294901760, %v7362_v50  ;;  %v8698_v50 = vand.u32 4294901760, %v7396_v26 }
 0x2f7   : > { %4265 = vmatprep.subr.mxu1 %v7100_v21  ;;  %4167 = vmatpush1.msra.mxu0 %v8691_v38  ;;  %v2514_v21 = vpop.f32.mrf.mxu0  ;;  %v2345_v13 = vadd.f32 %v2344_v23, %v2239_v29  ;;  %v4680_v29 = vmov 1966171168  }
 0x2f8   : > { %4267 = vmatpush1.msra.mxu1 %v7121_v22  ;;  %4171 = vmatprep.subr.mxu0 %v8692_v31  ;;  %v8696_v22 = vand.u32 4294901760, %v7381_v17  ;;  %v2515_v58 = vadd.f32 %v2514_v21, %v2347_v8  ;;  %v8701_v17 = vld [vmem:[#allocation89_spill] sm:$0xff]  ;;  %v4369_v5 = vunpack.c.l.s4 %v4680_v29  ;;  %v4371_v31 = vlaneseq }
 0x2f9   : > { %4269 = vmatprep.subr.mxu1 %v7158_v41  ;;  %4175 = vmatpush1.msra.mxu0 %v8693_v35  ;;  %v2616_v41 = vpop.f32.mrf.mxu1 }
 0x2fa   : > { %4271 = vmatpush1.msra.mxu1 %v7165_v53  ;;  %4179 = vmatprep.subr.mxu0 %v8695_v44  ;;  %v2513_v53 = vadd.f32 %v2512_v63, %v2345_v13  ;;  %vm4386_vm2 = vcmp.lt.s32.totalorder %v4371_v31, 256 }
 0x2fb   : > { %4273 = vmatprep.subr.mxu1 %v7181_v0  ;;  %4183 = vmatpush1.msra.mxu0 %v8696_v22  ;;  %v2618_v0 = vpop.f32.mrf.mxu1 }
 0x2fc   : > { %4275 = vmatpush1.msra.mxu1 %v8697_v43  ;;  %4187 = vmatprep.subr.mxu0 %v8698_v50  ;;  %v2617_v60 = vadd.f32 %v2616_v41, %v2513_v53  ;;  %v2619_v12 = vadd.f32 %v2618_v0, %v2515_v58  ;;  %v4370_v41 = vunpack.c.0.s8 %v4369_v5  ;;  %v4372_v50 = vshrl.u32 %v4371_v31, 7 }
 0x2fd   : > { %4277 = vmatprep.subr.mxu1 %v7224_v40  ;;  %4191 = vmatpush1.msra.mxu0 %v8700_v36 }
 0x2fe   : > { %4224 = vmatprep.mubr.f32.mxu0 %v8198_v62  ;;  %4279 = vmatpush1.msra.mxu1 %v8701_v17  ;;  %v4362_v40 = vcombine.low %v2617_v60, %v2619_v12 }
 0x2ff   : > { %4226 = vmatmul.mubr.f32.vlgmr.msra.gmra.mxu0 %v8702_v28  ;;  %4281 = vmatprep.subr.mxu1 %v7267_v30 }
 0x300   : > { %4328 = vmatprep.mubr.f32.mxu1 %v8198_v62  ;;  %4283 = vmatpush1.msra.mxu1 %v7300_v55  ;;  %4364 = vst [vmem:[%s7606_s4] sm:$0x33] %v4362_v40  ;;  %v4373_v40 = vsub.s32 %v4370_v41, %v4372_v50 }
 0x301   : > { %4285 = vmatprep.subr.mxu1 %v7313_v51 }
 0x302   : > { %4287 = vmatpush1.msra.mxu1 %v7321_v14 }
 0x303   : > { %4289 = vmatprep.subr.mxu1 %v7333_v47 }
 0x304   : > { %4291 = vmatpush1.msra.mxu1 %v7345_v6 }
 0x305   : > { %4293 = vmatprep.subr.mxu1 %v7351_v57 }
 0x306   : > { %4295 = vmatpush1.msra.mxu1 %v7367_v11 }
 0x307   : > { %4330 = vmatmul.mubr.f32.vlgmr.msra.gmra.mxu1 %v8702_v28 }
 0x310   : > { %v2727_v62 = vpop.f32.mrf.mxu0 }
 0x312   : > { %v2729_v30 = vpop.f32.mrf.mxu0 }
 0x31a   : > { %v2959_v55 = vpop.f32.mrf.mxu1 }
 0x31b   : > { %v2960_v47 = vadd.f32 %v2959_v55, %v2727_v62 }
 0x31c   : > { %v2961_v26 = vpop.f32.mrf.mxu1 }
 0x31d   : > { %v2962_v33 = vadd.f32 %v2961_v26, %v2729_v30 }
 0x333   : > { %v3096_v51 = vpop.f32.mrf.mxu0 }
 0x334   : > { %v3097_v19 = vadd.f32 %v3096_v51, %v2960_v47 }
 0x335   : > { %v3098_v14 = vpop.f32.mrf.mxu0 }
 0x336   : > { %v3099_v57 = vadd.f32 %v3098_v14, %v2962_v33 }
 0x33c   : > { %v3202_v7 = vpop.f32.mrf.mxu1 }
 0x33d   : > { %v3203_v11 = vadd.f32 %v3202_v7, %v3097_v19 }
 0x33e   : > { %v3204_v49 = vpop.f32.mrf.mxu1 }
 0x33f   : > { %v3205_v25 = vadd.f32 %v3204_v49, %v3099_v57 }
 0x359   : > { %v3370_v42 = vpop.f32.mrf.mxu0 }
 0x35a   : > { %v3371_v46 = vadd.f32 %v3370_v42, %v3203_v11 }
 0x35b   : > { %v3372_v3 = vpop.f32.mrf.mxu0 }
 0x35c   : > { %v3373_v27 = vadd.f32 %v3372_v3, %v3205_v25 }
 0x360   : > { %v3474_v54 = vpop.f32.mrf.mxu1 }
 0x361   : > { %v3475_v20 = vadd.f32 %v3474_v54, %v3371_v46 }
 0x362   : > { %v3476_v2 = vpop.f32.mrf.mxu1 }
 0x363   : > { %v3477_v37 = vadd.f32 %v3476_v2, %v3373_v27  ;;  %v4336_v48 = vmul.f32 %v3475_v20, %v2617_v60 }
 0x365   : > { %v4337_v59 = vmul.f32 %v3477_v37, %v2619_v12  ;;  %v4340_v39 = vrot.slane %v4336_v48, 6  ;;  %v4346_v53 = vrot.slane %v4336_v48, 7 }
 0x367   : > { %v4341_v1 = vrot.slane %v4337_v59, 6  ;;  %v4344_v8 = vadd.f32 %v4340_v39, %v3475_v20  ;;  %v4347_v58 = vrot.slane %v4337_v59, 7 }
 0x369   : > { %v4345_v56 = vadd.f32 %v4341_v1, %v3477_v37  ;;  %v4350_v0 = vadd.f32 %v4346_v53, %v4344_v8 }
 0x36b   : > { %v4351_v17 = vadd.f32 %v4347_v58, %v4345_v56 }
 0x37b   : > { %v3584_v6 = vpop.f32.mrf.mxu0 }
 0x37d   : > { %v3586_v52 = vpop.f32.mrf.mxu0 }
 0x385   : > { %v3816_v15 = vpop.f32.mrf.mxu1 }
 0x386   : > { %v3817_v23 = vadd.f32 %v3816_v15, %v3584_v6 }
 0x387   : > { %v3818_v9 = vpop.f32.mrf.mxu1 }
 0x388   : > { %v3819_v32 = vadd.f32 %v3818_v9, %v3586_v52 }
 0x39e   : > { %v3953_v61 = vpop.f32.mrf.mxu0 }
 0x39f   : > { %v3954_v24 = vadd.f32 %v3953_v61, %v3817_v23 }
 0x3a0   : > { %v3955_v16 = vpop.f32.mrf.mxu0 }
 0x3a1   : > { %v3956_v34 = vadd.f32 %v3955_v16, %v3819_v32 }
 0x3a7   : > { %v4059_v10 = vpop.f32.mrf.mxu1 }
 0x3a8   : > { %v4060_v45 = vadd.f32 %v4059_v10, %v3954_v24 }
 0x3a9   : > { %v4061_v63 = vpop.f32.mrf.mxu1 }
 0x3aa   : > { %v4062_v35 = vadd.f32 %v4061_v63, %v3956_v34 }
 0x3bf   : > { %v4227_v18 = vpop.f32.mrf.mxu0 }
 0x3c0   : > { %v4228_v21 = vadd.f32 %v4227_v18, %v4060_v45 }
 0x3c1   : > { %v4229_v38 = vpop.f32.mrf.mxu0 }
 0x3c2   : > { %v4230_v44 = vadd.f32 %v4229_v38, %v4062_v35 }
 0x3c7   : > { %v4331_v13 = vpop.f32.mrf.mxu1 }
 0x3c8   : > { %v4332_v22 = vadd.f32 %v4331_v13, %v4228_v21 }
 0x3c9   : > { %v4333_v43 = vpop.f32.mrf.mxu1 }
 0x3ca   : > { %v4354_v4 = vrot.slane %v4332_v22, 6  ;;  %v4334_v36 = vadd.f32 %v4333_v43, %v4230_v44 }
 0x3cc   : > { %v4355_v28 = vrot.slane %v4334_v36, 6  ;;  %v4358_v60 = vadd.f32 %v4354_v4, %v4350_v0 }
 0x3ce   : > { %v4359_v12 = vadd.f32 %v4355_v28, %v4351_v17 }
 0x3d0   : > { %v4367_v62 = vcombine.low %v4358_v60, %v4359_v12 }
 0x3d2   : > { %v4374_v30 = vrot.slane %v4367_v62, %v4373_v40 }
 0x3d4   : > { %v4381_v55 = vrot.slane %v4374_v30, %v4373_v40 }
 0x3d6   : > { %v4382_v51 = vcombine.high %v4381_v55, %v4381_v55 }
 0x3d8   : > { %4503 = vst.msk [vmem:[%s7606_s4 + $0x2] ss:$4 sm:$0x3] %vm4386_vm2, %v4382_v51 }
 0x3d9   : > { %4630 = shalt.err (!%p4627_p3)
}
 0x3da   : > { %s4631_s20 = scalar_lea.hbm %s4403_s9, 128  ;;  %s4635_s26 = scalar_lea.hbm %s7654_s3, 256 }
 0x3db   : > { %p4632_p4 = scmp.ne.s32.totalorder %s4403_s9, %s4631_s20  ;;  %p4636_p9 = scmp.lt.s32.totalorder %s4403_s9, %s7654_s3 }
 0x3dc   : > { %p4637_p10 = scmp.lt.s32.totalorder %s4635_s26, %s4631_s20 }
 0x3dd   : > { %p4633_p7 = pnand %p4632_p4, %p4740_p5 }
 0x3de   : > { %p4638_p11 = por %p4637_p10, %p4636_p9 }
 0x3df   : > { %p4634_p8 = pneg %p4633_p7 }
 0x3e1   : > { %p4639_p12 = pnand %p4638_p11, %p4634_p8 }
 0x3e3   : > { %4642 = shalt.err (!%p4639_p12)
}
 0x3e4   : > { %4510 = dma.vmem_to_hbm [thread:$0]  (%p4740_p5), %s4406_s6, 128, %s4403_s9, %s4391_s10  }
 0x3e5 PF: > { %p4516_p13 = scmp.ge.s32.totalorder %s4677_s15, 2  ;;  %s4417_s29 = sand.u32 1, %s4665_s12  }
 0x3e6   : > { %s4418_s30 = scalar_lea.sflag [#allocation3], %s4417_s29 }
 0x3e7   : > { %p4513_p0 = pnand %p4516_p13, %p4744_p6 }
 0x3e9   : > { %p4514_p1 = pneg %p4513_p0 }
 0x3eb   : > { %4660 = dma.done.wait (%p4514_p1), %s4418_s30, 128  }
 0x3ec   : > { %4662 = vsyncadd (%p4514_p1), %s4418_s30, 4294967168  ;;  %p13_p2 = scmp.ge.s32.totalorder %s4727_s18, 4   ;;  %s8703_s12 = smov %s4669_s13 }
 0x3ed   : > { %s8704_s13 = smov %s4673_s14  ;;  %s8705_s14 = smov %s4738_s21 }
 0x3ee   : > { %s8706_s15 = smov %s4727_s18  ;;  %15 = sbr.rel (!%p13_p2) target bundleno = 3 (0x3), region = 68 }
 0x3f3   :  { %4423 = vsyncpa [#allocation3], 1 }
 0x3f4   :  { %4425 = vsyncpa [#allocation3 + $0x1], 1 }

</bundles_post_ra>
